<compile_context>
chip_gen: v5e
topology: v5e:2x2
jax: 0.10.0
libtpu: 0.0.40
codegen_flags: <defaults>
</compile_context>

<pallas_src>
import math

import jax
import jax.numpy as jnp
from jax import lax
from jax.experimental import pallas as pl
from jax.experimental.pallas import tpu as pltpu

# ----------------------------- config (small, synthetic) --------------------
B = 2            # batch
S = 8            # seqlen
H = 32           # embedding_size / hidden_size
INNER = 64       # inner_size
L = 2            # n_layers
NH = 2           # n_heads
DH = H // NH     # per-head size
MAX_REPEAT = 2
LN_EPS = 1e-12
INIT_RANGE = 0.02
# The torch module's config sentinel is -1; real MiaSRec configs use 1.5.
ENTMAX_ALPHA = 1.5
ENTMAX_ITERS = 24          # f32 mantissa limit; iterations 25-30 gain nothing
NEG_MASK = -10000.0
NEG_IMP = -9.0e15

WCOLS = 3 * H              # lane width of the packed weight slab (widest: Wqkv)


# ----------------------------- packed weight layout --------------------------
def _weight_layout():
    """Static row offsets of every parameter inside the packed (rows, 3H) slab.

    Section starts and per-layer strides are multiples of 8 sublanes; a few
    single-row reads inside a section are unaligned, which is cheap.
    """
    off, cur = {}, 0

    def add(name, rows):
        nonlocal cur
        off[name] = cur
        cur = (cur + rows + 7) // 8 * 8

    add('wqkv', L * H)           # (L*H, 3H)   fused QKV weights
    add('bqkv', L * 8)           # row 8*l     fused QKV bias of layer l
    add('wo',   L * H)           # (L*H, H)    attention output projection
    add('ln',   L * 8)           # rows 8*l..8*l+5: bo, ln1_g, ln1_b, b2, ln2_g, ln2_b
    add('w1',   L * H)           # (L*H, INNER) FFN dense 1
    add('b1',   L * 8)           # row 8*l
    add('w2',   L * INNER)       # (L*INNER, H) FFN dense 2
    add('whw',  2 * H)           # highway Linear(2H -> H)
    add('imp',  3)               # rows: w_imp(first-token), w_imp(step), b_imp (col 0)
    add('gvec', 3)               # rows: ln0_g, ln0_b, b_hw
    add('rep',  MAX_REPEAT + 1)  # repeat-embedding table
    add('pos',  S)               # position-embedding table
    return off, cur


def _pack_weights(raw, off, rows):
    slab = jnp.zeros((rows, WCOLS), jnp.float32)

    def put(s, name, arr):
        a = jnp.asarray(arr, jnp.float32)
        a2 = a.reshape(-1, a.shape[-1])
        return s.at[off[name]:off[name] + a2.shape[0], 0:a2.shape[1]].set(a2)

    bqkv8 = jnp.zeros((L, 8, 3 * H), jnp.float32).at[:, 0:1, :].set(raw['bqkv'])
    b18 = jnp.zeros((L, 8, INNER), jnp.float32).at[:, 0:1, :].set(raw['b1'])
    imp = jnp.concatenate(
        [raw['w_imp'], jnp.pad(raw['b_imp'], ((0, 0), (0, H - 1)))], axis=0)

    slab = put(slab, 'wqkv', raw['wqkv'])
    slab = put(slab, 'bqkv', bqkv8)
    slab = put(slab, 'wo', raw['wo'])
    slab = put(slab, 'ln', raw['lnvec'])
    slab = put(slab, 'w1', raw['w1'])
    slab = put(slab, 'b1', b18)
    slab = put(slab, 'w2', raw['w2'])
    slab = put(slab, 'whw', raw['w_hw'])
    slab = put(slab, 'imp', imp)
    slab = put(slab, 'gvec', raw['gvec'])
    slab = put(slab, 'rep', raw['rep_table'])
    slab = put(slab, 'pos', raw['pos_table'])
    return slab


# ----------------------------- in-kernel helpers ----------------------------
def _layer_norm(x, g, b, eps):
    # var = E[x^2] - mu^2: the two lane reductions are independent (shorter
    # serial chain than mean((x-mu)^2)); clamp guards tiny negative cancellation.
    mu = jnp.mean(x, axis=-1, keepdims=True)
    var = jnp.maximum(jnp.mean(x * x, axis=-1, keepdims=True) - mu * mu, 0.0)
    return (x - mu) * lax.rsqrt(var + eps) * g + b


def _gelu(x):
    # TODO(synk): RecBole's 'gelu' is erf-based; tanh approximation used here
    # for guaranteed TPU lowering (small numerical difference).
    return 0.5 * x * (1.0 + jnp.tanh(0.7978845608028654 * (x + 0.044715 * x * x * x)))


# ----------------------------- kernel factory --------------------------------
def _make_kernel(TB, off):
    ROWS = TB * S
    scale = 1.0 / math.sqrt(DH)
    f32 = jnp.float32

    def kernel(emb_ref, kb_ref, rep_ref, w_ref, out_ref, gamma_ref):
        item3 = emb_ref[...]                               # (TB, S, H)
        item_flat = item3.reshape(ROWS, H)
        key_bias = kb_ref[...]                             # (TB, 1, S): 0 on items, -10000 on pad
        valid3 = key_bias > (0.5 * NEG_MASK)               # (TB, 1, S) bool

        # repeat embedding: 3-row table select (no one-hot MXU push, no extra stream)
        rep = rep_ref[...].reshape(ROWS, 1)                # float values 0 / 1 / 2
        t0 = w_ref[off['rep'] + 0:off['rep'] + 1, 0:H]
        t1 = w_ref[off['rep'] + 1:off['rep'] + 2, 0:H]
        t2 = w_ref[off['rep'] + 2:off['rep'] + 3, 0:H]
        rep_emb = jnp.where(rep >= 1.5, t2, jnp.where(rep >= 0.5, t1, t0))

        # input_emb = item_emb + position_embedding + repeat_embedding, then LN
        pos = w_ref[off['pos']:off['pos'] + S, 0:H]        # (S, H)
        x = (item3 + pos[None, :, :]).reshape(ROWS, H) + rep_emb
        x = _layer_norm(x, w_ref[off['gvec']:off['gvec'] + 1, 0:H],
                        w_ref[off['gvec'] + 1:off['gvec'] + 2, 0:H], LN_EPS)
        # dropout: identity (inference)

        for l in range(L):
            lnv = w_ref[off['ln'] + 8 * l:off['ln'] + 8 * l + 6, 0:H]   # (6, H)

            # fused QKV projection: one lane-dense (H, 3H) matmul
            wq = off['wqkv'] + l * H
            qkv = jnp.dot(x, w_ref[wq:wq + H, :], preferred_element_type=f32) \
                + w_ref[off['bqkv'] + 8 * l:off['bqkv'] + 8 * l + 1, :]
            q3 = qkv[:, 0:H].reshape(TB, S, H)
            k3 = qkv[:, H:2 * H].reshape(TB, S, H)
            v3 = qkv[:, 2 * H:3 * H].reshape(TB, S, H)

            attn = None
            for h in range(NH):
                sl = slice(h * DH, (h + 1) * DH)
                qh, kh, vh = q3[..., sl], k3[..., sl], v3[..., sl]
                scores = lax.dot_general(qh, kh, (((2,), (2,)), ((0,), (0,))),
                                         preferred_element_type=f32) * scale + key_bias
                m = jnp.max(scores, axis=-1, keepdims=True)
                e = jnp.exp(scores - m)
                p = e * pl.reciprocal(jnp.sum(e, axis=-1, keepdims=True), approx=True)
                ctx = lax.dot_general(p, vh, (((2,), (1,)), ((0,), (0,))),
                                      preferred_element_type=f32)        # (TB, S, DH)
                # project each head through its Wo row-block and sum -> no lane concat
                wo_h = w_ref[off['wo'] + l * H + h * DH:
                             off['wo'] + l * H + (h + 1) * DH, 0:H]      # (DH, H)
                part = jnp.dot(ctx.reshape(ROWS, DH), wo_h, preferred_element_type=f32)
                attn = part if attn is None else attn + part
            attn = attn + lnv[0:1, :]                                    # + bo
            x = _layer_norm(attn + x, lnv[1:2, :], lnv[2:3, :], LN_EPS)

            w1 = off['w1'] + l * H
            h1 = _gelu(jnp.dot(x, w_ref[w1:w1 + H, 0:INNER], preferred_element_type=f32)
                       + w_ref[off['b1'] + 8 * l:off['b1'] + 8 * l + 1, 0:INNER])
            w2 = off['w2'] + l * INNER
            h2 = jnp.dot(h1, w_ref[w2:w2 + INNER, 0:H], preferred_element_type=f32) \
                + lnv[3:4, :]                                            # + b2
            x = _layer_norm(h2 + x, lnv[4:5, :], lnv[5:6, :], LN_EPS)

        # highway gate: sigmoid(Linear(concat([item_emb, output])))
        gate = jax.nn.sigmoid(
            jnp.dot(item_flat, w_ref[off['whw']:off['whw'] + H, 0:H],
                    preferred_element_type=f32)
            + jnp.dot(x, w_ref[off['whw'] + H:off['whw'] + 2 * H, 0:H],
                      preferred_element_type=f32)
            + w_ref[off['gvec'] + 2:off['gvec'] + 3, 0:H])
        out_flat = gate * item_flat + (1.0 - gate) * x
        out3 = out_flat.reshape(TB, S, H)
        out_ref[...] = out3.astype(out_ref.dtype)

        # importance head, lane-dense along S: proj[b,r,s] = w_imp[r,:] . out[b,s,:]
        wimp = w_ref[off['imp']:off['imp'] + 2, 0:H]                     # (2, H)
        bimp = w_ref[off['imp'] + 2:off['imp'] + 3, 0:1]                 # (1, 1)
        wpair = jnp.broadcast_to(wimp[None, :, :], (TB, 2, H))
        proj = lax.dot_general(wpair, out3, (((2,), (2,)), ((0,), (0,))),
                               preferred_element_type=f32)               # (TB, 2, S)
        imp = proj[:, 0:1, 0:1] + proj[:, 1:2, :] + bimp                 # (TB, 1, S)
        # TODO(synk): torch casts importance to float64; TPU kernel keeps float32.
        imp = jnp.where(valid3, imp, NEG_IMP)

        # entmax_bisect over the sequence (lane) axis, batched over the block
        am1 = ENTMAX_ALPHA - 1.0
        Xs = imp * am1
        p_fn = lambda t: jnp.square(jnp.maximum(Xs - t, 0.0))   # 1/(alpha-1) == 2
        max_val = jnp.max(Xs, axis=-1, keepdims=True)            # (TB, 1, 1)
        tau_lo0 = max_val - (1.0 ** am1)
        tau_hi = max_val - (1.0 / S) ** am1
        f_lo = jnp.sum(p_fn(tau_lo0), axis=-1, keepdims=True) - 1.0
        dm0 = tau_hi - tau_lo0

        def body(_, carry):
            dm, tau_lo, _pm = carry
            dm = dm * 0.5
            tau_m = tau_lo + dm
            p_m = p_fn(tau_m)
            f_m = jnp.sum(p_m, axis=-1, keepdims=True) - 1.0
            tau_lo = jnp.where(f_m * f_lo >= 0, tau_m, tau_lo)
            return dm, tau_lo, p_m

        _, _, p_m = lax.fori_loop(0, ENTMAX_ITERS, body,
                                  (dm0, tau_lo0, p_fn(tau_lo0)), unroll=True)
        # ensure_sum_one (approx EUP reciprocal; ~2^-12 rel error)
        p_m = p_m * pl.reciprocal(jnp.sum(p_m, axis=-1, keepdims=True), approx=True)
        gamma_ref[...] = p_m.astype(gamma_ref.dtype)              # (TB, 1, S) lane-dense

    return kernel


# ----------------------------- wrapper ---------------------------------------
def _pick_tb(batch):
    """Batch rows per grid step (generation-aware).

    v7x has 2 TensorCores per chip: split the batch so the "parallel" grid
    axis gives both cores work.  v5e/v6e have a single TensorCore: keep the
    whole batch in one grid step (extra steps are pure per-step overhead).
    """
    try:
        kind = jax.devices()[0].device_kind.lower()
    except Exception:
        kind = ""
    if ("v7" in kind or "7x" in kind) and batch >= 2 and batch % 2 == 0:
        return batch // 2
    return batch


def transnet_forward(params, item_seq, item_emb):
    item_seq = item_seq.astype(jnp.int32)
    item_emb = item_emb.astype(jnp.float32)
    batch = item_seq.shape[0]

    # glue (same semantics as the torch module's mask / is_repeat prep)
    mask = item_seq > 0                                                          # (B, S)
    key_bias = jnp.where(mask, 0.0, NEG_MASK).astype(jnp.float32)[:, None, :]    # (B,1,S)
    eq = (item_seq[:, None, :] == item_seq[:, :, None]).astype(jnp.int32).sum(axis=-1)
    is_repeat = jnp.minimum(jnp.where(mask, eq, 0), MAX_REPEAT)
    rep_f = is_repeat.astype(jnp.float32)[:, :, None]                            # (B,S,1)

    TB = _pick_tb(batch)
    NB = batch // TB
    off, wrows = _weight_layout()
    kernel = _make_kernel(TB, off)

    in_specs = [
        pl.BlockSpec((TB, S, H), lambda i: (i, 0, 0)),        # item_emb
        pl.BlockSpec((TB, 1, S), lambda i: (i, 0, 0)),        # key bias 0 / -10000
        pl.BlockSpec((TB, S, 1), lambda i: (i, 0, 0)),        # is_repeat (as float)
        pl.BlockSpec((wrows, WCOLS), lambda i: (0, 0)),       # packed weight slab
    ]
    out_specs = (pl.BlockSpec((TB, S, H), lambda i: (i, 0, 0)),
                 pl.BlockSpec((TB, 1, S), lambda i: (i, 0, 0)))
    out_shape = (jax.ShapeDtypeStruct((batch, S, H), jnp.float32),
                 jax.ShapeDtypeStruct((batch, 1, S), jnp.float32))

    out, gamma = pl.pallas_call(
        kernel,
        grid=(NB,),
        in_specs=in_specs,
        out_specs=out_specs,
        out_shape=out_shape,
        compiler_params=pltpu.CompilerParams(dimension_semantics=("parallel",)),
    )(item_emb, key_bias, rep_f, params['wpack'])
    return out, gamma.reshape(batch, S, 1)


# ----------------------------- parameter init --------------------------------
def init_params(key):
    keys = iter(jax.random.split(key, 8))

    def nrm(shape):
        return (INIT_RANGE * jax.random.normal(next(keys), shape)).astype(jnp.float32)

    ones = jnp.ones((1, H), jnp.float32)
    zeros = jnp.zeros((1, H), jnp.float32)
    gvec = jnp.concatenate([ones, zeros, zeros], axis=0)            # ln0_g, ln0_b, b_hw
    ln_layer = jnp.concatenate(                                     # bo, ln1_g, ln1_b, b2, ln2_g, ln2_b, pad, pad
        [zeros, ones, zeros, zeros, ones, zeros, zeros, zeros], axis=0)
    raw = dict(
        pos_table=nrm((S, H)),
        rep_table=nrm((MAX_REPEAT + 1, H)),
        gvec=gvec,
        wqkv=nrm((L, H, 3 * H)), bqkv=jnp.zeros((L, 1, 3 * H), jnp.float32),
        wo=nrm((L, H, H)),
        lnvec=jnp.tile(ln_layer[None], (L, 1, 1)),                  # (L, 8, H)
        w1=nrm((L, H, INNER)), b1=jnp.zeros((L, 1, INNER), jnp.float32),
        w2=nrm((L, INNER, H)),
        w_hw=nrm((2 * H, H)),
        w_imp=nrm((2, H)),            # row 0: first-token part, row 1: per-step part
        b_imp=jnp.zeros((1, 1), jnp.float32),
    )
    off, rows = _weight_layout()
    return dict(wpack=_pack_weights(raw, off, rows))


# ----------------------------- main -------------------------------------------
if __name__ == "__main__":
    key = jax.random.PRNGKey(0)
    pk, sk, ek = jax.random.split(key, 3)
    params = init_params(pk)

    # item ids in [1, 20) with trailing padding zeros (lengths 6 and 5)
    item_seq = jax.random.randint(sk, (B, S), 1, 20, dtype=jnp.int32)
    pad = jnp.arange(S)[None, :] >= jnp.array([[6], [5]])
    item_seq = jnp.where(pad, 0, item_seq)
    item_emb = (0.5 * jax.random.normal(ek, (B, S, H))).astype(jnp.float32)

    out, gamma = transnet_forward(params, item_seq, item_emb)
    out, gamma = jax.block_until_ready((out, gamma))

    assert out.shape == (B, S, H) and gamma.shape == (B, S, 1)
    assert bool(jnp.all(jnp.isfinite(out))) and bool(jnp.all(jnp.isfinite(gamma)))
    sums = jnp.sum(gamma[..., 0], axis=1)
    assert bool(jnp.all(jnp.abs(sums - 1.0) < 1e-3)), sums
    print("KERNEL_OK")
</pallas_src>

<mosaic_0001>
module attributes {stable_mosaic.version = 11 : i64} {
  func.func @kernel(%arg0: i32, %arg1: memref<2x8x32xf32, #tpu.memory_space<vmem>>, %arg2: memref<2x1x8xf32, #tpu.memory_space<vmem>>, %arg3: memref<2x8x1xf32, #tpu.memory_space<vmem>>, %arg4: memref<464x96xf32, #tpu.memory_space<vmem>>, %arg5: memref<2x8x32xf32, #tpu.memory_space<vmem>>, %arg6: memref<2x1x8xf32, #tpu.memory_space<vmem>>) attributes {dimension_semantics = [#tpu.dimension_semantics<parallel>], iteration_bounds = array<i64: 1>, scalar_prefetch = 0 : i64, scratch_operands = 0 : i64, tpu.core_type = #tpu.core_type<tc>, window_params = [{transform_indices = @transform_0, window_bounds = array<i64: 2, 8, 32>}, {transform_indices = @transform_1, window_bounds = array<i64: 2, 1, 8>}, {transform_indices = @transform_2, window_bounds = array<i64: 2, 8, 1>}, {pipeline_mode = #tpu.pipeline_mode<synchronous>, transform_indices = @transform_3, window_bounds = array<i64: 464, 96>}, {transform_indices = @transform_4, window_bounds = array<i64: 2, 8, 32>}, {transform_indices = @transform_5, window_bounds = array<i64: 2, 1, 8>}]} {
    %c0 = arith.constant 0 : index
    %c0_0 = arith.constant 0 : index
    %c0_1 = arith.constant 0 : index
    %0 = vector.load %arg1[%c0, %c0_0, %c0_1] : memref<2x8x32xf32, #tpu.memory_space<vmem>>, vector<2x8x32xf32>
    %1 = vector.shape_cast %0 : vector<2x8x32xf32> to vector<16x32xf32>
    %c0_2 = arith.constant 0 : index
    %c0_3 = arith.constant 0 : index
    %c0_4 = arith.constant 0 : index
    %2 = vector.load %arg2[%c0_2, %c0_3, %c0_4] : memref<2x1x8xf32, #tpu.memory_space<vmem>>, vector<2x1x8xf32>
    %cst = arith.constant -5.000000e+03 : f32
    %3 = vector.broadcast %cst : f32 to vector<2x1x8xf32>
    %4 = arith.cmpf ogt, %2, %3 : vector<2x1x8xf32>
    %c0_5 = arith.constant 0 : index
    %c0_6 = arith.constant 0 : index
    %c0_7 = arith.constant 0 : index
    %5 = vector.load %arg3[%c0_5, %c0_6, %c0_7] : memref<2x8x1xf32, #tpu.memory_space<vmem>>, vector<2x8x1xf32>
    %6 = vector.shape_cast %5 : vector<2x8x1xf32> to vector<16x1xf32>
    %c448 = arith.constant 448 : index
    %c0_8 = arith.constant 0 : index
    %7 = vector.load %arg4[%c448, %c0_8] : memref<464x96xf32, #tpu.memory_space<vmem>>, vector<1x32xf32>
    %c449 = arith.constant 449 : index
    %c0_9 = arith.constant 0 : index
    %8 = vector.load %arg4[%c449, %c0_9] : memref<464x96xf32, #tpu.memory_space<vmem>>, vector<1x32xf32>
    %c450 = arith.constant 450 : index
    %c0_10 = arith.constant 0 : index
    %9 = vector.load %arg4[%c450, %c0_10] : memref<464x96xf32, #tpu.memory_space<vmem>>, vector<1x32xf32>
    %cst_11 = arith.constant 1.500000e+00 : f32
    %10 = vector.broadcast %cst_11 : f32 to vector<16x1xf32>
    %11 = arith.cmpf oge, %6, %10 : vector<16x1xf32>
    %cst_12 = arith.constant 5.000000e-01 : f32
    %12 = vector.broadcast %cst_12 : f32 to vector<16x1xf32>
    %13 = arith.cmpf oge, %6, %12 : vector<16x1xf32>
    %14 = vector.shape_cast %13 : vector<16x1xi1> to vector<16x1xi1>
    %15 = vector.broadcast %14 : vector<16x1xi1> to vector<16x32xi1>
    %16 = vector.shape_cast %8 : vector<1x32xf32> to vector<1x32xf32>
    %17 = vector.broadcast %16 : vector<1x32xf32> to vector<16x32xf32>
    %18 = vector.shape_cast %7 : vector<1x32xf32> to vector<1x32xf32>
    %19 = vector.broadcast %18 : vector<1x32xf32> to vector<16x32xf32>
    %20 = arith.select %15, %17, %19 : vector<16x32xi1>, vector<16x32xf32>
    %21 = vector.shape_cast %11 : vector<16x1xi1> to vector<16x1xi1>
    %22 = vector.broadcast %21 : vector<16x1xi1> to vector<16x32xi1>
    %23 = vector.shape_cast %9 : vector<1x32xf32> to vector<1x32xf32>
    %24 = vector.broadcast %23 : vector<1x32xf32> to vector<16x32xf32>
    %25 = arith.select %22, %24, %20 : vector<16x32xi1>, vector<16x32xf32>
    %c456 = arith.constant 456 : index
    %c0_13 = arith.constant 0 : index
    %26 = vector.load %arg4[%c456, %c0_13] : memref<464x96xf32, #tpu.memory_space<vmem>>, vector<8x32xf32>
    %27 = vector.shape_cast %26 : vector<8x32xf32> to vector<1x8x32xf32>
    %28 = vector.broadcast %27 : vector<1x8x32xf32> to vector<2x8x32xf32>
    %29 = arith.addf %0, %28 : vector<2x8x32xf32>
    %30 = vector.shape_cast %29 : vector<2x8x32xf32> to vector<16x32xf32>
    %31 = arith.addf %30, %25 : vector<16x32xf32>
    %c440 = arith.constant 440 : index
    %c0_14 = arith.constant 0 : index
    %32 = vector.load %arg4[%c440, %c0_14] : memref<464x96xf32, #tpu.memory_space<vmem>>, vector<1x32xf32>
    %c441 = arith.constant 441 : index
    %c0_15 = arith.constant 0 : index
    %33 = vector.load %arg4[%c441, %c0_15] : memref<464x96xf32, #tpu.memory_space<vmem>>, vector<1x32xf32>
    %cst_16 = arith.constant dense<0.000000e+00> : vector<16xf32>
    %34 = vector.multi_reduction <add>, %31, %cst_16 [1] : vector<16x32xf32> to vector<16xf32>
    %35 = vector.shape_cast %34 : vector<16xf32> to vector<16x1xf32>
    %cst_17 = arith.constant 3.200000e+01 : f32
    %36 = vector.broadcast %cst_17 : f32 to vector<16x1xf32>
    %37 = arith.divf %35, %36 : vector<16x1xf32>
    %38 = arith.mulf %31, %31 : vector<16x32xf32>
    %cst_18 = arith.constant dense<0.000000e+00> : vector<16xf32>
    %39 = vector.multi_reduction <add>, %38, %cst_18 [1] : vector<16x32xf32> to vector<16xf32>
    %40 = vector.shape_cast %39 : vector<16xf32> to vector<16x1xf32>
    %cst_19 = arith.constant 3.200000e+01 : f32
    %41 = vector.broadcast %cst_19 : f32 to vector<16x1xf32>
    %42 = arith.divf %40, %41 : vector<16x1xf32>
    %43 = arith.mulf %37, %37 : vector<16x1xf32>
    %44 = arith.subf %42, %43 : vector<16x1xf32>
    %cst_20 = arith.constant 0.000000e+00 : f32
    %45 = vector.broadcast %cst_20 : f32 to vector<16x1xf32>
    %46 = arith.maximumf %44, %45 : vector<16x1xf32>
    %47 = vector.broadcast %37 : vector<16x1xf32> to vector<16x32xf32>
    %48 = arith.subf %31, %47 : vector<16x32xf32>
    %cst_21 = arith.constant 9.99999996E-13 : f32
    %49 = vector.broadcast %cst_21 : f32 to vector<16x1xf32>
    %50 = arith.addf %46, %49 : vector<16x1xf32>
    %51 = math.rsqrt %50 : vector<16x1xf32>
    %52 = vector.broadcast %51 : vector<16x1xf32> to vector<16x32xf32>
    %53 = arith.mulf %48, %52 : vector<16x32xf32>
    %54 = vector.broadcast %32 : vector<1x32xf32> to vector<16x32xf32>
    %55 = arith.mulf %53, %54 : vector<16x32xf32>
    %56 = vector.broadcast %33 : vector<1x32xf32> to vector<16x32xf32>
    %57 = arith.addf %55, %56 : vector<16x32xf32>
    %c144 = arith.constant 144 : index
    %c0_22 = arith.constant 0 : index
    %58 = vector.load %arg4[%c144, %c0_22] : memref<464x96xf32, #tpu.memory_space<vmem>>, vector<6x32xf32>
    %c0_23 = arith.constant 0 : index
    %c0_24 = arith.constant 0 : index
    %59 = vector.load %arg4[%c0_23, %c0_24] : memref<464x96xf32, #tpu.memory_space<vmem>>, vector<32x96xf32>
    %cst_25 = arith.constant dense<0.000000e+00> : vector<16x96xf32>
    %60 = tpu.matmul %57, %59, %cst_25 {dimension_numbers = #tpu.dot_dimension_numbers<[1], [0], [0], [1], [0, 0, 1, 1], [], []>} : vector<16x32xf32>, vector<32x96xf32>, vector<16x96xf32> -> vector<16x96xf32>
    %c64 = arith.constant 64 : index
    %c0_26 = arith.constant 0 : index
    %61 = vector.load %arg4[%c64, %c0_26] : memref<464x96xf32, #tpu.memory_space<vmem>>, vector<1x96xf32>
    %62 = vector.broadcast %61 : vector<1x96xf32> to vector<16x96xf32>
    %63 = arith.addf %60, %62 : vector<16x96xf32>
    %64 = vector.extract_strided_slice %63 {offsets = [0, 0], sizes = [16, 32], strides = [1, 1]} : vector<16x96xf32> to vector<16x32xf32>
    %65 = vector.shape_cast %64 : vector<16x32xf32> to vector<2x8x32xf32>
    %66 = vector.extract_strided_slice %63 {offsets = [0, 32], sizes = [16, 32], strides = [1, 1]} : vector<16x96xf32> to vector<16x32xf32>
    %67 = vector.shape_cast %66 : vector<16x32xf32> to vector<2x8x32xf32>
    %68 = vector.extract_strided_slice %63 {offsets = [0, 64], sizes = [16, 32], strides = [1, 1]} : vector<16x96xf32> to vector<16x32xf32>
    %69 = vector.shape_cast %68 : vector<16x32xf32> to vector<2x8x32xf32>
    %70 = vector.extract_strided_slice %65 {offsets = [0, 0, 0], sizes = [2, 8, 16], strides = [1, 1, 1]} : vector<2x8x32xf32> to vector<2x8x16xf32>
    %71 = vector.extract_strided_slice %67 {offsets = [0, 0, 0], sizes = [2, 8, 16], strides = [1, 1, 1]} : vector<2x8x32xf32> to vector<2x8x16xf32>
    %72 = vector.extract_strided_slice %69 {offsets = [0, 0, 0], sizes = [2, 8, 16], strides = [1, 1, 1]} : vector<2x8x32xf32> to vector<2x8x16xf32>
    %cst_27 = arith.constant dense<0.000000e+00> : vector<2x8x8xf32>
    %73 = tpu.matmul %70, %71, %cst_27 {dimension_numbers = #tpu.dot_dimension_numbers<[2], [2], [1], [1], [0, 0, 0, 1, 1, 1], [0], [0]>} : vector<2x8x16xf32>, vector<2x8x16xf32>, vector<2x8x8xf32> -> vector<2x8x8xf32>
    %cst_28 = arith.constant 2.500000e-01 : f32
    %74 = vector.broadcast %cst_28 : f32 to vector<2x8x8xf32>
    %75 = arith.mulf %73, %74 : vector<2x8x8xf32>
    %76 = vector.broadcast %2 : vector<2x1x8xf32> to vector<2x8x8xf32>
    %77 = arith.addf %75, %76 : vector<2x8x8xf32>
    %cst_29 = arith.constant dense<0xFF800000> : vector<2x8xf32>
    %78 = vector.multi_reduction <maximumf>, %77, %cst_29 [2] : vector<2x8x8xf32> to vector<2x8xf32>
    %79 = vector.shape_cast %78 : vector<2x8xf32> to vector<2x8x1xf32>
    %80 = vector.broadcast %79 : vector<2x8x1xf32> to vector<2x8x8xf32>
    %81 = arith.subf %77, %80 : vector<2x8x8xf32>
    %82 = math.exp %81 : vector<2x8x8xf32>
    %cst_30 = arith.constant dense<0.000000e+00> : vector<2x8xf32>
    %83 = vector.multi_reduction <add>, %82, %cst_30 [2] : vector<2x8x8xf32> to vector<2x8xf32>
    %84 = vector.shape_cast %83 : vector<2x8xf32> to vector<2x8x1xf32>
    %85 = tpu.reciprocal %84 {approx = true} : vector<2x8x1xf32> -> vector<2x8x1xf32>
    %86 = vector.broadcast %85 : vector<2x8x1xf32> to vector<2x8x8xf32>
    %87 = arith.mulf %82, %86 : vector<2x8x8xf32>
    %cst_31 = arith.constant dense<0.000000e+00> : vector<2x8x16xf32>
    %88 = tpu.matmul %87, %72, %cst_31 {dimension_numbers = #tpu.dot_dimension_numbers<[2], [1], [1], [2], [0, 0, 0, 1, 1, 2], [0], [0]>} : vector<2x8x8xf32>, vector<2x8x16xf32>, vector<2x8x16xf32> -> vector<2x8x16xf32>
    %c80 = arith.constant 80 : index
    %c0_32 = arith.constant 0 : index
    %89 = vector.load %arg4[%c80, %c0_32] : memref<464x96xf32, #tpu.memory_space<vmem>>, vector<16x32xf32>
    %90 = vector.shape_cast %88 : vector<2x8x16xf32> to vector<16x16xf32>
    %cst_33 = arith.constant dense<0.000000e+00> : vector<16x32xf32>
    %91 = tpu.matmul %90, %89, %cst_33 {dimension_numbers = #tpu.dot_dimension_numbers<[1], [0], [0], [1], [0, 0, 1, 1], [], []>} : vector<16x16xf32>, vector<16x32xf32>, vector<16x32xf32> -> vector<16x32xf32>
    %92 = vector.extract_strided_slice %65 {offsets = [0, 0, 16], sizes = [2, 8, 16], strides = [1, 1, 1]} : vector<2x8x32xf32> to vector<2x8x16xf32>
    %93 = vector.extract_strided_slice %67 {offsets = [0, 0, 16], sizes = [2, 8, 16], strides = [1, 1, 1]} : vector<2x8x32xf32> to vector<2x8x16xf32>
    %94 = vector.extract_strided_slice %69 {offsets = [0, 0, 16], sizes = [2, 8, 16], strides = [1, 1, 1]} : vector<2x8x32xf32> to vector<2x8x16xf32>
    %cst_34 = arith.constant dense<0.000000e+00> : vector<2x8x8xf32>
    %95 = tpu.matmul %92, %93, %cst_34 {dimension_numbers = #tpu.dot_dimension_numbers<[2], [2], [1], [1], [0, 0, 0, 1, 1, 1], [0], [0]>} : vector<2x8x16xf32>, vector<2x8x16xf32>, vector<2x8x8xf32> -> vector<2x8x8xf32>
    %cst_35 = arith.constant 2.500000e-01 : f32
    %96 = vector.broadcast %cst_35 : f32 to vector<2x8x8xf32>
    %97 = arith.mulf %95, %96 : vector<2x8x8xf32>
    %98 = vector.broadcast %2 : vector<2x1x8xf32> to vector<2x8x8xf32>
    %99 = arith.addf %97, %98 : vector<2x8x8xf32>
    %cst_36 = arith.constant dense<0xFF800000> : vector<2x8xf32>
    %100 = vector.multi_reduction <maximumf>, %99, %cst_36 [2] : vector<2x8x8xf32> to vector<2x8xf32>
    %101 = vector.shape_cast %100 : vector<2x8xf32> to vector<2x8x1xf32>
    %102 = vector.broadcast %101 : vector<2x8x1xf32> to vector<2x8x8xf32>
    %103 = arith.subf %99, %102 : vector<2x8x8xf32>
    %104 = math.exp %103 : vector<2x8x8xf32>
    %cst_37 = arith.constant dense<0.000000e+00> : vector<2x8xf32>
    %105 = vector.multi_reduction <add>, %104, %cst_37 [2] : vector<2x8x8xf32> to vector<2x8xf32>
    %106 = vector.shape_cast %105 : vector<2x8xf32> to vector<2x8x1xf32>
    %107 = tpu.reciprocal %106 {approx = true} : vector<2x8x1xf32> -> vector<2x8x1xf32>
    %108 = vector.broadcast %107 : vector<2x8x1xf32> to vector<2x8x8xf32>
    %109 = arith.mulf %104, %108 : vector<2x8x8xf32>
    %cst_38 = arith.constant dense<0.000000e+00> : vector<2x8x16xf32>
    %110 = tpu.matmul %109, %94, %cst_38 {dimension_numbers = #tpu.dot_dimension_numbers<[2], [1], [1], [2], [0, 0, 0, 1, 1, 2], [0], [0]>} : vector<2x8x8xf32>, vector<2x8x16xf32>, vector<2x8x16xf32> -> vector<2x8x16xf32>
    %c96 = arith.constant 96 : index
    %c0_39 = arith.constant 0 : index
    %111 = vector.load %arg4[%c96, %c0_39] : memref<464x96xf32, #tpu.memory_space<vmem>>, vector<16x32xf32>
    %112 = vector.shape_cast %110 : vector<2x8x16xf32> to vector<16x16xf32>
    %cst_40 = arith.constant dense<0.000000e+00> : vector<16x32xf32>
    %113 = tpu.matmul %112, %111, %cst_40 {dimension_numbers = #tpu.dot_dimension_numbers<[1], [0], [0], [1], [0, 0, 1, 1], [], []>} : vector<16x16xf32>, vector<16x32xf32>, vector<16x32xf32> -> vector<16x32xf32>
    %114 = arith.addf %91, %113 : vector<16x32xf32>
    %115 = vector.extract_strided_slice %58 {offsets = [0, 0], sizes = [1, 32], strides = [1, 1]} : vector<6x32xf32> to vector<1x32xf32>
    %116 = vector.broadcast %115 : vector<1x32xf32> to vector<16x32xf32>
    %117 = arith.addf %114, %116 : vector<16x32xf32>
    %118 = arith.addf %117, %57 : vector<16x32xf32>
    %119 = vector.extract_strided_slice %58 {offsets = [1, 0], sizes = [1, 32], strides = [1, 1]} : vector<6x32xf32> to vector<1x32xf32>
    %120 = vector.extract_strided_slice %58 {offsets = [2, 0], sizes = [1, 32], strides = [1, 1]} : vector<6x32xf32> to vector<1x32xf32>
    %cst_41 = arith.constant dense<0.000000e+00> : vector<16xf32>
    %121 = vector.multi_reduction <add>, %118, %cst_41 [1] : vector<16x32xf32> to vector<16xf32>
    %122 = vector.shape_cast %121 : vector<16xf32> to vector<16x1xf32>
    %cst_42 = arith.constant 3.200000e+01 : f32
    %123 = vector.broadcast %cst_42 : f32 to vector<16x1xf32>
    %124 = arith.divf %122, %123 : vector<16x1xf32>
    %125 = arith.mulf %118, %118 : vector<16x32xf32>
    %cst_43 = arith.constant dense<0.000000e+00> : vector<16xf32>
    %126 = vector.multi_reduction <add>, %125, %cst_43 [1] : vector<16x32xf32> to vector<16xf32>
    %127 = vector.shape_cast %126 : vector<16xf32> to vector<16x1xf32>
    %cst_44 = arith.constant 3.200000e+01 : f32
    %128 = vector.broadcast %cst_44 : f32 to vector<16x1xf32>
    %129 = arith.divf %127, %128 : vector<16x1xf32>
    %130 = arith.mulf %124, %124 : vector<16x1xf32>
    %131 = arith.subf %129, %130 : vector<16x1xf32>
    %cst_45 = arith.constant 0.000000e+00 : f32
    %132 = vector.broadcast %cst_45 : f32 to vector<16x1xf32>
    %133 = arith.maximumf %131, %132 : vector<16x1xf32>
    %134 = vector.broadcast %124 : vector<16x1xf32> to vector<16x32xf32>
    %135 = arith.subf %118, %134 : vector<16x32xf32>
    %cst_46 = arith.constant 9.99999996E-13 : f32
    %136 = vector.broadcast %cst_46 : f32 to vector<16x1xf32>
    %137 = arith.addf %133, %136 : vector<16x1xf32>
    %138 = math.rsqrt %137 : vector<16x1xf32>
    %139 = vector.broadcast %138 : vector<16x1xf32> to vector<16x32xf32>
    %140 = arith.mulf %135, %139 : vector<16x32xf32>
    %141 = vector.broadcast %119 : vector<1x32xf32> to vector<16x32xf32>
    %142 = arith.mulf %140, %141 : vector<16x32xf32>
    %143 = vector.broadcast %120 : vector<1x32xf32> to vector<16x32xf32>
    %144 = arith.addf %142, %143 : vector<16x32xf32>
    %c160 = arith.constant 160 : index
    %c0_47 = arith.constant 0 : index
    %145 = vector.load %arg4[%c160, %c0_47] : memref<464x96xf32, #tpu.memory_space<vmem>>, vector<32x64xf32>
    %cst_48 = arith.constant dense<0.000000e+00> : vector<16x64xf32>
    %146 = tpu.matmul %144, %145, %cst_48 {dimension_numbers = #tpu.dot_dimension_numbers<[1], [0], [0], [1], [0, 0, 1, 1], [], []>} : vector<16x32xf32>, vector<32x64xf32>, vector<16x64xf32> -> vector<16x64xf32>
    %c224 = arith.constant 224 : index
    %c0_49 = arith.constant 0 : index
    %147 = vector.load %arg4[%c224, %c0_49] : memref<464x96xf32, #tpu.memory_space<vmem>>, vector<1x64xf32>
    %148 = vector.broadcast %147 : vector<1x64xf32> to vector<16x64xf32>
    %149 = arith.addf %146, %148 : vector<16x64xf32>
    %cst_50 = arith.constant 5.000000e-01 : f32
    %150 = vector.broadcast %cst_50 : f32 to vector<16x64xf32>
    %151 = arith.mulf %150, %149 : vector<16x64xf32>
    %cst_51 = arith.constant 4.471500e-02 : f32
    %152 = vector.broadcast %cst_51 : f32 to vector<16x64xf32>
    %153 = arith.mulf %152, %149 : vector<16x64xf32>
    %154 = arith.mulf %153, %149 : vector<16x64xf32>
    %155 = arith.mulf %154, %149 : vector<16x64xf32>
    %156 = arith.addf %149, %155 : vector<16x64xf32>
    %cst_52 = arith.constant 0.797884583 : f32
    %157 = vector.broadcast %cst_52 : f32 to vector<16x64xf32>
    %158 = arith.mulf %157, %156 : vector<16x64xf32>
    %159 = math.tanh %158 : vector<16x64xf32>
    %cst_53 = arith.constant 1.000000e+00 : f32
    %160 = vector.broadcast %cst_53 : f32 to vector<16x64xf32>
    %161 = arith.addf %160, %159 : vector<16x64xf32>
    %162 = arith.mulf %151, %161 : vector<16x64xf32>
    %c240 = arith.constant 240 : index
    %c0_54 = arith.constant 0 : index
    %163 = vector.load %arg4[%c240, %c0_54] : memref<464x96xf32, #tpu.memory_space<vmem>>, vector<64x32xf32>
    %cst_55 = arith.constant dense<0.000000e+00> : vector<16x32xf32>
    %164 = tpu.matmul %162, %163, %cst_55 {dimension_numbers = #tpu.dot_dimension_numbers<[1], [0], [0], [1], [0, 0, 1, 1], [], []>} : vector<16x64xf32>, vector<64x32xf32>, vector<16x32xf32> -> vector<16x32xf32>
    %165 = vector.extract_strided_slice %58 {offsets = [3, 0], sizes = [1, 32], strides = [1, 1]} : vector<6x32xf32> to vector<1x32xf32>
    %166 = vector.broadcast %165 : vector<1x32xf32> to vector<16x32xf32>
    %167 = arith.addf %164, %166 : vector<16x32xf32>
    %168 = arith.addf %167, %144 : vector<16x32xf32>
    %169 = vector.extract_strided_slice %58 {offsets = [4, 0], sizes = [1, 32], strides = [1, 1]} : vector<6x32xf32> to vector<1x32xf32>
    %170 = vector.extract_strided_slice %58 {offsets = [5, 0], sizes = [1, 32], strides = [1, 1]} : vector<6x32xf32> to vector<1x32xf32>
    %cst_56 = arith.constant dense<0.000000e+00> : vector<16xf32>
    %171 = vector.multi_reduction <add>, %168, %cst_56 [1] : vector<16x32xf32> to vector<16xf32>
    %172 = vector.shape_cast %171 : vector<16xf32> to vector<16x1xf32>
    %cst_57 = arith.constant 3.200000e+01 : f32
    %173 = vector.broadcast %cst_57 : f32 to vector<16x1xf32>
    %174 = arith.divf %172, %173 : vector<16x1xf32>
    %175 = arith.mulf %168, %168 : vector<16x32xf32>
    %cst_58 = arith.constant dense<0.000000e+00> : vector<16xf32>
    %176 = vector.multi_reduction <add>, %175, %cst_58 [1] : vector<16x32xf32> to vector<16xf32>
    %177 = vector.shape_cast %176 : vector<16xf32> to vector<16x1xf32>
    %cst_59 = arith.constant 3.200000e+01 : f32
    %178 = vector.broadcast %cst_59 : f32 to vector<16x1xf32>
    %179 = arith.divf %177, %178 : vector<16x1xf32>
    %180 = arith.mulf %174, %174 : vector<16x1xf32>
    %181 = arith.subf %179, %180 : vector<16x1xf32>
    %cst_60 = arith.constant 0.000000e+00 : f32
    %182 = vector.broadcast %cst_60 : f32 to vector<16x1xf32>
    %183 = arith.maximumf %181, %182 : vector<16x1xf32>
    %184 = vector.broadcast %174 : vector<16x1xf32> to vector<16x32xf32>
    %185 = arith.subf %168, %184 : vector<16x32xf32>
    %cst_61 = arith.constant 9.99999996E-13 : f32
    %186 = vector.broadcast %cst_61 : f32 to vector<16x1xf32>
    %187 = arith.addf %183, %186 : vector<16x1xf32>
    %188 = math.rsqrt %187 : vector<16x1xf32>
    %189 = vector.broadcast %188 : vector<16x1xf32> to vector<16x32xf32>
    %190 = arith.mulf %185, %189 : vector<16x32xf32>
    %191 = vector.broadcast %169 : vector<1x32xf32> to vector<16x32xf32>
    %192 = arith.mulf %190, %191 : vector<16x32xf32>
    %193 = vector.broadcast %170 : vector<1x32xf32> to vector<16x32xf32>
    %194 = arith.addf %192, %193 : vector<16x32xf32>
    %c152 = arith.constant 152 : index
    %c0_62 = arith.constant 0 : index
    %195 = vector.load %arg4[%c152, %c0_62] : memref<464x96xf32, #tpu.memory_space<vmem>>, vector<6x32xf32>
    %c32 = arith.constant 32 : index
    %c0_63 = arith.constant 0 : index
    %196 = vector.load %arg4[%c32, %c0_63] : memref<464x96xf32, #tpu.memory_space<vmem>>, vector<32x96xf32>
    %cst_64 = arith.constant dense<0.000000e+00> : vector<16x96xf32>
    %197 = tpu.matmul %194, %196, %cst_64 {dimension_numbers = #tpu.dot_dimension_numbers<[1], [0], [0], [1], [0, 0, 1, 1], [], []>} : vector<16x32xf32>, vector<32x96xf32>, vector<16x96xf32> -> vector<16x96xf32>
    %c72 = arith.constant 72 : index
    %c0_65 = arith.constant 0 : index
    %198 = vector.load %arg4[%c72, %c0_65] : memref<464x96xf32, #tpu.memory_space<vmem>>, vector<1x96xf32>
    %199 = vector.broadcast %198 : vector<1x96xf32> to vector<16x96xf32>
    %200 = arith.addf %197, %199 : vector<16x96xf32>
    %201 = vector.extract_strided_slice %200 {offsets = [0, 0], sizes = [16, 32], strides = [1, 1]} : vector<16x96xf32> to vector<16x32xf32>
    %202 = vector.shape_cast %201 : vector<16x32xf32> to vector<2x8x32xf32>
    %203 = vector.extract_strided_slice %200 {offsets = [0, 32], sizes = [16, 32], strides = [1, 1]} : vector<16x96xf32> to vector<16x32xf32>
    %204 = vector.shape_cast %203 : vector<16x32xf32> to vector<2x8x32xf32>
    %205 = vector.extract_strided_slice %200 {offsets = [0, 64], sizes = [16, 32], strides = [1, 1]} : vector<16x96xf32> to vector<16x32xf32>
    %206 = vector.shape_cast %205 : vector<16x32xf32> to vector<2x8x32xf32>
    %207 = vector.extract_strided_slice %202 {offsets = [0, 0, 0], sizes = [2, 8, 16], strides = [1, 1, 1]} : vector<2x8x32xf32> to vector<2x8x16xf32>
    %208 = vector.extract_strided_slice %204 {offsets = [0, 0, 0], sizes = [2, 8, 16], strides = [1, 1, 1]} : vector<2x8x32xf32> to vector<2x8x16xf32>
    %209 = vector.extract_strided_slice %206 {offsets = [0, 0, 0], sizes = [2, 8, 16], strides = [1, 1, 1]} : vector<2x8x32xf32> to vector<2x8x16xf32>
    %cst_66 = arith.constant dense<0.000000e+00> : vector<2x8x8xf32>
    %210 = tpu.matmul %207, %208, %cst_66 {dimension_numbers = #tpu.dot_dimension_numbers<[2], [2], [1], [1], [0, 0, 0, 1, 1, 1], [0], [0]>} : vector<2x8x16xf32>, vector<2x8x16xf32>, vector<2x8x8xf32> -> vector<2x8x8xf32>
    %cst_67 = arith.constant 2.500000e-01 : f32
    %211 = vector.broadcast %cst_67 : f32 to vector<2x8x8xf32>
    %212 = arith.mulf %210, %211 : vector<2x8x8xf32>
    %213 = vector.broadcast %2 : vector<2x1x8xf32> to vector<2x8x8xf32>
    %214 = arith.addf %212, %213 : vector<2x8x8xf32>
    %cst_68 = arith.constant dense<0xFF800000> : vector<2x8xf32>
    %215 = vector.multi_reduction <maximumf>, %214, %cst_68 [2] : vector<2x8x8xf32> to vector<2x8xf32>
    %216 = vector.shape_cast %215 : vector<2x8xf32> to vector<2x8x1xf32>
    %217 = vector.broadcast %216 : vector<2x8x1xf32> to vector<2x8x8xf32>
    %218 = arith.subf %214, %217 : vector<2x8x8xf32>
    %219 = math.exp %218 : vector<2x8x8xf32>
    %cst_69 = arith.constant dense<0.000000e+00> : vector<2x8xf32>
    %220 = vector.multi_reduction <add>, %219, %cst_69 [2] : vector<2x8x8xf32> to vector<2x8xf32>
    %221 = vector.shape_cast %220 : vector<2x8xf32> to vector<2x8x1xf32>
    %222 = tpu.reciprocal %221 {approx = true} : vector<2x8x1xf32> -> vector<2x8x1xf32>
    %223 = vector.broadcast %222 : vector<2x8x1xf32> to vector<2x8x8xf32>
    %224 = arith.mulf %219, %223 : vector<2x8x8xf32>
    %cst_70 = arith.constant dense<0.000000e+00> : vector<2x8x16xf32>
    %225 = tpu.matmul %224, %209, %cst_70 {dimension_numbers = #tpu.dot_dimension_numbers<[2], [1], [1], [2], [0, 0, 0, 1, 1, 2], [0], [0]>} : vector<2x8x8xf32>, vector<2x8x16xf32>, vector<2x8x16xf32> -> vector<2x8x16xf32>
    %c112 = arith.constant 112 : index
    %c0_71 = arith.constant 0 : index
    %226 = vector.load %arg4[%c112, %c0_71] : memref<464x96xf32, #tpu.memory_space<vmem>>, vector<16x32xf32>
    %227 = vector.shape_cast %225 : vector<2x8x16xf32> to vector<16x16xf32>
    %cst_72 = arith.constant dense<0.000000e+00> : vector<16x32xf32>
    %228 = tpu.matmul %227, %226, %cst_72 {dimension_numbers = #tpu.dot_dimension_numbers<[1], [0], [0], [1], [0, 0, 1, 1], [], []>} : vector<16x16xf32>, vector<16x32xf32>, vector<16x32xf32> -> vector<16x32xf32>
    %229 = vector.extract_strided_slice %202 {offsets = [0, 0, 16], sizes = [2, 8, 16], strides = [1, 1, 1]} : vector<2x8x32xf32> to vector<2x8x16xf32>
    %230 = vector.extract_strided_slice %204 {offsets = [0, 0, 16], sizes = [2, 8, 16], strides = [1, 1, 1]} : vector<2x8x32xf32> to vector<2x8x16xf32>
    %231 = vector.extract_strided_slice %206 {offsets = [0, 0, 16], sizes = [2, 8, 16], strides = [1, 1, 1]} : vector<2x8x32xf32> to vector<2x8x16xf32>
    %cst_73 = arith.constant dense<0.000000e+00> : vector<2x8x8xf32>
    %232 = tpu.matmul %229, %230, %cst_73 {dimension_numbers = #tpu.dot_dimension_numbers<[2], [2], [1], [1], [0, 0, 0, 1, 1, 1], [0], [0]>} : vector<2x8x16xf32>, vector<2x8x16xf32>, vector<2x8x8xf32> -> vector<2x8x8xf32>
    %cst_74 = arith.constant 2.500000e-01 : f32
    %233 = vector.broadcast %cst_74 : f32 to vector<2x8x8xf32>
    %234 = arith.mulf %232, %233 : vector<2x8x8xf32>
    %235 = vector.broadcast %2 : vector<2x1x8xf32> to vector<2x8x8xf32>
    %236 = arith.addf %234, %235 : vector<2x8x8xf32>
    %cst_75 = arith.constant dense<0xFF800000> : vector<2x8xf32>
    %237 = vector.multi_reduction <maximumf>, %236, %cst_75 [2] : vector<2x8x8xf32> to vector<2x8xf32>
    %238 = vector.shape_cast %237 : vector<2x8xf32> to vector<2x8x1xf32>
    %239 = vector.broadcast %238 : vector<2x8x1xf32> to vector<2x8x8xf32>
    %240 = arith.subf %236, %239 : vector<2x8x8xf32>
    %241 = math.exp %240 : vector<2x8x8xf32>
    %cst_76 = arith.constant dense<0.000000e+00> : vector<2x8xf32>
    %242 = vector.multi_reduction <add>, %241, %cst_76 [2] : vector<2x8x8xf32> to vector<2x8xf32>
    %243 = vector.shape_cast %242 : vector<2x8xf32> to vector<2x8x1xf32>
    %244 = tpu.reciprocal %243 {approx = true} : vector<2x8x1xf32> -> vector<2x8x1xf32>
    %245 = vector.broadcast %244 : vector<2x8x1xf32> to vector<2x8x8xf32>
    %246 = arith.mulf %241, %245 : vector<2x8x8xf32>
    %cst_77 = arith.constant dense<0.000000e+00> : vector<2x8x16xf32>
    %247 = tpu.matmul %246, %231, %cst_77 {dimension_numbers = #tpu.dot_dimension_numbers<[2], [1], [1], [2], [0, 0, 0, 1, 1, 2], [0], [0]>} : vector<2x8x8xf32>, vector<2x8x16xf32>, vector<2x8x16xf32> -> vector<2x8x16xf32>
    %c128 = arith.constant 128 : index
    %c0_78 = arith.constant 0 : index
    %248 = vector.load %arg4[%c128, %c0_78] : memref<464x96xf32, #tpu.memory_space<vmem>>, vector<16x32xf32>
    %249 = vector.shape_cast %247 : vector<2x8x16xf32> to vector<16x16xf32>
    %cst_79 = arith.constant dense<0.000000e+00> : vector<16x32xf32>
    %250 = tpu.matmul %249, %248, %cst_79 {dimension_numbers = #tpu.dot_dimension_numbers<[1], [0], [0], [1], [0, 0, 1, 1], [], []>} : vector<16x16xf32>, vector<16x32xf32>, vector<16x32xf32> -> vector<16x32xf32>
    %251 = arith.addf %228, %250 : vector<16x32xf32>
    %252 = vector.extract_strided_slice %195 {offsets = [0, 0], sizes = [1, 32], strides = [1, 1]} : vector<6x32xf32> to vector<1x32xf32>
    %253 = vector.broadcast %252 : vector<1x32xf32> to vector<16x32xf32>
    %254 = arith.addf %251, %253 : vector<16x32xf32>
    %255 = arith.addf %254, %194 : vector<16x32xf32>
    %256 = vector.extract_strided_slice %195 {offsets = [1, 0], sizes = [1, 32], strides = [1, 1]} : vector<6x32xf32> to vector<1x32xf32>
    %257 = vector.extract_strided_slice %195 {offsets = [2, 0], sizes = [1, 32], strides = [1, 1]} : vector<6x32xf32> to vector<1x32xf32>
    %cst_80 = arith.constant dense<0.000000e+00> : vector<16xf32>
    %258 = vector.multi_reduction <add>, %255, %cst_80 [1] : vector<16x32xf32> to vector<16xf32>
    %259 = vector.shape_cast %258 : vector<16xf32> to vector<16x1xf32>
    %cst_81 = arith.constant 3.200000e+01 : f32
    %260 = vector.broadcast %cst_81 : f32 to vector<16x1xf32>
    %261 = arith.divf %259, %260 : vector<16x1xf32>
    %262 = arith.mulf %255, %255 : vector<16x32xf32>
    %cst_82 = arith.constant dense<0.000000e+00> : vector<16xf32>
    %263 = vector.multi_reduction <add>, %262, %cst_82 [1] : vector<16x32xf32> to vector<16xf32>
    %264 = vector.shape_cast %263 : vector<16xf32> to vector<16x1xf32>
    %cst_83 = arith.constant 3.200000e+01 : f32
    %265 = vector.broadcast %cst_83 : f32 to vector<16x1xf32>
    %266 = arith.divf %264, %265 : vector<16x1xf32>
    %267 = arith.mulf %261, %261 : vector<16x1xf32>
    %268 = arith.subf %266, %267 : vector<16x1xf32>
    %cst_84 = arith.constant 0.000000e+00 : f32
    %269 = vector.broadcast %cst_84 : f32 to vector<16x1xf32>
    %270 = arith.maximumf %268, %269 : vector<16x1xf32>
    %271 = vector.broadcast %261 : vector<16x1xf32> to vector<16x32xf32>
    %272 = arith.subf %255, %271 : vector<16x32xf32>
    %cst_85 = arith.constant 9.99999996E-13 : f32
    %273 = vector.broadcast %cst_85 : f32 to vector<16x1xf32>
    %274 = arith.addf %270, %273 : vector<16x1xf32>
    %275 = math.rsqrt %274 : vector<16x1xf32>
    %276 = vector.broadcast %275 : vector<16x1xf32> to vector<16x32xf32>
    %277 = arith.mulf %272, %276 : vector<16x32xf32>
    %278 = vector.broadcast %256 : vector<1x32xf32> to vector<16x32xf32>
    %279 = arith.mulf %277, %278 : vector<16x32xf32>
    %280 = vector.broadcast %257 : vector<1x32xf32> to vector<16x32xf32>
    %281 = arith.addf %279, %280 : vector<16x32xf32>
    %c192 = arith.constant 192 : index
    %c0_86 = arith.constant 0 : index
    %282 = vector.load %arg4[%c192, %c0_86] : memref<464x96xf32, #tpu.memory_space<vmem>>, vector<32x64xf32>
    %cst_87 = arith.constant dense<0.000000e+00> : vector<16x64xf32>
    %283 = tpu.matmul %281, %282, %cst_87 {dimension_numbers = #tpu.dot_dimension_numbers<[1], [0], [0], [1], [0, 0, 1, 1], [], []>} : vector<16x32xf32>, vector<32x64xf32>, vector<16x64xf32> -> vector<16x64xf32>
    %c232 = arith.constant 232 : index
    %c0_88 = arith.constant 0 : index
    %284 = vector.load %arg4[%c232, %c0_88] : memref<464x96xf32, #tpu.memory_space<vmem>>, vector<1x64xf32>
    %285 = vector.broadcast %284 : vector<1x64xf32> to vector<16x64xf32>
    %286 = arith.addf %283, %285 : vector<16x64xf32>
    %cst_89 = arith.constant 5.000000e-01 : f32
    %287 = vector.broadcast %cst_89 : f32 to vector<16x64xf32>
    %288 = arith.mulf %287, %286 : vector<16x64xf32>
    %cst_90 = arith.constant 4.471500e-02 : f32
    %289 = vector.broadcast %cst_90 : f32 to vector<16x64xf32>
    %290 = arith.mulf %289, %286 : vector<16x64xf32>
    %291 = arith.mulf %290, %286 : vector<16x64xf32>
    %292 = arith.mulf %291, %286 : vector<16x64xf32>
    %293 = arith.addf %286, %292 : vector<16x64xf32>
    %cst_91 = arith.constant 0.797884583 : f32
    %294 = vector.broadcast %cst_91 : f32 to vector<16x64xf32>
    %295 = arith.mulf %294, %293 : vector<16x64xf32>
    %296 = math.tanh %295 : vector<16x64xf32>
    %cst_92 = arith.constant 1.000000e+00 : f32
    %297 = vector.broadcast %cst_92 : f32 to vector<16x64xf32>
    %298 = arith.addf %297, %296 : vector<16x64xf32>
    %299 = arith.mulf %288, %298 : vector<16x64xf32>
    %c304 = arith.constant 304 : index
    %c0_93 = arith.constant 0 : index
    %300 = vector.load %arg4[%c304, %c0_93] : memref<464x96xf32, #tpu.memory_space<vmem>>, vector<64x32xf32>
    %cst_94 = arith.constant dense<0.000000e+00> : vector<16x32xf32>
    %301 = tpu.matmul %299, %300, %cst_94 {dimension_numbers = #tpu.dot_dimension_numbers<[1], [0], [0], [1], [0, 0, 1, 1], [], []>} : vector<16x64xf32>, vector<64x32xf32>, vector<16x32xf32> -> vector<16x32xf32>
    %302 = vector.extract_strided_slice %195 {offsets = [3, 0], sizes = [1, 32], strides = [1, 1]} : vector<6x32xf32> to vector<1x32xf32>
    %303 = vector.broadcast %302 : vector<1x32xf32> to vector<16x32xf32>
    %304 = arith.addf %301, %303 : vector<16x32xf32>
    %305 = arith.addf %304, %281 : vector<16x32xf32>
    %306 = vector.extract_strided_slice %195 {offsets = [4, 0], sizes = [1, 32], strides = [1, 1]} : vector<6x32xf32> to vector<1x32xf32>
    %307 = vector.extract_strided_slice %195 {offsets = [5, 0], sizes = [1, 32], strides = [1, 1]} : vector<6x32xf32> to vector<1x32xf32>
    %cst_95 = arith.constant dense<0.000000e+00> : vector<16xf32>
    %308 = vector.multi_reduction <add>, %305, %cst_95 [1] : vector<16x32xf32> to vector<16xf32>
    %309 = vector.shape_cast %308 : vector<16xf32> to vector<16x1xf32>
    %cst_96 = arith.constant 3.200000e+01 : f32
    %310 = vector.broadcast %cst_96 : f32 to vector<16x1xf32>
    %311 = arith.divf %309, %310 : vector<16x1xf32>
    %312 = arith.mulf %305, %305 : vector<16x32xf32>
    %cst_97 = arith.constant dense<0.000000e+00> : vector<16xf32>
    %313 = vector.multi_reduction <add>, %312, %cst_97 [1] : vector<16x32xf32> to vector<16xf32>
    %314 = vector.shape_cast %313 : vector<16xf32> to vector<16x1xf32>
    %cst_98 = arith.constant 3.200000e+01 : f32
    %315 = vector.broadcast %cst_98 : f32 to vector<16x1xf32>
    %316 = arith.divf %314, %315 : vector<16x1xf32>
    %317 = arith.mulf %311, %311 : vector<16x1xf32>
    %318 = arith.subf %316, %317 : vector<16x1xf32>
    %cst_99 = arith.constant 0.000000e+00 : f32
    %319 = vector.broadcast %cst_99 : f32 to vector<16x1xf32>
    %320 = arith.maximumf %318, %319 : vector<16x1xf32>
    %321 = vector.broadcast %311 : vector<16x1xf32> to vector<16x32xf32>
    %322 = arith.subf %305, %321 : vector<16x32xf32>
    %cst_100 = arith.constant 9.99999996E-13 : f32
    %323 = vector.broadcast %cst_100 : f32 to vector<16x1xf32>
    %324 = arith.addf %320, %323 : vector<16x1xf32>
    %325 = math.rsqrt %324 : vector<16x1xf32>
    %326 = vector.broadcast %325 : vector<16x1xf32> to vector<16x32xf32>
    %327 = arith.mulf %322, %326 : vector<16x32xf32>
    %328 = vector.broadcast %306 : vector<1x32xf32> to vector<16x32xf32>
    %329 = arith.mulf %327, %328 : vector<16x32xf32>
    %330 = vector.broadcast %307 : vector<1x32xf32> to vector<16x32xf32>
    %331 = arith.addf %329, %330 : vector<16x32xf32>
    %c368 = arith.constant 368 : index
    %c0_101 = arith.constant 0 : index
    %332 = vector.load %arg4[%c368, %c0_101] : memref<464x96xf32, #tpu.memory_space<vmem>>, vector<32x32xf32>
    %cst_102 = arith.constant dense<0.000000e+00> : vector<16x32xf32>
    %333 = tpu.matmul %1, %332, %cst_102 {dimension_numbers = #tpu.dot_dimension_numbers<[1], [0], [0], [1], [0, 0, 1, 1], [], []>} : vector<16x32xf32>, vector<32x32xf32>, vector<16x32xf32> -> vector<16x32xf32>
    %c400 = arith.constant 400 : index
    %c0_103 = arith.constant 0 : index
    %334 = vector.load %arg4[%c400, %c0_103] : memref<464x96xf32, #tpu.memory_space<vmem>>, vector<32x32xf32>
    %cst_104 = arith.constant dense<0.000000e+00> : vector<16x32xf32>
    %335 = tpu.matmul %331, %334, %cst_104 {dimension_numbers = #tpu.dot_dimension_numbers<[1], [0], [0], [1], [0, 0, 1, 1], [], []>} : vector<16x32xf32>, vector<32x32xf32>, vector<16x32xf32> -> vector<16x32xf32>
    %336 = arith.addf %333, %335 : vector<16x32xf32>
    %c442 = arith.constant 442 : index
    %c0_105 = arith.constant 0 : index
    %337 = vector.load %arg4[%c442, %c0_105] : memref<464x96xf32, #tpu.memory_space<vmem>>, vector<1x32xf32>
    %338 = vector.broadcast %337 : vector<1x32xf32> to vector<16x32xf32>
    %339 = arith.addf %336, %338 : vector<16x32xf32>
    %340 = arith.negf %339 : vector<16x32xf32>
    %341 = math.exp %340 : vector<16x32xf32>
    %cst_106 = arith.constant 1.000000e+00 : f32
    %342 = vector.broadcast %cst_106 : f32 to vector<16x32xf32>
    %343 = arith.addf %342, %341 : vector<16x32xf32>
    %344 = arith.divf %342, %343 : vector<16x32xf32>
    %345 = arith.mulf %344, %1 : vector<16x32xf32>
    %cst_107 = arith.constant 1.000000e+00 : f32
    %346 = vector.broadcast %cst_107 : f32 to vector<16x32xf32>
    %347 = arith.subf %346, %344 : vector<16x32xf32>
    %348 = arith.mulf %347, %331 : vector<16x32xf32>
    %349 = arith.addf %345, %348 : vector<16x32xf32>
    %350 = vector.shape_cast %349 : vector<16x32xf32> to vector<2x8x32xf32>
    %c0_108 = arith.constant 0 : index
    %c0_109 = arith.constant 0 : index
    %c0_110 = arith.constant 0 : index
    %351 = vector.load %arg5[%c0_108, %c0_109, %c0_110] : memref<2x8x32xf32, #tpu.memory_space<vmem>>, vector<2x8x32xf32>
    tpu.vector_store %arg5[%c0_108, %c0_109, %c0_110], %350 {strides = array<i32>} : memref<2x8x32xf32, #tpu.memory_space<vmem>>, vector<2x8x32xf32>,
    %c432 = arith.constant 432 : index
    %c0_111 = arith.constant 0 : index
    %352 = vector.load %arg4[%c432, %c0_111] : memref<464x96xf32, #tpu.memory_space<vmem>>, vector<2x32xf32>
    %c434 = arith.constant 434 : index
    %c0_112 = arith.constant 0 : index
    %353 = vector.load %arg4[%c434, %c0_112] : memref<464x96xf32, #tpu.memory_space<vmem>>, vector<1x1xf32>
    %354 = vector.shape_cast %352 : vector<2x32xf32> to vector<1x2x32xf32>
    %355 = vector.shape_cast %354 : vector<1x2x32xf32> to vector<1x2x32xf32>
    %356 = vector.broadcast %355 : vector<1x2x32xf32> to vector<2x2x32xf32>
    %cst_113 = arith.constant dense<0.000000e+00> : vector<2x2x8xf32>
    %357 = tpu.matmul %356, %350, %cst_113 {dimension_numbers = #tpu.dot_dimension_numbers<[2], [2], [1], [1], [0, 0, 0, 1, 1, 1], [0], [0]>} : vector<2x2x32xf32>, vector<2x8x32xf32>, vector<2x2x8xf32> -> vector<2x2x8xf32>
    %358 = vector.extract_strided_slice %357 {offsets = [0, 0, 0], sizes = [2, 1, 1], strides = [1, 1, 1]} : vector<2x2x8xf32> to vector<2x1x1xf32>
    %359 = vector.extract_strided_slice %357 {offsets = [0, 1, 0], sizes = [2, 1, 8], strides = [1, 1, 1]} : vector<2x2x8xf32> to vector<2x1x8xf32>
    %360 = vector.broadcast %358 : vector<2x1x1xf32> to vector<2x1x8xf32>
    %361 = arith.addf %360, %359 : vector<2x1x8xf32>
    %362 = vector.shape_cast %353 : vector<1x1xf32> to vector<1x1x1xf32>
    %363 = vector.broadcast %362 : vector<1x1x1xf32> to vector<2x1x8xf32>
    %364 = arith.addf %361, %363 : vector<2x1x8xf32>
    %cst_114 = arith.constant -9.000000e+15 : f32
    %365 = vector.broadcast %cst_114 : f32 to vector<2x1x8xf32>
    %366 = arith.select %4, %364, %365 : vector<2x1x8xi1>, vector<2x1x8xf32>
    %cst_115 = arith.constant 5.000000e-01 : f32
    %367 = vector.broadcast %cst_115 : f32 to vector<2x1x8xf32>
    %368 = arith.mulf %366, %367 : vector<2x1x8xf32>
    %cst_116 = arith.constant dense<0xFF800000> : vector<2x1xf32>
    %369 = vector.multi_reduction <maximumf>, %368, %cst_116 [2] : vector<2x1x8xf32> to vector<2x1xf32>
    %370 = vector.shape_cast %369 : vector<2x1xf32> to vector<2x1x1xf32>
    %cst_117 = arith.constant 1.000000e+00 : f32
    %371 = vector.broadcast %cst_117 : f32 to vector<2x1x1xf32>
    %372 = arith.subf %370, %371 : vector<2x1x1xf32>
    %cst_118 = arith.constant 0.353553385 : f32
    %373 = vector.broadcast %cst_118 : f32 to vector<2x1x1xf32>
    %374 = arith.subf %370, %373 : vector<2x1x1xf32>
    %375 = vector.broadcast %372 : vector<2x1x1xf32> to vector<2x1x8xf32>
    %376 = arith.subf %368, %375 : vector<2x1x8xf32>
    %cst_119 = arith.constant 0.000000e+00 : f32
    %377 = vector.broadcast %cst_119 : f32 to vector<2x1x8xf32>
    %378 = arith.maximumf %376, %377 : vector<2x1x8xf32>
    %379 = arith.mulf %378, %378 : vector<2x1x8xf32>
    %cst_120 = arith.constant dense<0.000000e+00> : vector<2x1xf32>
    %380 = vector.multi_reduction <add>, %379, %cst_120 [2] : vector<2x1x8xf32> to vector<2x1xf32>
    %381 = vector.shape_cast %380 : vector<2x1xf32> to vector<2x1x1xf32>
    %cst_121 = arith.constant 1.000000e+00 : f32
    %382 = vector.broadcast %cst_121 : f32 to vector<2x1x1xf32>
    %383 = arith.subf %381, %382 : vector<2x1x1xf32>
    %384 = arith.subf %374, %372 : vector<2x1x1xf32>
    %385 = vector.broadcast %372 : vector<2x1x1xf32> to vector<2x1x8xf32>
    %386 = arith.subf %368, %385 : vector<2x1x8xf32>
    %cst_122 = arith.constant 0.000000e+00 : f32
    %387 = vector.broadcast %cst_122 : f32 to vector<2x1x8xf32>
    %388 = arith.maximumf %386, %387 : vector<2x1x8xf32>
    %389 = arith.mulf %388, %388 : vector<2x1x8xf32>
    %c0_i32 = arith.constant 0 : i32
    %cst_123 = arith.constant 5.000000e-01 : f32
    %390 = vector.broadcast %cst_123 : f32 to vector<2x1x1xf32>
    %391 = arith.mulf %384, %390 : vector<2x1x1xf32>
    %392 = arith.addf %372, %391 : vector<2x1x1xf32>
    %393 = vector.broadcast %392 : vector<2x1x1xf32> to vector<2x1x8xf32>
    %394 = arith.subf %368, %393 : vector<2x1x8xf32>
    %cst_124 = arith.constant 0.000000e+00 : f32
    %395 = vector.broadcast %cst_124 : f32 to vector<2x1x8xf32>
    %396 = arith.maximumf %394, %395 : vector<2x1x8xf32>
    %397 = arith.mulf %396, %396 : vector<2x1x8xf32>
    %cst_125 = arith.constant dense<0.000000e+00> : vector<2x1xf32>
    %398 = vector.multi_reduction <add>, %397, %cst_125 [2] : vector<2x1x8xf32> to vector<2x1xf32>
    %399 = vector.shape_cast %398 : vector<2x1xf32> to vector<2x1x1xf32>
    %cst_126 = arith.constant 1.000000e+00 : f32
    %400 = vector.broadcast %cst_126 : f32 to vector<2x1x1xf32>
    %401 = arith.subf %399, %400 : vector<2x1x1xf32>
    %402 = arith.mulf %401, %383 : vector<2x1x1xf32>
    %cst_127 = arith.constant 0.000000e+00 : f32
    %403 = vector.broadcast %cst_127 : f32 to vector<2x1x1xf32>
    %404 = arith.cmpf oge, %402, %403 : vector<2x1x1xf32>
    %405 = arith.select %404, %392, %372 : vector<2x1x1xi1>, vector<2x1x1xf32>
    %c1_i32 = arith.constant 1 : i32
    %cst_128 = arith.constant 5.000000e-01 : f32
    %406 = vector.broadcast %cst_128 : f32 to vector<2x1x1xf32>
    %407 = arith.mulf %391, %406 : vector<2x1x1xf32>
    %408 = arith.addf %405, %407 : vector<2x1x1xf32>
    %409 = vector.broadcast %408 : vector<2x1x1xf32> to vector<2x1x8xf32>
    %410 = arith.subf %368, %409 : vector<2x1x8xf32>
    %cst_129 = arith.constant 0.000000e+00 : f32
    %411 = vector.broadcast %cst_129 : f32 to vector<2x1x8xf32>
    %412 = arith.maximumf %410, %411 : vector<2x1x8xf32>
    %413 = arith.mulf %412, %412 : vector<2x1x8xf32>
    %cst_130 = arith.constant dense<0.000000e+00> : vector<2x1xf32>
    %414 = vector.multi_reduction <add>, %413, %cst_130 [2] : vector<2x1x8xf32> to vector<2x1xf32>
    %415 = vector.shape_cast %414 : vector<2x1xf32> to vector<2x1x1xf32>
    %cst_131 = arith.constant 1.000000e+00 : f32
    %416 = vector.broadcast %cst_131 : f32 to vector<2x1x1xf32>
    %417 = arith.subf %415, %416 : vector<2x1x1xf32>
    %418 = arith.mulf %417, %383 : vector<2x1x1xf32>
    %cst_132 = arith.constant 0.000000e+00 : f32
    %419 = vector.broadcast %cst_132 : f32 to vector<2x1x1xf32>
    %420 = arith.cmpf oge, %418, %419 : vector<2x1x1xf32>
    %421 = arith.select %420, %408, %405 : vector<2x1x1xi1>, vector<2x1x1xf32>
    %c2_i32 = arith.constant 2 : i32
    %cst_133 = arith.constant 5.000000e-01 : f32
    %422 = vector.broadcast %cst_133 : f32 to vector<2x1x1xf32>
    %423 = arith.mulf %407, %422 : vector<2x1x1xf32>
    %424 = arith.addf %421, %423 : vector<2x1x1xf32>
    %425 = vector.broadcast %424 : vector<2x1x1xf32> to vector<2x1x8xf32>
    %426 = arith.subf %368, %425 : vector<2x1x8xf32>
    %cst_134 = arith.constant 0.000000e+00 : f32
    %427 = vector.broadcast %cst_134 : f32 to vector<2x1x8xf32>
    %428 = arith.maximumf %426, %427 : vector<2x1x8xf32>
    %429 = arith.mulf %428, %428 : vector<2x1x8xf32>
    %cst_135 = arith.constant dense<0.000000e+00> : vector<2x1xf32>
    %430 = vector.multi_reduction <add>, %429, %cst_135 [2] : vector<2x1x8xf32> to vector<2x1xf32>
    %431 = vector.shape_cast %430 : vector<2x1xf32> to vector<2x1x1xf32>
    %cst_136 = arith.constant 1.000000e+00 : f32
    %432 = vector.broadcast %cst_136 : f32 to vector<2x1x1xf32>
    %433 = arith.subf %431, %432 : vector<2x1x1xf32>
    %434 = arith.mulf %433, %383 : vector<2x1x1xf32>
    %cst_137 = arith.constant 0.000000e+00 : f32
    %435 = vector.broadcast %cst_137 : f32 to vector<2x1x1xf32>
    %436 = arith.cmpf oge, %434, %435 : vector<2x1x1xf32>
    %437 = arith.select %436, %424, %421 : vector<2x1x1xi1>, vector<2x1x1xf32>
    %c3_i32 = arith.constant 3 : i32
    %cst_138 = arith.constant 5.000000e-01 : f32
    %438 = vector.broadcast %cst_138 : f32 to vector<2x1x1xf32>
    %439 = arith.mulf %423, %438 : vector<2x1x1xf32>
    %440 = arith.addf %437, %439 : vector<2x1x1xf32>
    %441 = vector.broadcast %440 : vector<2x1x1xf32> to vector<2x1x8xf32>
    %442 = arith.subf %368, %441 : vector<2x1x8xf32>
    %cst_139 = arith.constant 0.000000e+00 : f32
    %443 = vector.broadcast %cst_139 : f32 to vector<2x1x8xf32>
    %444 = arith.maximumf %442, %443 : vector<2x1x8xf32>
    %445 = arith.mulf %444, %444 : vector<2x1x8xf32>
    %cst_140 = arith.constant dense<0.000000e+00> : vector<2x1xf32>
    %446 = vector.multi_reduction <add>, %445, %cst_140 [2] : vector<2x1x8xf32> to vector<2x1xf32>
    %447 = vector.shape_cast %446 : vector<2x1xf32> to vector<2x1x1xf32>
    %cst_141 = arith.constant 1.000000e+00 : f32
    %448 = vector.broadcast %cst_141 : f32 to vector<2x1x1xf32>
    %449 = arith.subf %447, %448 : vector<2x1x1xf32>
    %450 = arith.mulf %449, %383 : vector<2x1x1xf32>
    %cst_142 = arith.constant 0.000000e+00 : f32
    %451 = vector.broadcast %cst_142 : f32 to vector<2x1x1xf32>
    %452 = arith.cmpf oge, %450, %451 : vector<2x1x1xf32>
    %453 = arith.select %452, %440, %437 : vector<2x1x1xi1>, vector<2x1x1xf32>
    %c4_i32 = arith.constant 4 : i32
    %cst_143 = arith.constant 5.000000e-01 : f32
    %454 = vector.broadcast %cst_143 : f32 to vector<2x1x1xf32>
    %455 = arith.mulf %439, %454 : vector<2x1x1xf32>
    %456 = arith.addf %453, %455 : vector<2x1x1xf32>
    %457 = vector.broadcast %456 : vector<2x1x1xf32> to vector<2x1x8xf32>
    %458 = arith.subf %368, %457 : vector<2x1x8xf32>
    %cst_144 = arith.constant 0.000000e+00 : f32
    %459 = vector.broadcast %cst_144 : f32 to vector<2x1x8xf32>
    %460 = arith.maximumf %458, %459 : vector<2x1x8xf32>
    %461 = arith.mulf %460, %460 : vector<2x1x8xf32>
    %cst_145 = arith.constant dense<0.000000e+00> : vector<2x1xf32>
    %462 = vector.multi_reduction <add>, %461, %cst_145 [2] : vector<2x1x8xf32> to vector<2x1xf32>
    %463 = vector.shape_cast %462 : vector<2x1xf32> to vector<2x1x1xf32>
    %cst_146 = arith.constant 1.000000e+00 : f32
    %464 = vector.broadcast %cst_146 : f32 to vector<2x1x1xf32>
    %465 = arith.subf %463, %464 : vector<2x1x1xf32>
    %466 = arith.mulf %465, %383 : vector<2x1x1xf32>
    %cst_147 = arith.constant 0.000000e+00 : f32
    %467 = vector.broadcast %cst_147 : f32 to vector<2x1x1xf32>
    %468 = arith.cmpf oge, %466, %467 : vector<2x1x1xf32>
    %469 = arith.select %468, %456, %453 : vector<2x1x1xi1>, vector<2x1x1xf32>
    %c5_i32 = arith.constant 5 : i32
    %cst_148 = arith.constant 5.000000e-01 : f32
    %470 = vector.broadcast %cst_148 : f32 to vector<2x1x1xf32>
    %471 = arith.mulf %455, %470 : vector<2x1x1xf32>
    %472 = arith.addf %469, %471 : vector<2x1x1xf32>
    %473 = vector.broadcast %472 : vector<2x1x1xf32> to vector<2x1x8xf32>
    %474 = arith.subf %368, %473 : vector<2x1x8xf32>
    %cst_149 = arith.constant 0.000000e+00 : f32
    %475 = vector.broadcast %cst_149 : f32 to vector<2x1x8xf32>
    %476 = arith.maximumf %474, %475 : vector<2x1x8xf32>
    %477 = arith.mulf %476, %476 : vector<2x1x8xf32>
    %cst_150 = arith.constant dense<0.000000e+00> : vector<2x1xf32>
    %478 = vector.multi_reduction <add>, %477, %cst_150 [2] : vector<2x1x8xf32> to vector<2x1xf32>
    %479 = vector.shape_cast %478 : vector<2x1xf32> to vector<2x1x1xf32>
    %cst_151 = arith.constant 1.000000e+00 : f32
    %480 = vector.broadcast %cst_151 : f32 to vector<2x1x1xf32>
    %481 = arith.subf %479, %480 : vector<2x1x1xf32>
    %482 = arith.mulf %481, %383 : vector<2x1x1xf32>
    %cst_152 = arith.constant 0.000000e+00 : f32
    %483 = vector.broadcast %cst_152 : f32 to vector<2x1x1xf32>
    %484 = arith.cmpf oge, %482, %483 : vector<2x1x1xf32>
    %485 = arith.select %484, %472, %469 : vector<2x1x1xi1>, vector<2x1x1xf32>
    %c6_i32 = arith.constant 6 : i32
    %cst_153 = arith.constant 5.000000e-01 : f32
    %486 = vector.broadcast %cst_153 : f32 to vector<2x1x1xf32>
    %487 = arith.mulf %471, %486 : vector<2x1x1xf32>
    %488 = arith.addf %485, %487 : vector<2x1x1xf32>
    %489 = vector.broadcast %488 : vector<2x1x1xf32> to vector<2x1x8xf32>
    %490 = arith.subf %368, %489 : vector<2x1x8xf32>
    %cst_154 = arith.constant 0.000000e+00 : f32
    %491 = vector.broadcast %cst_154 : f32 to vector<2x1x8xf32>
    %492 = arith.maximumf %490, %491 : vector<2x1x8xf32>
    %493 = arith.mulf %492, %492 : vector<2x1x8xf32>
    %cst_155 = arith.constant dense<0.000000e+00> : vector<2x1xf32>
    %494 = vector.multi_reduction <add>, %493, %cst_155 [2] : vector<2x1x8xf32> to vector<2x1xf32>
    %495 = vector.shape_cast %494 : vector<2x1xf32> to vector<2x1x1xf32>
    %cst_156 = arith.constant 1.000000e+00 : f32
    %496 = vector.broadcast %cst_156 : f32 to vector<2x1x1xf32>
    %497 = arith.subf %495, %496 : vector<2x1x1xf32>
    %498 = arith.mulf %497, %383 : vector<2x1x1xf32>
    %cst_157 = arith.constant 0.000000e+00 : f32
    %499 = vector.broadcast %cst_157 : f32 to vector<2x1x1xf32>
    %500 = arith.cmpf oge, %498, %499 : vector<2x1x1xf32>
    %501 = arith.select %500, %488, %485 : vector<2x1x1xi1>, vector<2x1x1xf32>
    %c7_i32 = arith.constant 7 : i32
    %cst_158 = arith.constant 5.000000e-01 : f32
    %502 = vector.broadcast %cst_158 : f32 to vector<2x1x1xf32>
    %503 = arith.mulf %487, %502 : vector<2x1x1xf32>
    %504 = arith.addf %501, %503 : vector<2x1x1xf32>
    %505 = vector.broadcast %504 : vector<2x1x1xf32> to vector<2x1x8xf32>
    %506 = arith.subf %368, %505 : vector<2x1x8xf32>
    %cst_159 = arith.constant 0.000000e+00 : f32
    %507 = vector.broadcast %cst_159 : f32 to vector<2x1x8xf32>
    %508 = arith.maximumf %506, %507 : vector<2x1x8xf32>
    %509 = arith.mulf %508, %508 : vector<2x1x8xf32>
    %cst_160 = arith.constant dense<0.000000e+00> : vector<2x1xf32>
    %510 = vector.multi_reduction <add>, %509, %cst_160 [2] : vector<2x1x8xf32> to vector<2x1xf32>
    %511 = vector.shape_cast %510 : vector<2x1xf32> to vector<2x1x1xf32>
    %cst_161 = arith.constant 1.000000e+00 : f32
    %512 = vector.broadcast %cst_161 : f32 to vector<2x1x1xf32>
    %513 = arith.subf %511, %512 : vector<2x1x1xf32>
    %514 = arith.mulf %513, %383 : vector<2x1x1xf32>
    %cst_162 = arith.constant 0.000000e+00 : f32
    %515 = vector.broadcast %cst_162 : f32 to vector<2x1x1xf32>
    %516 = arith.cmpf oge, %514, %515 : vector<2x1x1xf32>
    %517 = arith.select %516, %504, %501 : vector<2x1x1xi1>, vector<2x1x1xf32>
    %c8_i32 = arith.constant 8 : i32
    %cst_163 = arith.constant 5.000000e-01 : f32
    %518 = vector.broadcast %cst_163 : f32 to vector<2x1x1xf32>
    %519 = arith.mulf %503, %518 : vector<2x1x1xf32>
    %520 = arith.addf %517, %519 : vector<2x1x1xf32>
    %521 = vector.broadcast %520 : vector<2x1x1xf32> to vector<2x1x8xf32>
    %522 = arith.subf %368, %521 : vector<2x1x8xf32>
    %cst_164 = arith.constant 0.000000e+00 : f32
    %523 = vector.broadcast %cst_164 : f32 to vector<2x1x8xf32>
    %524 = arith.maximumf %522, %523 : vector<2x1x8xf32>
    %525 = arith.mulf %524, %524 : vector<2x1x8xf32>
    %cst_165 = arith.constant dense<0.000000e+00> : vector<2x1xf32>
    %526 = vector.multi_reduction <add>, %525, %cst_165 [2] : vector<2x1x8xf32> to vector<2x1xf32>
    %527 = vector.shape_cast %526 : vector<2x1xf32> to vector<2x1x1xf32>
    %cst_166 = arith.constant 1.000000e+00 : f32
    %528 = vector.broadcast %cst_166 : f32 to vector<2x1x1xf32>
    %529 = arith.subf %527, %528 : vector<2x1x1xf32>
    %530 = arith.mulf %529, %383 : vector<2x1x1xf32>
    %cst_167 = arith.constant 0.000000e+00 : f32
    %531 = vector.broadcast %cst_167 : f32 to vector<2x1x1xf32>
    %532 = arith.cmpf oge, %530, %531 : vector<2x1x1xf32>
    %533 = arith.select %532, %520, %517 : vector<2x1x1xi1>, vector<2x1x1xf32>
    %c9_i32 = arith.constant 9 : i32
    %cst_168 = arith.constant 5.000000e-01 : f32
    %534 = vector.broadcast %cst_168 : f32 to vector<2x1x1xf32>
    %535 = arith.mulf %519, %534 : vector<2x1x1xf32>
    %536 = arith.addf %533, %535 : vector<2x1x1xf32>
    %537 = vector.broadcast %536 : vector<2x1x1xf32> to vector<2x1x8xf32>
    %538 = arith.subf %368, %537 : vector<2x1x8xf32>
    %cst_169 = arith.constant 0.000000e+00 : f32
    %539 = vector.broadcast %cst_169 : f32 to vector<2x1x8xf32>
    %540 = arith.maximumf %538, %539 : vector<2x1x8xf32>
    %541 = arith.mulf %540, %540 : vector<2x1x8xf32>
    %cst_170 = arith.constant dense<0.000000e+00> : vector<2x1xf32>
    %542 = vector.multi_reduction <add>, %541, %cst_170 [2] : vector<2x1x8xf32> to vector<2x1xf32>
    %543 = vector.shape_cast %542 : vector<2x1xf32> to vector<2x1x1xf32>
    %cst_171 = arith.constant 1.000000e+00 : f32
    %544 = vector.broadcast %cst_171 : f32 to vector<2x1x1xf32>
    %545 = arith.subf %543, %544 : vector<2x1x1xf32>
    %546 = arith.mulf %545, %383 : vector<2x1x1xf32>
    %cst_172 = arith.constant 0.000000e+00 : f32
    %547 = vector.broadcast %cst_172 : f32 to vector<2x1x1xf32>
    %548 = arith.cmpf oge, %546, %547 : vector<2x1x1xf32>
    %549 = arith.select %548, %536, %533 : vector<2x1x1xi1>, vector<2x1x1xf32>
    %c10_i32 = arith.constant 10 : i32
    %cst_173 = arith.constant 5.000000e-01 : f32
    %550 = vector.broadcast %cst_173 : f32 to vector<2x1x1xf32>
    %551 = arith.mulf %535, %550 : vector<2x1x1xf32>
    %552 = arith.addf %549, %551 : vector<2x1x1xf32>
    %553 = vector.broadcast %552 : vector<2x1x1xf32> to vector<2x1x8xf32>
    %554 = arith.subf %368, %553 : vector<2x1x8xf32>
    %cst_174 = arith.constant 0.000000e+00 : f32
    %555 = vector.broadcast %cst_174 : f32 to vector<2x1x8xf32>
    %556 = arith.maximumf %554, %555 : vector<2x1x8xf32>
    %557 = arith.mulf %556, %556 : vector<2x1x8xf32>
    %cst_175 = arith.constant dense<0.000000e+00> : vector<2x1xf32>
    %558 = vector.multi_reduction <add>, %557, %cst_175 [2] : vector<2x1x8xf32> to vector<2x1xf32>
    %559 = vector.shape_cast %558 : vector<2x1xf32> to vector<2x1x1xf32>
    %cst_176 = arith.constant 1.000000e+00 : f32
    %560 = vector.broadcast %cst_176 : f32 to vector<2x1x1xf32>
    %561 = arith.subf %559, %560 : vector<2x1x1xf32>
    %562 = arith.mulf %561, %383 : vector<2x1x1xf32>
    %cst_177 = arith.constant 0.000000e+00 : f32
    %563 = vector.broadcast %cst_177 : f32 to vector<2x1x1xf32>
    %564 = arith.cmpf oge, %562, %563 : vector<2x1x1xf32>
    %565 = arith.select %564, %552, %549 : vector<2x1x1xi1>, vector<2x1x1xf32>
    %c11_i32 = arith.constant 11 : i32
    %cst_178 = arith.constant 5.000000e-01 : f32
    %566 = vector.broadcast %cst_178 : f32 to vector<2x1x1xf32>
    %567 = arith.mulf %551, %566 : vector<2x1x1xf32>
    %568 = arith.addf %565, %567 : vector<2x1x1xf32>
    %569 = vector.broadcast %568 : vector<2x1x1xf32> to vector<2x1x8xf32>
    %570 = arith.subf %368, %569 : vector<2x1x8xf32>
    %cst_179 = arith.constant 0.000000e+00 : f32
    %571 = vector.broadcast %cst_179 : f32 to vector<2x1x8xf32>
    %572 = arith.maximumf %570, %571 : vector<2x1x8xf32>
    %573 = arith.mulf %572, %572 : vector<2x1x8xf32>
    %cst_180 = arith.constant dense<0.000000e+00> : vector<2x1xf32>
    %574 = vector.multi_reduction <add>, %573, %cst_180 [2] : vector<2x1x8xf32> to vector<2x1xf32>
    %575 = vector.shape_cast %574 : vector<2x1xf32> to vector<2x1x1xf32>
    %cst_181 = arith.constant 1.000000e+00 : f32
    %576 = vector.broadcast %cst_181 : f32 to vector<2x1x1xf32>
    %577 = arith.subf %575, %576 : vector<2x1x1xf32>
    %578 = arith.mulf %577, %383 : vector<2x1x1xf32>
    %cst_182 = arith.constant 0.000000e+00 : f32
    %579 = vector.broadcast %cst_182 : f32 to vector<2x1x1xf32>
    %580 = arith.cmpf oge, %578, %579 : vector<2x1x1xf32>
    %581 = arith.select %580, %568, %565 : vector<2x1x1xi1>, vector<2x1x1xf32>
    %c12_i32 = arith.constant 12 : i32
    %cst_183 = arith.constant 5.000000e-01 : f32
    %582 = vector.broadcast %cst_183 : f32 to vector<2x1x1xf32>
    %583 = arith.mulf %567, %582 : vector<2x1x1xf32>
    %584 = arith.addf %581, %583 : vector<2x1x1xf32>
    %585 = vector.broadcast %584 : vector<2x1x1xf32> to vector<2x1x8xf32>
    %586 = arith.subf %368, %585 : vector<2x1x8xf32>
    %cst_184 = arith.constant 0.000000e+00 : f32
    %587 = vector.broadcast %cst_184 : f32 to vector<2x1x8xf32>
    %588 = arith.maximumf %586, %587 : vector<2x1x8xf32>
    %589 = arith.mulf %588, %588 : vector<2x1x8xf32>
    %cst_185 = arith.constant dense<0.000000e+00> : vector<2x1xf32>
    %590 = vector.multi_reduction <add>, %589, %cst_185 [2] : vector<2x1x8xf32> to vector<2x1xf32>
    %591 = vector.shape_cast %590 : vector<2x1xf32> to vector<2x1x1xf32>
    %cst_186 = arith.constant 1.000000e+00 : f32
    %592 = vector.broadcast %cst_186 : f32 to vector<2x1x1xf32>
    %593 = arith.subf %591, %592 : vector<2x1x1xf32>
    %594 = arith.mulf %593, %383 : vector<2x1x1xf32>
    %cst_187 = arith.constant 0.000000e+00 : f32
    %595 = vector.broadcast %cst_187 : f32 to vector<2x1x1xf32>
    %596 = arith.cmpf oge, %594, %595 : vector<2x1x1xf32>
    %597 = arith.select %596, %584, %581 : vector<2x1x1xi1>, vector<2x1x1xf32>
    %c13_i32 = arith.constant 13 : i32
    %cst_188 = arith.constant 5.000000e-01 : f32
    %598 = vector.broadcast %cst_188 : f32 to vector<2x1x1xf32>
    %599 = arith.mulf %583, %598 : vector<2x1x1xf32>
    %600 = arith.addf %597, %599 : vector<2x1x1xf32>
    %601 = vector.broadcast %600 : vector<2x1x1xf32> to vector<2x1x8xf32>
    %602 = arith.subf %368, %601 : vector<2x1x8xf32>
    %cst_189 = arith.constant 0.000000e+00 : f32
    %603 = vector.broadcast %cst_189 : f32 to vector<2x1x8xf32>
    %604 = arith.maximumf %602, %603 : vector<2x1x8xf32>
    %605 = arith.mulf %604, %604 : vector<2x1x8xf32>
    %cst_190 = arith.constant dense<0.000000e+00> : vector<2x1xf32>
    %606 = vector.multi_reduction <add>, %605, %cst_190 [2] : vector<2x1x8xf32> to vector<2x1xf32>
    %607 = vector.shape_cast %606 : vector<2x1xf32> to vector<2x1x1xf32>
    %cst_191 = arith.constant 1.000000e+00 : f32
    %608 = vector.broadcast %cst_191 : f32 to vector<2x1x1xf32>
    %609 = arith.subf %607, %608 : vector<2x1x1xf32>
    %610 = arith.mulf %609, %383 : vector<2x1x1xf32>
    %cst_192 = arith.constant 0.000000e+00 : f32
    %611 = vector.broadcast %cst_192 : f32 to vector<2x1x1xf32>
    %612 = arith.cmpf oge, %610, %611 : vector<2x1x1xf32>
    %613 = arith.select %612, %600, %597 : vector<2x1x1xi1>, vector<2x1x1xf32>
    %c14_i32 = arith.constant 14 : i32
    %cst_193 = arith.constant 5.000000e-01 : f32
    %614 = vector.broadcast %cst_193 : f32 to vector<2x1x1xf32>
    %615 = arith.mulf %599, %614 : vector<2x1x1xf32>
    %616 = arith.addf %613, %615 : vector<2x1x1xf32>
    %617 = vector.broadcast %616 : vector<2x1x1xf32> to vector<2x1x8xf32>
    %618 = arith.subf %368, %617 : vector<2x1x8xf32>
    %cst_194 = arith.constant 0.000000e+00 : f32
    %619 = vector.broadcast %cst_194 : f32 to vector<2x1x8xf32>
    %620 = arith.maximumf %618, %619 : vector<2x1x8xf32>
    %621 = arith.mulf %620, %620 : vector<2x1x8xf32>
    %cst_195 = arith.constant dense<0.000000e+00> : vector<2x1xf32>
    %622 = vector.multi_reduction <add>, %621, %cst_195 [2] : vector<2x1x8xf32> to vector<2x1xf32>
    %623 = vector.shape_cast %622 : vector<2x1xf32> to vector<2x1x1xf32>
    %cst_196 = arith.constant 1.000000e+00 : f32
    %624 = vector.broadcast %cst_196 : f32 to vector<2x1x1xf32>
    %625 = arith.subf %623, %624 : vector<2x1x1xf32>
    %626 = arith.mulf %625, %383 : vector<2x1x1xf32>
    %cst_197 = arith.constant 0.000000e+00 : f32
    %627 = vector.broadcast %cst_197 : f32 to vector<2x1x1xf32>
    %628 = arith.cmpf oge, %626, %627 : vector<2x1x1xf32>
    %629 = arith.select %628, %616, %613 : vector<2x1x1xi1>, vector<2x1x1xf32>
    %c15_i32 = arith.constant 15 : i32
    %cst_198 = arith.constant 5.000000e-01 : f32
    %630 = vector.broadcast %cst_198 : f32 to vector<2x1x1xf32>
    %631 = arith.mulf %615, %630 : vector<2x1x1xf32>
    %632 = arith.addf %629, %631 : vector<2x1x1xf32>
    %633 = vector.broadcast %632 : vector<2x1x1xf32> to vector<2x1x8xf32>
    %634 = arith.subf %368, %633 : vector<2x1x8xf32>
    %cst_199 = arith.constant 0.000000e+00 : f32
    %635 = vector.broadcast %cst_199 : f32 to vector<2x1x8xf32>
    %636 = arith.maximumf %634, %635 : vector<2x1x8xf32>
    %637 = arith.mulf %636, %636 : vector<2x1x8xf32>
    %cst_200 = arith.constant dense<0.000000e+00> : vector<2x1xf32>
    %638 = vector.multi_reduction <add>, %637, %cst_200 [2] : vector<2x1x8xf32> to vector<2x1xf32>
    %639 = vector.shape_cast %638 : vector<2x1xf32> to vector<2x1x1xf32>
    %cst_201 = arith.constant 1.000000e+00 : f32
    %640 = vector.broadcast %cst_201 : f32 to vector<2x1x1xf32>
    %641 = arith.subf %639, %640 : vector<2x1x1xf32>
    %642 = arith.mulf %641, %383 : vector<2x1x1xf32>
    %cst_202 = arith.constant 0.000000e+00 : f32
    %643 = vector.broadcast %cst_202 : f32 to vector<2x1x1xf32>
    %644 = arith.cmpf oge, %642, %643 : vector<2x1x1xf32>
    %645 = arith.select %644, %632, %629 : vector<2x1x1xi1>, vector<2x1x1xf32>
    %c16_i32 = arith.constant 16 : i32
    %cst_203 = arith.constant 5.000000e-01 : f32
    %646 = vector.broadcast %cst_203 : f32 to vector<2x1x1xf32>
    %647 = arith.mulf %631, %646 : vector<2x1x1xf32>
    %648 = arith.addf %645, %647 : vector<2x1x1xf32>
    %649 = vector.broadcast %648 : vector<2x1x1xf32> to vector<2x1x8xf32>
    %650 = arith.subf %368, %649 : vector<2x1x8xf32>
    %cst_204 = arith.constant 0.000000e+00 : f32
    %651 = vector.broadcast %cst_204 : f32 to vector<2x1x8xf32>
    %652 = arith.maximumf %650, %651 : vector<2x1x8xf32>
    %653 = arith.mulf %652, %652 : vector<2x1x8xf32>
    %cst_205 = arith.constant dense<0.000000e+00> : vector<2x1xf32>
    %654 = vector.multi_reduction <add>, %653, %cst_205 [2] : vector<2x1x8xf32> to vector<2x1xf32>
    %655 = vector.shape_cast %654 : vector<2x1xf32> to vector<2x1x1xf32>
    %cst_206 = arith.constant 1.000000e+00 : f32
    %656 = vector.broadcast %cst_206 : f32 to vector<2x1x1xf32>
    %657 = arith.subf %655, %656 : vector<2x1x1xf32>
    %658 = arith.mulf %657, %383 : vector<2x1x1xf32>
    %cst_207 = arith.constant 0.000000e+00 : f32
    %659 = vector.broadcast %cst_207 : f32 to vector<2x1x1xf32>
    %660 = arith.cmpf oge, %658, %659 : vector<2x1x1xf32>
    %661 = arith.select %660, %648, %645 : vector<2x1x1xi1>, vector<2x1x1xf32>
    %c17_i32 = arith.constant 17 : i32
    %cst_208 = arith.constant 5.000000e-01 : f32
    %662 = vector.broadcast %cst_208 : f32 to vector<2x1x1xf32>
    %663 = arith.mulf %647, %662 : vector<2x1x1xf32>
    %664 = arith.addf %661, %663 : vector<2x1x1xf32>
    %665 = vector.broadcast %664 : vector<2x1x1xf32> to vector<2x1x8xf32>
    %666 = arith.subf %368, %665 : vector<2x1x8xf32>
    %cst_209 = arith.constant 0.000000e+00 : f32
    %667 = vector.broadcast %cst_209 : f32 to vector<2x1x8xf32>
    %668 = arith.maximumf %666, %667 : vector<2x1x8xf32>
    %669 = arith.mulf %668, %668 : vector<2x1x8xf32>
    %cst_210 = arith.constant dense<0.000000e+00> : vector<2x1xf32>
    %670 = vector.multi_reduction <add>, %669, %cst_210 [2] : vector<2x1x8xf32> to vector<2x1xf32>
    %671 = vector.shape_cast %670 : vector<2x1xf32> to vector<2x1x1xf32>
    %cst_211 = arith.constant 1.000000e+00 : f32
    %672 = vector.broadcast %cst_211 : f32 to vector<2x1x1xf32>
    %673 = arith.subf %671, %672 : vector<2x1x1xf32>
    %674 = arith.mulf %673, %383 : vector<2x1x1xf32>
    %cst_212 = arith.constant 0.000000e+00 : f32
    %675 = vector.broadcast %cst_212 : f32 to vector<2x1x1xf32>
    %676 = arith.cmpf oge, %674, %675 : vector<2x1x1xf32>
    %677 = arith.select %676, %664, %661 : vector<2x1x1xi1>, vector<2x1x1xf32>
    %c18_i32 = arith.constant 18 : i32
    %cst_213 = arith.constant 5.000000e-01 : f32
    %678 = vector.broadcast %cst_213 : f32 to vector<2x1x1xf32>
    %679 = arith.mulf %663, %678 : vector<2x1x1xf32>
    %680 = arith.addf %677, %679 : vector<2x1x1xf32>
    %681 = vector.broadcast %680 : vector<2x1x1xf32> to vector<2x1x8xf32>
    %682 = arith.subf %368, %681 : vector<2x1x8xf32>
    %cst_214 = arith.constant 0.000000e+00 : f32
    %683 = vector.broadcast %cst_214 : f32 to vector<2x1x8xf32>
    %684 = arith.maximumf %682, %683 : vector<2x1x8xf32>
    %685 = arith.mulf %684, %684 : vector<2x1x8xf32>
    %cst_215 = arith.constant dense<0.000000e+00> : vector<2x1xf32>
    %686 = vector.multi_reduction <add>, %685, %cst_215 [2] : vector<2x1x8xf32> to vector<2x1xf32>
    %687 = vector.shape_cast %686 : vector<2x1xf32> to vector<2x1x1xf32>
    %cst_216 = arith.constant 1.000000e+00 : f32
    %688 = vector.broadcast %cst_216 : f32 to vector<2x1x1xf32>
    %689 = arith.subf %687, %688 : vector<2x1x1xf32>
    %690 = arith.mulf %689, %383 : vector<2x1x1xf32>
    %cst_217 = arith.constant 0.000000e+00 : f32
    %691 = vector.broadcast %cst_217 : f32 to vector<2x1x1xf32>
    %692 = arith.cmpf oge, %690, %691 : vector<2x1x1xf32>
    %693 = arith.select %692, %680, %677 : vector<2x1x1xi1>, vector<2x1x1xf32>
    %c19_i32 = arith.constant 19 : i32
    %cst_218 = arith.constant 5.000000e-01 : f32
    %694 = vector.broadcast %cst_218 : f32 to vector<2x1x1xf32>
    %695 = arith.mulf %679, %694 : vector<2x1x1xf32>
    %696 = arith.addf %693, %695 : vector<2x1x1xf32>
    %697 = vector.broadcast %696 : vector<2x1x1xf32> to vector<2x1x8xf32>
    %698 = arith.subf %368, %697 : vector<2x1x8xf32>
    %cst_219 = arith.constant 0.000000e+00 : f32
    %699 = vector.broadcast %cst_219 : f32 to vector<2x1x8xf32>
    %700 = arith.maximumf %698, %699 : vector<2x1x8xf32>
    %701 = arith.mulf %700, %700 : vector<2x1x8xf32>
    %cst_220 = arith.constant dense<0.000000e+00> : vector<2x1xf32>
    %702 = vector.multi_reduction <add>, %701, %cst_220 [2] : vector<2x1x8xf32> to vector<2x1xf32>
    %703 = vector.shape_cast %702 : vector<2x1xf32> to vector<2x1x1xf32>
    %cst_221 = arith.constant 1.000000e+00 : f32
    %704 = vector.broadcast %cst_221 : f32 to vector<2x1x1xf32>
    %705 = arith.subf %703, %704 : vector<2x1x1xf32>
    %706 = arith.mulf %705, %383 : vector<2x1x1xf32>
    %cst_222 = arith.constant 0.000000e+00 : f32
    %707 = vector.broadcast %cst_222 : f32 to vector<2x1x1xf32>
    %708 = arith.cmpf oge, %706, %707 : vector<2x1x1xf32>
    %709 = arith.select %708, %696, %693 : vector<2x1x1xi1>, vector<2x1x1xf32>
    %c20_i32 = arith.constant 20 : i32
    %cst_223 = arith.constant 5.000000e-01 : f32
    %710 = vector.broadcast %cst_223 : f32 to vector<2x1x1xf32>
    %711 = arith.mulf %695, %710 : vector<2x1x1xf32>
    %712 = arith.addf %709, %711 : vector<2x1x1xf32>
    %713 = vector.broadcast %712 : vector<2x1x1xf32> to vector<2x1x8xf32>
    %714 = arith.subf %368, %713 : vector<2x1x8xf32>
    %cst_224 = arith.constant 0.000000e+00 : f32
    %715 = vector.broadcast %cst_224 : f32 to vector<2x1x8xf32>
    %716 = arith.maximumf %714, %715 : vector<2x1x8xf32>
    %717 = arith.mulf %716, %716 : vector<2x1x8xf32>
    %cst_225 = arith.constant dense<0.000000e+00> : vector<2x1xf32>
    %718 = vector.multi_reduction <add>, %717, %cst_225 [2] : vector<2x1x8xf32> to vector<2x1xf32>
    %719 = vector.shape_cast %718 : vector<2x1xf32> to vector<2x1x1xf32>
    %cst_226 = arith.constant 1.000000e+00 : f32
    %720 = vector.broadcast %cst_226 : f32 to vector<2x1x1xf32>
    %721 = arith.subf %719, %720 : vector<2x1x1xf32>
    %722 = arith.mulf %721, %383 : vector<2x1x1xf32>
    %cst_227 = arith.constant 0.000000e+00 : f32
    %723 = vector.broadcast %cst_227 : f32 to vector<2x1x1xf32>
    %724 = arith.cmpf oge, %722, %723 : vector<2x1x1xf32>
    %725 = arith.select %724, %712, %709 : vector<2x1x1xi1>, vector<2x1x1xf32>
    %c21_i32 = arith.constant 21 : i32
    %cst_228 = arith.constant 5.000000e-01 : f32
    %726 = vector.broadcast %cst_228 : f32 to vector<2x1x1xf32>
    %727 = arith.mulf %711, %726 : vector<2x1x1xf32>
    %728 = arith.addf %725, %727 : vector<2x1x1xf32>
    %729 = vector.broadcast %728 : vector<2x1x1xf32> to vector<2x1x8xf32>
    %730 = arith.subf %368, %729 : vector<2x1x8xf32>
    %cst_229 = arith.constant 0.000000e+00 : f32
    %731 = vector.broadcast %cst_229 : f32 to vector<2x1x8xf32>
    %732 = arith.maximumf %730, %731 : vector<2x1x8xf32>
    %733 = arith.mulf %732, %732 : vector<2x1x8xf32>
    %cst_230 = arith.constant dense<0.000000e+00> : vector<2x1xf32>
    %734 = vector.multi_reduction <add>, %733, %cst_230 [2] : vector<2x1x8xf32> to vector<2x1xf32>
    %735 = vector.shape_cast %734 : vector<2x1xf32> to vector<2x1x1xf32>
    %cst_231 = arith.constant 1.000000e+00 : f32
    %736 = vector.broadcast %cst_231 : f32 to vector<2x1x1xf32>
    %737 = arith.subf %735, %736 : vector<2x1x1xf32>
    %738 = arith.mulf %737, %383 : vector<2x1x1xf32>
    %cst_232 = arith.constant 0.000000e+00 : f32
    %739 = vector.broadcast %cst_232 : f32 to vector<2x1x1xf32>
    %740 = arith.cmpf oge, %738, %739 : vector<2x1x1xf32>
    %741 = arith.select %740, %728, %725 : vector<2x1x1xi1>, vector<2x1x1xf32>
    %c22_i32 = arith.constant 22 : i32
    %cst_233 = arith.constant 5.000000e-01 : f32
    %742 = vector.broadcast %cst_233 : f32 to vector<2x1x1xf32>
    %743 = arith.mulf %727, %742 : vector<2x1x1xf32>
    %744 = arith.addf %741, %743 : vector<2x1x1xf32>
    %745 = vector.broadcast %744 : vector<2x1x1xf32> to vector<2x1x8xf32>
    %746 = arith.subf %368, %745 : vector<2x1x8xf32>
    %cst_234 = arith.constant 0.000000e+00 : f32
    %747 = vector.broadcast %cst_234 : f32 to vector<2x1x8xf32>
    %748 = arith.maximumf %746, %747 : vector<2x1x8xf32>
    %749 = arith.mulf %748, %748 : vector<2x1x8xf32>
    %cst_235 = arith.constant dense<0.000000e+00> : vector<2x1xf32>
    %750 = vector.multi_reduction <add>, %749, %cst_235 [2] : vector<2x1x8xf32> to vector<2x1xf32>
    %751 = vector.shape_cast %750 : vector<2x1xf32> to vector<2x1x1xf32>
    %cst_236 = arith.constant 1.000000e+00 : f32
    %752 = vector.broadcast %cst_236 : f32 to vector<2x1x1xf32>
    %753 = arith.subf %751, %752 : vector<2x1x1xf32>
    %754 = arith.mulf %753, %383 : vector<2x1x1xf32>
    %cst_237 = arith.constant 0.000000e+00 : f32
    %755 = vector.broadcast %cst_237 : f32 to vector<2x1x1xf32>
    %756 = arith.cmpf oge, %754, %755 : vector<2x1x1xf32>
    %757 = arith.select %756, %744, %741 : vector<2x1x1xi1>, vector<2x1x1xf32>
    %c23_i32 = arith.constant 23 : i32
    %cst_238 = arith.constant 5.000000e-01 : f32
    %758 = vector.broadcast %cst_238 : f32 to vector<2x1x1xf32>
    %759 = arith.mulf %743, %758 : vector<2x1x1xf32>
    %760 = arith.addf %757, %759 : vector<2x1x1xf32>
    %761 = vector.broadcast %760 : vector<2x1x1xf32> to vector<2x1x8xf32>
    %762 = arith.subf %368, %761 : vector<2x1x8xf32>
    %cst_239 = arith.constant 0.000000e+00 : f32
    %763 = vector.broadcast %cst_239 : f32 to vector<2x1x8xf32>
    %764 = arith.maximumf %762, %763 : vector<2x1x8xf32>
    %765 = arith.mulf %764, %764 : vector<2x1x8xf32>
    %cst_240 = arith.constant dense<0.000000e+00> : vector<2x1xf32>
    %766 = vector.multi_reduction <add>, %765, %cst_240 [2] : vector<2x1x8xf32> to vector<2x1xf32>
    %767 = vector.shape_cast %766 : vector<2x1xf32> to vector<2x1x1xf32>
    %cst_241 = arith.constant 1.000000e+00 : f32
    %768 = vector.broadcast %cst_241 : f32 to vector<2x1x1xf32>
    %769 = arith.subf %767, %768 : vector<2x1x1xf32>
    %770 = arith.mulf %769, %383 : vector<2x1x1xf32>
    %cst_242 = arith.constant 0.000000e+00 : f32
    %771 = vector.broadcast %cst_242 : f32 to vector<2x1x1xf32>
    %772 = arith.cmpf oge, %770, %771 : vector<2x1x1xf32>
    %773 = arith.select %772, %760, %757 : vector<2x1x1xi1>, vector<2x1x1xf32>
    %cst_243 = arith.constant dense<0.000000e+00> : vector<2x1xf32>
    %774 = vector.multi_reduction <add>, %765, %cst_243 [2] : vector<2x1x8xf32> to vector<2x1xf32>
    %775 = vector.shape_cast %774 : vector<2x1xf32> to vector<2x1x1xf32>
    %776 = tpu.reciprocal %775 {approx = true} : vector<2x1x1xf32> -> vector<2x1x1xf32>
    %777 = vector.broadcast %776 : vector<2x1x1xf32> to vector<2x1x8xf32>
    %778 = arith.mulf %765, %777 : vector<2x1x8xf32>
    %c0_244 = arith.constant 0 : index
    %c0_245 = arith.constant 0 : index
    %c0_246 = arith.constant 0 : index
    %779 = vector.load %arg6[%c0_244, %c0_245, %c0_246] : memref<2x1x8xf32, #tpu.memory_space<vmem>>, vector<2x1x8xf32>
    tpu.vector_store %arg6[%c0_244, %c0_245, %c0_246], %778 {strides = array<i32>} : memref<2x1x8xf32, #tpu.memory_space<vmem>>, vector<2x1x8xf32>,
    return
  }
  func.func @transform_0(%arg0: i32) -> (i32, i32, i32) {
    %c0_i32 = arith.constant 0 : i32
    %c0_i32_0 = arith.constant 0 : i32
    %c0_i32_1 = arith.constant 0 : i32
    return %arg0, %c0_i32, %c0_i32_0 : i32, i32, i32
  }
  func.func @transform_1(%arg0: i32) -> (i32, i32, i32) {
    %c0_i32 = arith.constant 0 : i32
    %c0_i32_0 = arith.constant 0 : i32
    %c0_i32_1 = arith.constant 0 : i32
    return %arg0, %c0_i32, %c0_i32_0 : i32, i32, i32
  }
  func.func @transform_2(%arg0: i32) -> (i32, i32, i32) {
    %c0_i32 = arith.constant 0 : i32
    %c0_i32_0 = arith.constant 0 : i32
    %c0_i32_1 = arith.constant 0 : i32
    return %arg0, %c0_i32, %c0_i32_0 : i32, i32, i32
  }
  func.func @transform_3(%arg0: i32) -> (i32, i32) {
    %c0_i32 = arith.constant 0 : i32
    %c0_i32_0 = arith.constant 0 : i32
    %c0_i32_1 = arith.constant 0 : i32
    return %c0_i32, %c0_i32_0 : i32, i32
  }
  func.func @transform_4(%arg0: i32) -> (i32, i32, i32) {
    %c0_i32 = arith.constant 0 : i32
    %c0_i32_0 = arith.constant 0 : i32
    %c0_i32_1 = arith.constant 0 : i32
    return %arg0, %c0_i32, %c0_i32_0 : i32, i32, i32
  }
  func.func @transform_5(%arg0: i32) -> (i32, i32, i32) {
    %c0_i32 = arith.constant 0 : i32
    %c0_i32_0 = arith.constant 0 : i32
    %c0_i32_1 = arith.constant 0 : i32
    return %arg0, %c0_i32, %c0_i32_0 : i32, i32, i32
  }
}

</mosaic_0001>

<bundles_post_ra>
// kernel: tpu_custom_call.1
= control target key start
LH: loop header
LB: loop body
LE: loop exit
PB: predicated region body
PF: predicated region fallthrough
CT: control target
= control target key end

     0   :  { %11 = vsyncpa [#allocation3], 0  ;;  %v2401_v2 = vmov 0   ;;  %s3060_s0 = inlined_call_operand.vmem [shape: f32[2,8,32], index: 0, kind: input, shape index: {}]   ;;  %s3061_s1 = inlined_call_operand.vmem [shape: f32[2,1,8], index: 1, kind: input, shape index: {}]   ;;  %s3062_s2 = inlined_call_operand.vmem [shape: f32[2,8,1], index: 2, kind: input, shape index: {}]   ;;  %s3063_s3 = inlined_call_operand.vmem [shape: f32[464,96], index: 3, kind: input, shape index: {}]   ;;  %s3064_s4 = inlined_call_operand.hbm [shape: f32[2,8,32], index: 4, kind: output, shape index: {0}]   ;;  %s3065_s5 = inlined_call_operand.hbm [shape: f32[2,1,8], index: 5, kind: output, shape index: {1}]  }
   0x1   :  { %v28_v0 = vld [vmem:[%s3062_s2 + $0x8] sm:$0xff]  ;;  %v27_v1 = vld [vmem:[%s3062_s2] sm:$0xff]  ;;  %2244 = vset.pattern.permute.xlu1 %v2401_v2  ;;  %2243 = vset.pattern.permute.xlu0 %v2401_v2 }
   0x2   :  { %vm35_vm0 = vcmp.ge.f32.partialorder %v28_v0, 0.5  ;;  %vm34_vm1 = vcmp.ge.f32.partialorder %v27_v1, 0.5  ;;  %2260 = vset.pattern.permute.xlu2 %v2401_v2  ;;  %vm33_vm2 = vcmp.ge.f32.partialorder %v28_v0, 1.5  ;;  %vm32_vm3 = vcmp.ge.f32.partialorder %v27_v1, 1.5 }
   0x3   :  { %v37_v3 = vsel %vm35_vm0, 1, %v2401_v2  ;;  %v36_v4 = vsel %vm34_vm1, 1, %v2401_v2 }
   0x4   :  { %42 = vperm.xlu1 %2244, %v37_v3   ;;  %39 = vperm.xlu0 %2243, %v36_v4  }
   0x5   :  { %12 = vsyncpa [#allocation5], 0  ;;  %v51_v5 = vsel %vm33_vm2, 1, %v2401_v2  ;;  %v50_v6 = vsel %vm32_vm3, 1, %v2401_v2  ;;  %v63_v9 = vld [vmem:[%s3063_s3 + $0x1c8] sm:$0xff]  ;;  %v21_v11 = vld [vmem:[%s3060_s0] sm:$0xff] }
   0x6   :  { %v22_v10 = vld [vmem:[%s3060_s0 + $0x8] sm:$0xff]  ;;  %v2261_v12 = vld [vmem:[%s3063_s3 + $0x1c1] ss:$0 sm:$0xff]  ;;  %v2262_v13 = vld [vmem:[%s3063_s3 + $0x1c0] ss:$0 sm:$0xff]  ;;  %v64_v17 = vadd.f32 %v63_v9, %v21_v11  ;;  %vm70_vm8 = vcmask 261120  }
   0x7   :  { %v2263_v14 = vld [vmem:[%s3063_s3 + $0x1c2] ss:$0 sm:$0xff]  ;;  %v65_v16 = vadd.f32 %v63_v9, %v22_v10  ;;  %v2402_v31 = vmov 32.0   ;;  %v138_v40 = vld [vmem:[%s3063_s3 + $0x18] sm:$0xff]  ;;  %v137_v41 = vld [vmem:[%s3063_s3 + $0x10] sm:$0xff]  ;;  %s2403_s2 = smov 96  }
   0x8   :  { %2273 = vrcp.f32 %v2402_v31  ;;  %159 = vmatpush.msra.mxu0 %v138_v40  ;;  %v136_v44 = vld [vmem:[%s3063_s3 + $0x8] sm:$0xff]  ;;  %v135_v47 = vld [vmem:[%s3063_s3] sm:$0xff]  ;;  %v2264_v9 = vld [vmem:[%s3063_s3 + $0x1b8] ss:$0 sm:$0xff]  ;;  %s2404_s22 = smov 112   ;;  %s2405_s23 = smov 80  }
   0x9   :  { %vm173_vm0 = vcmask 130048   ;;  %vm235_vm1 = vcmask 64512   ;;  %s2406_s28 = smov 64   ;;  %s2407_s29 = smov 48  }
   0xa   :  { %160 = vmatpush.msra.mxu0 %v137_v41  ;;  %s2094_s19 = sshll.u32 %s3064_s4, 4  ;;  %s2409_s20 = smov 128   ;;  %s2095_s19 = int_to_ptr.hbm [resolvable:$true] %s2094_s19 }
   0xb   :  { %s2410_s21 = smov 8   ;;  %s2411_s24 = smov [#allocation4]  }
   0xc   :  { %56 = vperm.xlu1 %2244, %v51_v5   ;;  %53 = vperm.xlu0 %2243, %v50_v6   ;;  %s2105_s25 = sshll.u32 %s2411_s24, 4  ;;  %s2107_s27 = sshll.u32 %s3065_s5, 4  ;;  %s2106_s25 = int_to_ptr.vmem [resolvable:$true] %s2105_s25  ;;  %s2108_s27 = int_to_ptr.hbm [resolvable:$true] %s2107_s27 }
   0xd   :  { %161 = vmatpush.msra.mxu0 %v136_v44  ;;  %s2412_s30 = smov 16   ;;  %s2413_s6 = smov 1  }
   0xe   :  { %v2274_v32 = vpop.eup %2273 }
   0xf   :  { %v78_v33 = vmul.f32 32.0, %v2274_v32  ;;  %vm82_vm9 = vweird.f32 %v2274_v32  ;;  %162 = vmatpush.msra.mxu0 %v135_v47 }
  0x11   :  { %v79_v34 = vsub.f32 1.0, %v78_v33 }
  0x13   :  { %v80_v35 = vmul.f32 %v2274_v32, %v79_v34  ;;  %v2555_v34 = vld [vmem:[%s3061_s1 + $0x1] ss:$0 sm:$0xff] }
  0x15   :  { %v81_v36 = vadd.f32 %v2274_v32, %v80_v35 }
  0x17   :  { %v2482_v37 = vsel %vm82_vm9, %v2274_v32, %v81_v36  ;;  %vm629_vm9 = vcmask 523264  }
  0x76   :  { %v43_v7 = vpop.permute.xlu1 %42  ;;  %v40_v8 = vpop.permute.xlu0 %39 }
  0x77   :  { %vm45_vm4 = vcmp.eq.s32.totalorder %v43_v7, 1  ;;  %vm44_vm5 = vcmp.eq.s32.totalorder %v40_v8, 1 }
  0x78   :  { %v49_v15 = vsel %vm45_vm4, %v2261_v12, %v2262_v13  ;;  %v48_v20 = vsel %vm44_vm5, %v2261_v12, %v2262_v13  ;;  %v2265_v13 = vld [vmem:[%s3063_s3 + $0x1b9] ss:$0 sm:$0xff] }
  0x7e   :  { %v57_v18 = vpop.permute.xlu1 %56  ;;  %v54_v19 = vpop.permute.xlu0 %53 }
  0x7f   :  { %vm59_vm6 = vcmp.eq.s32.totalorder %v57_v18, 1  ;;  %vm58_vm7 = vcmp.eq.s32.totalorder %v54_v19, 1  ;;  %v2266_v18 = vld [vmem:[%s3063_s3 + $0x40] ss:$0 sm:$0xff] }
  0x80   :  { %v62_v21 = vsel %vm59_vm6, %v2263_v14, %v49_v15  ;;  %v61_v22 = vsel %vm58_vm7, %v2263_v14, %v48_v20 }
  0x81   :  { %v2468_v23 = vadd.f32 %v65_v16, %v62_v21  ;;  %v2470_v24 = vadd.f32 %v64_v17, %v61_v22 }
  0x83   :  { %v74_v25 = vsel %vm70_vm8, %v2468_v23, 0.0  ;;  %v71_v26 = vsel %vm70_vm8, %v2470_v24, 0.0  ;;  %v87_v27 = vmul.f32 %v2468_v23, %v2468_v23  ;;  %v86_v29 = vmul.f32 %v2470_v24, %v2470_v24 }
  0x84   :  { %75 = vadd.xlane.f32.xlu0 %v74_v25  ;;  %72 = vadd.xlane.f32.xlu2 %v71_v26 }
  0x85   :  { %v91_v28 = vsel %vm70_vm8, %v87_v27, 0.0  ;;  %v88_v30 = vsel %vm70_vm8, %v86_v29, 0.0  ;;  %v2548_v29 = vld [vmem:[%s3061_s1] ss:$0 sm:$0xff] }
  0x86   :  { %92 = vadd.xlane.f32.xlu1 %v91_v28 }
  0x8c   :  { %89 = vadd.xlane.f32.xlu2 %v88_v30 }
  0xf7   :  { %v76_v38 = vpop.xlane.xlu0 %75  ;;  %v73_v39 = vpop.xlane.xlu2 %72 }
  0xf8   :  { %v85_v42 = vmul.f32 %v2482_v37, %v76_v38  ;;  %v84_v48 = vmul.f32 %v2482_v37, %v73_v39 }
  0xf9   :  { %v93_v43 = vpop.xlane.xlu1 %92 }
  0xfa   :  { %v97_v45 = vmul.f32 %v85_v42, %v85_v42  ;;  %v95_v46 = vmul.f32 %v93_v43, %v2482_v37  ;;  %v96_v52 = vmul.f32 %v84_v48, %v84_v48  ;;  %v102_v6 = vsub.f32 %v2470_v24, %v84_v48 }
  0xfb   :  { %v103_v11 = vsub.f32 %v2468_v23, %v85_v42 }
  0xfc   :  { %v99_v49 = vsub.f32 %v95_v46, %v97_v45 }
  0xfe   :  { %v101_v50 = vmax.f32 %v99_v49, 0.0 }
  0xff   :  { %v90_v51 = vpop.xlane.xlu2 %89 }
 0x100   :  { %v94_v53 = vmul.f32 %v90_v51, %v2482_v37  ;;  %v105_v54 = vadd.f32 1e-12, %v101_v50 }
 0x102   :  { %v98_v55 = vsub.f32 %v94_v53, %v96_v52  ;;  %2275 = vrsqrt.f32 %v105_v54  ;;  %vm122_vm11 = vweird.f32 %v105_v54 }
 0x104   :  { %v100_v56 = vmax.f32 %v98_v55, 0.0 }
 0x106   :  { %v104_v57 = vadd.f32 1e-12, %v100_v56 }
 0x108   :  { %2277 = vrsqrt.f32 %v104_v57  ;;  %v2276_v58 = vpop.eup %2275  ;;  %vm112_vm13 = vweird.f32 %v104_v57 }
 0x109   :  { %v117_v59 = vmul.f32 %v2276_v58, %v105_v54  ;;  %vm123_vm12 = vweird.f32 %v2276_v58 }
 0x10a   :  { %vm124_vm15 = vmor %vm122_vm11, %vm123_vm12 }
 0x10b   :  { %v118_v60 = vmul.f32 %v2276_v58, %v117_v59 }
 0x10d   :  { %v119_v62 = vmul.f32 0.5, %v118_v60 }
 0x10e   :  { %v2278_v61 = vpop.eup %2277 }
 0x10f   :  { %v107_v63 = vmul.f32 %v2278_v61, %v104_v57  ;;  %v120_v1 = vsub.f32 1.5, %v119_v62  ;;  %vm113_vm10 = vweird.f32 %v2278_v61 }
 0x110   :  { %vm114_vm14 = vmor %vm112_vm13, %vm113_vm10 }
 0x111   :  { %v108_v0 = vmul.f32 %v2278_v61, %v107_v63  ;;  %v121_v4 = vmul.f32 %v2276_v58, %v120_v1 }
 0x113   :  { %v109_v2 = vmul.f32 0.5, %v108_v0  ;;  %v125_v10 = vsel %vm124_vm15, %v2276_v58, %v121_v4 }
 0x114   :  { %v127_v15 = vmul.f32 %v125_v10, %v103_v11 }
 0x115   :  { %v110_v3 = vsub.f32 1.5, %v109_v2 }
 0x116   :  { %v130_v16 = vmul.f32 %v2264_v9, %v127_v15 }
 0x117   :  { %v111_v5 = vmul.f32 %v2278_v61, %v110_v3 }
 0x118   :  { %v2512_v17 = vadd.f32 %v2265_v13, %v130_v16 }
 0x119   :  { %v115_v7 = vsel %vm114_vm14, %v2278_v61, %v111_v5 }
 0x11a   :  { %v126_v8 = vmul.f32 %v115_v7, %v102_v6 }
 0x11c   :  { %v129_v12 = vmul.f32 %v2264_v9, %v126_v8 }
 0x11e   :  { %v2508_v14 = vadd.f32 %v2265_v13, %v129_v12 }
 0x120   :  { %2124 = vmatmul.msk.f32.vlgmr.msra.gmra.mxu0 %vm70_vm8, %v2508_v14 }
 0x128   :  { %2125 = vmatmul.msk.f32.gmra.mxu0 %vm70_vm8, %v2512_v17 }
 0x19d   :  { %v164_v19 = vpop.f32.mrf.mxu0 }
 0x19e   :  { %v2519_v20 = vadd.f32 %v2266_v18, %v164_v19 }
 0x1a0   :  { %171 = vrot.lane.b32.xlu2 %v2519_v20, %s2403_s2 }
 0x1a5   :  { %v167_v21 = vpop.f32.mrf.mxu0 }
 0x1a6   :  { %v2523_v22 = vadd.f32 %v2266_v18, %v167_v21  ;;  %v311_v18 = vld [vmem:[%s3063_s3 + $0x58] sm:$0xff] }
 0x1a7   :  { %497 = vmatpush.msrb.mxu0 %v311_v18 }
 0x1a8   :  { %340 = vrot.lane.b32.xlu1 %v2523_v22, %s2404_s22  ;;  %342 = vrot.lane.b32.xlu0 %v2523_v22, %s2405_s23  ;;  %v2245_v63 = vpack.i.bf16 %v2523_v22, %v2519_v20 }
 0x1a9   :  { %199 = vrot.lane.b32.xlu2 %v2523_v22, %s2403_s2 }
 0x1b1   :  { %314 = vrot.lane.b32.xlu2 %v2519_v20, %s2405_s23 }
 0x1b9   :  { %312 = vrot.lane.b32.xlu2 %v2519_v20, %s2404_s22 }
 0x1fa   :  { %v172_v23 = vpop.permute.xlu2 %171 }
 0x1fb   :  { %2126 = vmatpush.xpose.msk.msra.mxu1 %vm173_vm0, %v172_v23 }
 0x1fe   :  { %2127 = vmatmul.msk.f32.vlgmr.msra.gmra.mxu1 %vm173_vm0, %v2519_v20 }
 0x203   :  { %v200_v24 = vpop.permute.xlu2 %199 }
 0x204   :  { %2128 = vmatpush.xpose.msk.msra.mxu2 %vm173_vm0, %v200_v24 }
 0x207   :  { %2129 = vmatmul.msk.f32.vlgmr.msra.gmra.mxu2 %vm173_vm0, %v2523_v22 }
 0x20b   :  { %v315_v25 = vpop.permute.xlu2 %314 }
 0x20c   :  { %2132 = vmatpush.xpose.msk.msrb.mxu1 %vm173_vm0, %v315_v25  ;;  %v310_v25 = vld [vmem:[%s3063_s3 + $0x50] sm:$0xff] }
 0x20d   :  { %498 = vmatpush.msrb.mxu0 %v310_v25 }
 0x213   :  { %v313_v26 = vpop.permute.xlu2 %312 }
 0x214   :  { %2133 = vmatmul.msk.f32.vlgmr.msrb.gmra.mxu1 %vm173_vm0, %v313_v26  ;;  %v447_v26 = vld [vmem:[%s3063_s3 + $0x68] sm:$0xff] }
 0x21a   :  { %v343_v27 = vpop.permute.xlu0 %342  ;;  %v341_v28 = vpop.permute.xlu1 %340 }
 0x21b   :  { %2134 = vmatpush.xpose.msk.msrb.mxu2 %vm173_vm0, %v343_v27  ;;  %v446_v27 = vld [vmem:[%s3063_s3 + $0x60] sm:$0xff] }
 0x21e   :  { %2135 = vmatmul.msk.f32.vlgmr.msrb.gmra.mxu2 %vm173_vm0, %v341_v28 }
 0x21f   :  { %468 = vmatpush.msra.mxu2 %v447_v26 }
 0x221   :  { %469 = vmatpush.msra.mxu2 %v446_v27 }
 0x27b   :  { %v195_v30 = vpop.f32.mrf.mxu1 }
 0x27c   :  { %v225_v31 = vmul.f32 0.25, %v195_v30 }
 0x27e   :  { %v233_v32 = vadd.f32 %v2548_v29, %v225_v31 }
 0x280   :  { %v236_v33 = vsel %vm235_vm1, %v233_v32, -inf }
 0x281   :  { %237 = vmax.xlane.f32.xlu2 %v236_v33  ;;  %v2597_v33 = vld [vmem:[%s3063_s3 + $0x90] sm:$0x3f] }
 0x282   :  { %v564_v18 = vperm.slane %v2597_v33, 2 }
 0x28a   :  { %v222_v35 = vpop.f32.mrf.mxu2 }
 0x28b   :  { %v226_v36 = vmul.f32 0.25, %v222_v35  ;;  %v506_v35 = vperm.slane %v2597_v33, 0 }
 0x28d   :  { %v234_v38 = vadd.f32 %v2555_v34, %v226_v36 }
 0x28f   :  { %v239_v39 = vsel %vm235_vm1, %v234_v38, -inf }
 0x290   :  { %240 = vmax.xlane.f32.xlu0 %v239_v39 }
 0x291   :  { %v337_v40 = vpop.f32.mrf.mxu1 }
 0x292   :  { %v368_v41 = vmul.f32 0.25, %v337_v40 }
 0x294   :  { %v370_v42 = vadd.f32 %v2548_v29, %v368_v41 }
 0x296   :  { %v372_v43 = vsel %vm235_vm1, %v370_v42, -inf }
 0x297   :  { %373 = vmax.xlane.f32.xlu1 %v372_v43 }
 0x2a1   :  { %v365_v44 = vpop.f32.mrf.mxu2 }
 0x2a2   :  { %v369_v45 = vmul.f32 0.25, %v365_v44 }
 0x2a4   :  { %v371_v46 = vadd.f32 %v2555_v34, %v369_v45 }
 0x2a6   :  { %v375_v47 = vsel %vm235_vm1, %v371_v46, -inf }
 0x2a7   :  { %376 = vmax.xlane.f32.xlu2 %v375_v47 }
 0x2f4   :  { %v238_v48 = vpop.xlane.xlu2 %237 }
 0x2f5   :  { %v242_v49 = vsub.f32 %v233_v32, %v238_v48 }
 0x2f7   :  { %v244_v50 = vmul.f32 1.442695, %v242_v49 }
 0x2f9   :  { %2279 = vpow2.f32 %v244_v50 }
 0x2ff   :  { %v2280_v51 = vpop.eup %2279 }
 0x300   :  { %v248_v52 = vsel %vm235_vm1, %v2280_v51, 0.0 }
 0x301   :  { %249 = vadd.xlane.f32.xlu2 %v248_v52 }
 0x303   :  { %v241_v53 = vpop.xlane.xlu0 %240 }
 0x304   :  { %v243_v54 = vsub.f32 %v234_v38, %v241_v53  ;;  %v569_v53 = vld [vmem:[%s3063_s3 + $0xb0] sm:$0xff] }
 0x306   :  { %v246_v55 = vmul.f32 1.442695, %v243_v54 }
 0x308   :  { %2281 = vpow2.f32 %v246_v55 }
 0x30a   :  { %v374_v56 = vpop.xlane.xlu1 %373 }
 0x30b   :  { %v378_v57 = vsub.f32 %v370_v42, %v374_v56  ;;  %v567_v56 = vld [vmem:[%s3063_s3 + $0xa0] sm:$0xff] }
 0x30d   :  { %v380_v58 = vmul.f32 1.442695, %v378_v57 }
 0x30e   :  { %v2282_v59 = vpop.eup %2281 }
 0x30f   :  { %2283 = vpow2.f32 %v380_v58  ;;  %v251_v60 = vsel %vm235_vm1, %v2282_v59, 0.0 }
 0x310   :  { %252 = vadd.xlane.f32.xlu0 %v251_v60 }
 0x315   :  { %v2284_v61 = vpop.eup %2283 }
 0x316   :  { %v384_v62 = vsel %vm235_vm1, %v2284_v61, 0.0 }
 0x317   :  { %385 = vadd.xlane.f32.xlu1 %v384_v62 }
 0x319   :  { %2246 = vrot.lane.b32.xlu2 %v2245_v63, %s2406_s28 }
 0x31a   :  { %v377_v0 = vpop.xlane.xlu2 %376 }
 0x31b   :  { %v379_v1 = vsub.f32 %v371_v46, %v377_v0 }
 0x31d   :  { %v382_v2 = vmul.f32 1.442695, %v379_v1 }
 0x31f   :  { %2285 = vpow2.f32 %v382_v2 }
 0x324   :  { %394 = vrot.lane.b32.xlu0 %v2519_v20, %s2407_s29 }
 0x325   :  { %v2286_v3 = vpop.eup %2285 }
 0x326   :  { %v387_v4 = vsel %vm235_vm1, %v2286_v3, 0.0 }
 0x327   :  { %388 = vadd.xlane.f32.xlu1 %v387_v4 }
 0x340   :  { %420 = vrot.lane.b32.xlu1 %v2523_v22, %s2407_s29 }
 0x374   :  { %v250_v5 = vpop.xlane.xlu2 %249 }
 0x375   :  { %2287 = vrcp.f32 %v250_v5 }
 0x37b   :  { %v2288_v6 = vpop.eup %2287 }
 0x37c   :  { %v2247_v7 = vpop.permute.xlu2 %2246  ;;  %v256_v10 = vmul.f32 %v2288_v6, %v2280_v51 }
 0x37d   :  { %v2248_v8 = vunpack.i.l.bf16 %v2247_v7  ;;  %v2249_v9 = vunpack.i.h.bf16 %v2247_v7 }
 0x37f   :  { %279 = vmatpush.msra.mxu3 %v2248_v8 }
 0x380   :  { %2130 = vmatmul.msk.f32.vlgmr.msra.gmra.mxu3 %vm235_vm1, %v256_v10 }
 0x381   :  { %305 = vmatpush.msrb.mxu3 %v2249_v9 }
 0x383   :  { %v253_v11 = vpop.xlane.xlu0 %252 }
 0x384   :  { %2289 = vrcp.f32 %v253_v11 }
 0x38a   :  { %v2290_v12 = vpop.eup %2289  ;;  %v386_v13 = vpop.xlane.xlu1 %385 }
 0x38b   :  { %v257_v15 = vmul.f32 %v2290_v12, %v2282_v59  ;;  %2291 = vrcp.f32 %v386_v13  ;;  %v561_v12 = vperm.slane %v2597_v33, 1 }
 0x38d   :  { %2131 = vmatmul.msk.f32.vlgmr.msrb.gmra.mxu3 %vm235_vm1, %v257_v15 }
 0x391   :  { %v2292_v16 = vpop.eup %2291 }
 0x392   :  { %v392_v19 = vmul.f32 %v2292_v16, %v2284_v61 }
 0x396   :  { %v395_v20 = vpop.permute.xlu0 %394 }
 0x397   :  { %415 = vmatpush.msra.mxu3 %v395_v20 }
 0x398   :  { %2136 = vmatmul.msk.f32.vlgmr.msra.gmra.mxu3 %vm235_vm1, %v392_v19 }
 0x39a   :  { %v389_v21 = vpop.xlane.xlu1 %388 }
 0x39b   :  { %2293 = vrcp.f32 %v389_v21 }
 0x3a1   :  { %v2294_v22 = vpop.eup %2293 }
 0x3a2   :  { %v393_v23 = vmul.f32 %v2294_v22, %v2286_v3 }
 0x3b2   :  { %v421_v24 = vpop.permute.xlu1 %420 }
 0x3b3   :  { %441 = vmatpush.msra.mxu1 %v421_v24 }
 0x3b4   :  { %2137 = vmatmul.msk.f32.vlgmr.msra.gmra.mxu1 %vm235_vm1, %v393_v23 }
 0x403   :  { %v281_v28 = vpop.f32.mrf.mxu3 }
 0x404   :  { %2140 = vmatmul.msk.f32.vlgmr.msrb.gmra.mxu0 %vm173_vm0, %v281_v28 }
 0x410   :  { %v307_v30 = vpop.f32.mrf.mxu3 }
 0x411   :  { %2141 = vmatmul.msk.f32.gmra.mxu0 %vm173_vm0, %v307_v30 }
 0x41b   :  { %v417_v31 = vpop.f32.mrf.mxu3 }
 0x41c   :  { %2138 = vmatmul.msk.f32.vlgmr.msra.gmra.mxu2 %vm173_vm0, %v417_v31 }
 0x431   :  { %v443_v32 = vpop.f32.mrf.mxu1 }
 0x432   :  { %2139 = vmatmul.msk.f32.gmra.mxu2 %vm173_vm0, %v443_v32 }
 0x481   :  { %v500_v36 = vpop.f32.mrf.mxu0 }
 0x48e   :  { %v503_v45 = vpop.f32.mrf.mxu0 }
 0x49f   :  { %v471_v38 = vpop.f32.mrf.mxu2 }
 0x4a0   :  { %v501_v39 = vadd.f32 %v500_v36, %v471_v38  ;;  %v627_v36 = vld [vmem:[%s3063_s3 + $0x128] sm:$0xff]  ;;  %v626_v38 = vld [vmem:[%s3063_s3 + $0x120] sm:$0xff] }
 0x4a1   :  { %644 = vmatpush.msrb.mxu1 %v627_v36 }
 0x4a2   :  { %v507_v40 = vadd.f32 %v506_v35, %v501_v39  ;;  %v625_v39 = vld [vmem:[%s3063_s3 + $0x118] sm:$0xff] }
 0x4a3   :  { %645 = vmatpush.msrb.mxu1 %v626_v38 }
 0x4a4   :  { %v509_v41 = vadd.f32 %v507_v40, %v2508_v14  ;;  %v570_v14 = vld [vmem:[%s3063_s3 + $0xb8] sm:$0xff]  ;;  %v624_v40 = vld [vmem:[%s3063_s3 + $0x110] sm:$0xff] }
 0x4a5   :  { %591 = vmatpush.msrb.mxu3 %v570_v14  ;;  %646 = vmatpush.msrb.mxu1 %v625_v39 }
 0x4a6   :  { %v511_v42 = vsel %vm70_vm8, %v509_v41, 0.0  ;;  %v519_v43 = vmul.f32 %v509_v41, %v509_v41 }
 0x4a7   :  { %512 = vadd.xlane.f32.xlu2 %v511_v42  ;;  %592 = vmatpush.msrb.mxu3 %v569_v53  ;;  %v622_v42 = vld [vmem:[%s3063_s3 + $0x100] sm:$0xff] }
 0x4a8   :  { %v521_v44 = vsel %vm70_vm8, %v519_v43, 0.0  ;;  %647 = vmatpush.msrb.mxu1 %v624_v40  ;;  %v621_v43 = vld [vmem:[%s3063_s3 + $0xf8] sm:$0xff] }
 0x4a9   :  { %522 = vadd.xlane.f32.xlu0 %v521_v44  ;;  %v620_v44 = vld [vmem:[%s3063_s3 + $0xf0] sm:$0xff] }
 0x4b5   :  { %v474_v46 = vpop.f32.mrf.mxu2 }
 0x4b6   :  { %v504_v47 = vadd.f32 %v503_v45, %v474_v46  ;;  %v2269_v45 = vld [vmem:[%s3063_s3 + $0xe0] ss:$0 sm:$0xff] }
 0x4b8   :  { %v508_v48 = vadd.f32 %v506_v35, %v504_v47 }
 0x4ba   :  { %v510_v49 = vadd.f32 %v508_v48, %v2512_v17  ;;  %v568_v17 = vld [vmem:[%s3063_s3 + $0xa8] sm:$0xff] }
 0x4bb   :  { %593 = vmatpush.msrb.mxu3 %v568_v17 }
 0x4bc   :  { %v514_v50 = vsel %vm70_vm8, %v510_v49, 0.0  ;;  %v520_v51 = vmul.f32 %v510_v49, %v510_v49 }
 0x4bd   :  { %515 = vadd.xlane.f32.xlu1 %v514_v50  ;;  %594 = vmatpush.msrb.mxu3 %v567_v56 }
 0x4be   :  { %v524_v52 = vsel %vm70_vm8, %v520_v51, 0.0 }
 0x4bf   :  { %525 = vadd.xlane.f32.xlu2 %v524_v52 }
 0x51a   :  { %v513_v54 = vpop.xlane.xlu2 %512 }
 0x51b   :  { %v517_v55 = vmul.f32 %v513_v54, %v2482_v37 }
 0x51c   :  { %v523_v57 = vpop.xlane.xlu0 %522 }
 0x51d   :  { %v529_v58 = vmul.f32 %v517_v55, %v517_v55  ;;  %v527_v59 = vmul.f32 %v523_v57, %v2482_v37  ;;  %v535_v10 = vsub.f32 %v509_v41, %v517_v55  ;;  %v623_v41 = vld [vmem:[%s3063_s3 + $0x108] sm:$0xff] }
 0x51e   :  { %648 = vmatpush.msrb.mxu1 %v623_v41 }
 0x51f   :  { %v531_v60 = vsub.f32 %v527_v59, %v529_v58 }
 0x520   :  { %649 = vmatpush.msrb.mxu1 %v622_v42 }
 0x521   :  { %v533_v61 = vmax.f32 %v531_v60, 0.0 }
 0x522   :  { %650 = vmatpush.msrb.mxu1 %v621_v43 }
 0x523   :  { %v537_v62 = vadd.f32 1e-12, %v533_v61 }
 0x524   :  { %651 = vmatpush.msrb.mxu1 %v620_v44 }
 0x525   :  { %2295 = vrsqrt.f32 %v537_v62  ;;  %vm545_vm3 = vweird.f32 %v537_v62 }
 0x52b   :  { %v2296_v63 = vpop.eup %2295 }
 0x52c   :  { %v540_v0 = vmul.f32 %v2296_v63, %v537_v62  ;;  %vm546_vm2 = vweird.f32 %v2296_v63 }
 0x52d   :  { %vm547_vm4 = vmor %vm545_vm3, %vm546_vm2 }
 0x52e   :  { %v541_v1 = vmul.f32 %v2296_v63, %v540_v0 }
 0x530   :  { %v542_v2 = vmul.f32 0.5, %v541_v1  ;;  %v516_v3 = vpop.xlane.xlu1 %515 }
 0x531   :  { %v518_v4 = vmul.f32 %v516_v3, %v2482_v37 }
 0x532   :  { %v543_v5 = vsub.f32 1.5, %v542_v2  ;;  %v526_v6 = vpop.xlane.xlu2 %525  ;;  %v628_v2 = vperm.slane %v2597_v33, 3 }
 0x533   :  { %v530_v7 = vmul.f32 %v518_v4, %v518_v4  ;;  %v528_v8 = vmul.f32 %v526_v6, %v2482_v37  ;;  %v536_v28 = vsub.f32 %v510_v49, %v518_v4 }
 0x534   :  { %v544_v9 = vmul.f32 %v2296_v63, %v543_v5 }
 0x535   :  { %v532_v11 = vsub.f32 %v528_v8, %v530_v7 }
 0x536   :  { %v548_v13 = vsel %vm547_vm4, %v2296_v63, %v544_v9 }
 0x537   :  { %v559_v15 = vmul.f32 %v548_v13, %v535_v10  ;;  %v534_v16 = vmax.f32 %v532_v11, 0.0 }
 0x539   :  { %v538_v19 = vadd.f32 1e-12, %v534_v16  ;;  %v562_v20 = vmul.f32 %v561_v12, %v559_v15  ;;  %v721_v16 = vld [vmem:[%s3063_s3 + $0x38] sm:$0xff] }
 0x53a   :  { %742 = vmatpush.msrb.mxu2 %v721_v16 }
 0x53b   :  { %2297 = vrsqrt.f32 %v538_v19  ;;  %v2624_v21 = vadd.f32 %v564_v18, %v562_v20  ;;  %vm555_vm6 = vweird.f32 %v538_v19 }
 0x53d   :  { %2142 = vmatmul.msk.f32.vlgmr.msrb.gmra.mxu3 %vm70_vm8, %v2624_v21 }
 0x541   :  { %v2298_v22 = vpop.eup %2297 }
 0x542   :  { %v550_v23 = vmul.f32 %v2298_v22, %v538_v19  ;;  %vm556_vm5 = vweird.f32 %v2298_v22  ;;  %v719_v19 = vld [vmem:[%s3063_s3 + $0x28] sm:$0xff] }
 0x543   :  { %vm557_vm7 = vmor %vm555_vm6, %vm556_vm5 }
 0x544   :  { %v551_v24 = vmul.f32 %v2298_v22, %v550_v23 }
 0x546   :  { %v552_v25 = vmul.f32 0.5, %v551_v24 }
 0x548   :  { %v553_v26 = vsub.f32 1.5, %v552_v25 }
 0x54a   :  { %v554_v27 = vmul.f32 %v2298_v22, %v553_v26 }
 0x54c   :  { %v558_v30 = vsel %vm557_vm7, %v2298_v22, %v554_v27  ;;  %v718_v22 = vld [vmem:[%s3063_s3 + $0x20] sm:$0xff] }
 0x54d   :  { %v560_v31 = vmul.f32 %v558_v30, %v536_v28 }
 0x54f   :  { %v563_v32 = vmul.f32 %v561_v12, %v560_v31 }
 0x551   :  { %v566_v35 = vadd.f32 %v564_v18, %v563_v32  ;;  %v720_v18 = vld [vmem:[%s3063_s3 + $0x30] sm:$0xff] }
 0x552   :  { %743 = vmatpush.msrb.mxu2 %v720_v18 }
 0x553   :  { %2143 = vmatmul.msk.f32.gmra.mxu3 %vm70_vm8, %v566_v35 }
 0x554   :  { %744 = vmatpush.msrb.mxu2 %v719_v19 }
 0x556   :  { %745 = vmatpush.msrb.mxu2 %v718_v22 }
 0x5c0   :  { %v596_v46 = vpop.f32.mrf.mxu3 }
 0x5c1   :  { %v597_v47 = vadd.f32 %v2269_v45, %v596_v46  ;;  %v711_v46 = vperm.slane %v2597_v33, 4 }
 0x5c3   :  { %v604_v48 = vmul.f32 0.044715, %v597_v47  ;;  %v602_v53 = vmul.f32 0.5, %v597_v47 }
 0x5c5   :  { %v606_v49 = vmul.f32 %v604_v48, %v597_v47 }
 0x5c7   :  { %v608_v50 = vmul.f32 %v606_v49, %v597_v47 }
 0x5c9   :  { %v610_v51 = vadd.f32 %v608_v50, %v597_v47  ;;  %v714_v50 = vperm.slane %v2597_v33, 5 }
 0x5cb   :  { %v612_v52 = vmul.f32 0.7978846, %v610_v51 }
 0x5cd   :  { %2299 = vtanh.f32 %v612_v52 }
 0x5d3   :  { %v2300_v14 = vpop.eup %2299 }
 0x5d4   :  { %v616_v17 = vadd.f32 1.0, %v2300_v14 }
 0x5d6   :  { %v599_v54 = vpop.f32.mrf.mxu3  ;;  %v618_v55 = vmul.f32 %v616_v17, %v602_v53 }
 0x5d7   :  { %v600_v56 = vadd.f32 %v2269_v45, %v599_v54 }
 0x5d8   :  { %2144 = vmatmul.msk.f32.vlgmr.msrb.gmra.mxu1 %vm629_vm9, %v618_v55 }
 0x5d9   :  { %v605_v57 = vmul.f32 0.044715, %v600_v56  ;;  %v603_v63 = vmul.f32 0.5, %v600_v56 }
 0x5db   :  { %v607_v58 = vmul.f32 %v605_v57, %v600_v56 }
 0x5dd   :  { %v609_v59 = vmul.f32 %v607_v58, %v600_v56 }
 0x5df   :  { %v611_v60 = vadd.f32 %v609_v59, %v600_v56 }
 0x5e1   :  { %v613_v61 = vmul.f32 0.7978846, %v611_v60 }
 0x5e3   :  { %2301 = vtanh.f32 %v613_v61 }
 0x5e9   :  { %v2302_v62 = vpop.eup %2301 }
 0x5ea   :  { %v617_v0 = vadd.f32 1.0, %v2302_v62  ;;  %v2270_v62 = vld [vmem:[%s3063_s3 + $0x48] ss:$0 sm:$0xff] }
 0x5ec   :  { %v619_v1 = vmul.f32 %v617_v0, %v603_v63 }
 0x5ee   :  { %2145 = vmatmul.msk.f32.gmra.mxu1 %vm629_vm9, %v619_v1 }
 0x655   :  { %v653_v3 = vpop.f32.mrf.mxu1 }
 0x656   :  { %v654_v4 = vadd.f32 %v653_v3, %v628_v2 }
 0x658   :  { %v659_v5 = vadd.f32 %v654_v4, %v2624_v21 }
 0x65a   :  { %v661_v6 = vsel %vm70_vm8, %v659_v5, 0.0  ;;  %v669_v7 = vmul.f32 %v659_v5, %v659_v5 }
 0x65b   :  { %662 = vadd.xlane.f32.xlu0 %v661_v6 }
 0x65c   :  { %v671_v8 = vsel %vm70_vm8, %v669_v7, 0.0 }
 0x65d   :  { %672 = vadd.xlane.f32.xlu2 %v671_v8 }
 0x66b   :  { %v656_v9 = vpop.f32.mrf.mxu1 }
 0x66c   :  { %v657_v10 = vadd.f32 %v656_v9, %v628_v2 }
 0x66e   :  { %v660_v11 = vadd.f32 %v657_v10, %v566_v35 }
 0x670   :  { %v664_v12 = vsel %vm70_vm8, %v660_v11, 0.0  ;;  %v670_v13 = vmul.f32 %v660_v11, %v660_v11 }
 0x671   :  { %665 = vadd.xlane.f32.xlu0 %v664_v12 }
 0x672   :  { %v674_v15 = vsel %vm70_vm8, %v670_v13, 0.0 }
 0x673   :  { %675 = vadd.xlane.f32.xlu2 %v674_v15 }
 0x6ce   :  { %v663_v20 = vpop.xlane.xlu0 %662 }
 0x6cf   :  { %v667_v21 = vmul.f32 %v663_v20, %v2482_v37 }
 0x6d0   :  { %v673_v23 = vpop.xlane.xlu2 %672 }
 0x6d1   :  { %v679_v24 = vmul.f32 %v667_v21, %v667_v21  ;;  %v677_v25 = vmul.f32 %v673_v23, %v2482_v37  ;;  %v685_v44 = vsub.f32 %v659_v5, %v667_v21 }
 0x6d3   :  { %v681_v26 = vsub.f32 %v677_v25, %v679_v24 }
 0x6d5   :  { %v683_v27 = vmax.f32 %v681_v26, 0.0 }
 0x6d7   :  { %v687_v28 = vadd.f32 1e-12, %v683_v27 }
 0x6d9   :  { %2303 = vrsqrt.f32 %v687_v28  ;;  %vm695_vm11 = vweird.f32 %v687_v28 }
 0x6df   :  { %v2304_v30 = vpop.eup %2303 }
 0x6e0   :  { %v690_v31 = vmul.f32 %v2304_v30, %v687_v28  ;;  %vm696_vm10 = vweird.f32 %v2304_v30 }
 0x6e1   :  { %vm697_vm12 = vmor %vm695_vm11, %vm696_vm10 }
 0x6e2   :  { %v691_v32 = vmul.f32 %v2304_v30, %v690_v31 }
 0x6e4   :  { %v692_v35 = vmul.f32 0.5, %v691_v32  ;;  %v666_v36 = vpop.xlane.xlu0 %665 }
 0x6e5   :  { %v668_v38 = vmul.f32 %v666_v36, %v2482_v37 }
 0x6e6   :  { %v693_v39 = vsub.f32 1.5, %v692_v35  ;;  %v676_v40 = vpop.xlane.xlu2 %675 }
 0x6e7   :  { %v680_v41 = vmul.f32 %v668_v38, %v668_v38  ;;  %v678_v42 = vmul.f32 %v676_v40, %v2482_v37  ;;  %v686_v58 = vsub.f32 %v660_v11, %v668_v38 }
 0x6e8   :  { %v694_v43 = vmul.f32 %v2304_v30, %v693_v39 }
 0x6e9   :  { %v682_v45 = vsub.f32 %v678_v42, %v680_v41 }
 0x6ea   :  { %v698_v47 = vsel %vm697_vm12, %v2304_v30, %v694_v43 }
 0x6eb   :  { %v709_v48 = vmul.f32 %v698_v47, %v685_v44  ;;  %v684_v49 = vmax.f32 %v682_v45, 0.0 }
 0x6ed   :  { %v688_v51 = vadd.f32 1e-12, %v684_v49  ;;  %v712_v52 = vmul.f32 %v711_v46, %v709_v48 }
 0x6ef   :  { %2305 = vrsqrt.f32 %v688_v51  ;;  %v2682_v14 = vadd.f32 %v714_v50, %v712_v52  ;;  %vm705_vm14 = vweird.f32 %v688_v51 }
 0x6f1   :  { %2146 = vmatmul.msk.f32.vlgmr.msrb.gmra.mxu2 %vm70_vm8, %v2682_v14 }
 0x6f5   :  { %v2306_v53 = vpop.eup %2305 }
 0x6f6   :  { %v700_v17 = vmul.f32 %v2306_v53, %v688_v51  ;;  %vm706_vm13 = vweird.f32 %v2306_v53 }
 0x6f7   :  { %vm707_vm15 = vmor %vm705_vm14, %vm706_vm13 }
 0x6f8   :  { %v701_v54 = vmul.f32 %v2306_v53, %v700_v17 }
 0x6fa   :  { %v702_v55 = vmul.f32 0.5, %v701_v54 }
 0x6fc   :  { %v703_v56 = vsub.f32 1.5, %v702_v55  ;;  %v886_v55 = vld [vmem:[%s3063_s3 + $0x78] sm:$0xff] }
 0x6fe   :  { %v704_v57 = vmul.f32 %v2306_v53, %v703_v56 }
 0x700   :  { %v708_v59 = vsel %vm707_vm15, %v2306_v53, %v704_v57 }
 0x701   :  { %v710_v33 = vmul.f32 %v708_v59, %v686_v58 }
 0x703   :  { %v713_v60 = vmul.f32 %v711_v46, %v710_v33 }
 0x705   :  { %v2686_v61 = vadd.f32 %v714_v50, %v713_v60 }
 0x707   :  { %2147 = vmatmul.msk.f32.gmra.mxu2 %vm70_vm8, %v2686_v61 }
 0x774   :  { %v747_v63 = vpop.f32.mrf.mxu2 }
 0x775   :  { %v748_v0 = vadd.f32 %v2270_v62, %v747_v63 }
 0x777   :  { %754 = vrot.lane.b32.xlu1 %v748_v0, %s2403_s2 }
 0x77f   :  { %889 = vrot.lane.b32.xlu1 %v748_v0, %s2405_s23 }
 0x78a   :  { %v750_v1 = vpop.f32.mrf.mxu2 }
 0x78b   :  { %v751_v2 = vadd.f32 %v2270_v62, %v750_v1 }
 0x78d   :  { %917 = vrot.lane.b32.xlu2 %v751_v2, %s2405_s23  ;;  %781 = vrot.lane.b32.xlu0 %v751_v2, %s2403_s2  ;;  %v2250_v42 = vpack.i.bf16 %v751_v2, %v748_v0 }
 0x795   :  { %915 = vrot.lane.b32.xlu0 %v751_v2, %s2404_s22 }
 0x79d   :  { %887 = vrot.lane.b32.xlu0 %v748_v0, %s2404_s22 }
 0x7e7   :  { %v918_v3 = vpop.permute.xlu2 %917 }
 0x7e8   :  { %2156 = vmatpush.xpose.msk.msra.mxu2 %vm173_vm0, %v918_v3 }
 0x7e9   :  { %v755_v4 = vpop.permute.xlu1 %754 }
 0x7ea   :  { %2148 = vmatpush.xpose.msk.msra.mxu0 %vm173_vm0, %v755_v4  ;;  %v885_v4 = vld [vmem:[%s3063_s3 + $0x70] sm:$0xff] }
 0x7ec   :  { %1072 = vmatpush.msrb.mxu2 %v886_v55 }
 0x7ed   :  { %2149 = vmatmul.msk.f32.vlgmr.msra.gmra.mxu0 %vm173_vm0, %v748_v0 }
 0x7ee   :  { %1073 = vmatpush.msrb.mxu2 %v885_v4 }
 0x7f1   :  { %v890_v5 = vpop.permute.xlu1 %889 }
 0x7f2   :  { %2154 = vmatpush.xpose.msk.msra.mxu1 %vm173_vm0, %v890_v5  ;;  %v1022_v5 = vld [vmem:[%s3063_s3 + $0x88] sm:$0xff] }
 0x7f6   :  { %1043 = vmatpush.msrb.mxu1 %v1022_v5 }
 0x7ff   :  { %v782_v6 = vpop.permute.xlu0 %781 }
 0x800   :  { %2150 = vmatpush.xpose.msk.msra.mxu3 %vm173_vm0, %v782_v6  ;;  %v1021_v6 = vld [vmem:[%s3063_s3 + $0x80] sm:$0xff] }
 0x801   :  { %1044 = vmatpush.msrb.mxu1 %v1021_v6 }
 0x803   :  { %2151 = vmatmul.msk.f32.vlgmr.msra.gmra.mxu3 %vm173_vm0, %v751_v2 }
 0x807   :  { %v916_v7 = vpop.permute.xlu0 %915 }
 0x808   :  { %2157 = vmatmul.msk.f32.vlgmr.msra.gmra.mxu2 %vm173_vm0, %v916_v7 }
 0x80f   :  { %v888_v8 = vpop.permute.xlu0 %887 }
 0x810   :  { %2155 = vmatmul.msk.f32.vlgmr.msra.gmra.mxu1 %vm173_vm0, %v888_v8 }
 0x86a   :  { %v777_v9 = vpop.f32.mrf.mxu0 }
 0x86b   :  { %v807_v10 = vmul.f32 0.25, %v777_v9 }
 0x86d   :  { %v809_v11 = vadd.f32 %v2548_v29, %v807_v10 }
 0x86f   :  { %v811_v12 = vsel %vm235_vm1, %v809_v11, -inf }
 0x870   :  { %812 = vmax.xlane.f32.xlu2 %v811_v12 }
 0x886   :  { %v804_v13 = vpop.f32.mrf.mxu3 }
 0x887   :  { %v808_v15 = vmul.f32 0.25, %v804_v13 }
 0x889   :  { %v810_v16 = vadd.f32 %v2555_v34, %v808_v15 }
 0x88b   :  { %v940_v18 = vpop.f32.mrf.mxu2  ;;  %v814_v19 = vsel %vm235_vm1, %v810_v16, -inf }
 0x88c   :  { %v944_v20 = vmul.f32 0.25, %v940_v18  ;;  %815 = vmax.xlane.f32.xlu1 %v814_v19 }
 0x88d   :  { %v912_v21 = vpop.f32.mrf.mxu1 }
 0x88e   :  { %v943_v22 = vmul.f32 0.25, %v912_v21  ;;  %v946_v23 = vadd.f32 %v2555_v34, %v944_v20 }
 0x890   :  { %v950_v24 = vsel %vm235_vm1, %v946_v23, -inf  ;;  %v945_v25 = vadd.f32 %v2548_v29, %v943_v22 }
 0x891   :  { %951 = vmax.xlane.f32.xlu2 %v950_v24 }
 0x892   :  { %v947_v26 = vsel %vm235_vm1, %v945_v25, -inf }
 0x893   :  { %948 = vmax.xlane.f32.xlu0 %v947_v26 }
 0x8e3   :  { %v813_v27 = vpop.xlane.xlu2 %812 }
 0x8e4   :  { %v817_v28 = vsub.f32 %v809_v11, %v813_v27  ;;  %v2744_v11 = vld [vmem:[%s3063_s3 + $0x98] sm:$0x3f] }
 0x8e5   :  { %v1081_v12 = vperm.slane %v2744_v11, 0 }
 0x8e6   :  { %v819_v30 = vmul.f32 1.442695, %v817_v28 }
 0x8e8   :  { %2307 = vpow2.f32 %v819_v30 }
 0x8ee   :  { %v2308_v31 = vpop.eup %2307 }
 0x8ef   :  { %v823_v32 = vsel %vm235_vm1, %v2308_v31, 0.0 }
 0x8f0   :  { %824 = vadd.xlane.f32.xlu1 %v823_v32  ;;  %v1145_v32 = vld [vmem:[%s3063_s3 + $0xd8] sm:$0xff] }
 0x8ff   :  { %v816_v35 = vpop.xlane.xlu1 %815 }
 0x900   :  { %v818_v36 = vsub.f32 %v810_v16, %v816_v35 }
 0x902   :  { %v821_v38 = vmul.f32 1.442695, %v818_v36  ;;  %v1143_v36 = vld [vmem:[%s3063_s3 + $0xc8] sm:$0xff] }
 0x904   :  { %2309 = vpow2.f32 %v821_v38  ;;  %v952_v34 = vpop.xlane.xlu2 %951 }
 0x905   :  { %v954_v39 = vsub.f32 %v946_v23, %v952_v34  ;;  %v1142_v34 = vld [vmem:[%s3063_s3 + $0xc0] sm:$0xff] }
 0x906   :  { %v949_v40 = vpop.xlane.xlu0 %948 }
 0x907   :  { %v957_v29 = vmul.f32 1.442695, %v954_v39  ;;  %v953_v41 = vsub.f32 %v945_v25, %v949_v40 }
 0x909   :  { %v955_v43 = vmul.f32 1.442695, %v953_v41  ;;  %2251 = vrot.lane.b32.xlu1 %v2250_v42, %s2406_s28  ;;  %2311 = vpow2.f32 %v957_v29 }
 0x90a   :  { %v2310_v44 = vpop.eup %2309 }
 0x90b   :  { %2313 = vpow2.f32 %v955_v43  ;;  %v826_v45 = vsel %vm235_vm1, %v2310_v44, 0.0 }
 0x90c   :  { %827 = vadd.xlane.f32.xlu2 %v826_v45 }
 0x90f   :  { %v2312_v46 = vpop.eup %2311 }
 0x910   :  { %v962_v49 = vsel %vm235_vm1, %v2312_v46, 0.0 }
 0x911   :  { %v2314_v47 = vpop.eup %2313 }
 0x912   :  { %v959_v48 = vsel %vm235_vm1, %v2314_v47, 0.0 }
 0x913   :  { %960 = vadd.xlane.f32.xlu0 %v959_v48 }
 0x914   :  { %963 = vadd.xlane.f32.xlu2 %v962_v49 }
 0x927   :  { %2256 = vrot.lane.b32.xlu0 %v2250_v42, %s2407_s29 }
 0x963   :  { %v825_v50 = vpop.xlane.xlu1 %824 }
 0x964   :  { %2315 = vrcp.f32 %v825_v50 }
 0x96a   :  { %v2316_v51 = vpop.eup %2315 }
 0x96b   :  { %v831_v54 = vmul.f32 %v2316_v51, %v2308_v31 }
 0x97b   :  { %v2252_v52 = vpop.permute.xlu1 %2251 }
 0x97c   :  { %v2254_v53 = vunpack.i.h.bf16 %v2252_v52  ;;  %v2253_v17 = vunpack.i.l.bf16 %v2252_v52 }
 0x97e   :  { %854 = vmatpush.msrb.mxu0 %v2253_v17  ;;  %880 = vmatpush.msrb.mxu3 %v2254_v53 }
 0x97f   :  { %2152 = vmatmul.msk.f32.vlgmr.msrb.gmra.mxu0 %vm235_vm1, %v831_v54  ;;  %v828_v56 = vpop.xlane.xlu2 %827 }
 0x980   :  { %2317 = vrcp.f32 %v828_v56 }
 0x986   :  { %v2318_v57 = vpop.eup %2317  ;;  %v961_v59 = vpop.xlane.xlu0 %960 }
 0x987   :  { %v832_v58 = vmul.f32 %v2318_v57, %v2310_v44  ;;  %v964_v33 = vpop.xlane.xlu2 %963  ;;  %2319 = vrcp.f32 %v961_v59  ;;  %v1136_v59 = vperm.slane %v2744_v11, 1 }
 0x988   :  { %2321 = vrcp.f32 %v964_v33 }
 0x989   :  { %2153 = vmatmul.msk.f32.vlgmr.msrb.gmra.mxu3 %vm235_vm1, %v832_v58 }
 0x98d   :  { %v2320_v60 = vpop.eup %2319 }
 0x98e   :  { %v2322_v62 = vpop.eup %2321  ;;  %v967_v2 = vmul.f32 %v2320_v60, %v2314_v47 }
 0x98f   :  { %v968_v3 = vmul.f32 %v2322_v62, %v2312_v46 }
 0x999   :  { %v2257_v63 = vpop.permute.xlu0 %2256 }
 0x99a   :  { %v2259_v0 = vunpack.i.h.bf16 %v2257_v63  ;;  %v2258_v1 = vunpack.i.l.bf16 %v2257_v63  ;;  %v1139_v63 = vperm.slane %v2744_v11, 2 }
 0x99c   :  { %990 = vmatpush.msra.mxu0 %v2258_v1  ;;  %1016 = vmatpush.msra.mxu3 %v2259_v0 }
 0x99d   :  { %2158 = vmatmul.msk.f32.vlgmr.msra.gmra.mxu0 %vm235_vm1, %v967_v2  ;;  %2159 = vmatmul.msk.f32.vlgmr.msra.gmra.mxu3 %vm235_vm1, %v968_v3 }
 0x99e   :  { %1166 = vmatpush.msrb.mxu0 %v1145_v32 }
 0x9fc   :  { %v856_v7 = vpop.f32.mrf.mxu0 }
 0x9fd   :  { %2162 = vmatmul.msk.f32.vlgmr.msrb.gmra.mxu2 %vm173_vm0, %v856_v7 }
 0xa0c   :  { %v882_v8 = vpop.f32.mrf.mxu3 }
 0xa0d   :  { %2163 = vmatmul.msk.f32.gmra.mxu2 %vm173_vm0, %v882_v8 }
 0xa1a   :  { %v992_v9 = vpop.f32.mrf.mxu0 }
 0xa1b   :  { %2160 = vmatmul.msk.f32.vlgmr.msrb.gmra.mxu1 %vm173_vm0, %v992_v9 }
 0xa20   :  { %v1018_v10 = vpop.f32.mrf.mxu3 }
 0xa23   :  { %2161 = vmatmul.msk.f32.gmra.mxu1 %vm173_vm0, %v1018_v10  ;;  %v1202_v10 = vld [vmem:[%s3063_s3 + $0x168] sm:$0xff] }
 0xa24   :  { %1218 = vmatpush.msrb.mxu3 %v1202_v10 }
 0xa80   :  { %v1075_v13 = vpop.f32.mrf.mxu2 }
 0xa90   :  { %v1078_v21 = vpop.f32.mrf.mxu2 }
 0xa98   :  { %v1046_v15 = vpop.f32.mrf.mxu1 }
 0xa99   :  { %v1076_v16 = vadd.f32 %v1075_v13, %v1046_v15  ;;  %v1200_v13 = vld [vmem:[%s3063_s3 + $0x158] sm:$0xff]  ;;  %v1199_v15 = vld [vmem:[%s3063_s3 + $0x150] sm:$0xff] }
 0xa9b   :  { %v1082_v18 = vadd.f32 %v1081_v12, %v1076_v16  ;;  %v1198_v16 = vld [vmem:[%s3063_s3 + $0x148] sm:$0xff] }
 0xa9d   :  { %v1084_v19 = vadd.f32 %v1082_v18, %v2682_v14  ;;  %v1197_v18 = vld [vmem:[%s3063_s3 + $0x140] sm:$0xff] }
 0xa9f   :  { %v1086_v20 = vsel %vm70_vm8, %v1084_v19, 0.0  ;;  %v1094_v25 = vmul.f32 %v1084_v19, %v1084_v19 }
 0xaa0   :  { %1087 = vadd.xlane.f32.xlu2 %v1086_v20  ;;  %v1049_v22 = vpop.f32.mrf.mxu1  ;;  %v1195_v20 = vld [vmem:[%s3063_s3 + $0x130] sm:$0xff] }
 0xaa1   :  { %v1079_v23 = vadd.f32 %v1078_v21, %v1049_v22  ;;  %v1096_v27 = vsel %vm70_vm8, %v1094_v25, 0.0  ;;  %v2271_v21 = vld [vmem:[%s3063_s3 + $0xe8] ss:$0 sm:$0xff] }
 0xaa3   :  { %v1083_v24 = vadd.f32 %v1081_v12, %v1079_v23  ;;  %v1201_v12 = vld [vmem:[%s3063_s3 + $0x160] sm:$0xff] }
 0xaa4   :  { %1219 = vmatpush.msrb.mxu3 %v1201_v12 }
 0xaa5   :  { %v2750_v26 = vadd.f32 %v1083_v24, %v2686_v61  ;;  %v1144_v61 = vld [vmem:[%s3063_s3 + $0xd0] sm:$0xff] }
 0xaa6   :  { %1167 = vmatpush.msrb.mxu0 %v1144_v61  ;;  %1220 = vmatpush.msrb.mxu3 %v1200_v13 }
 0xaa7   :  { %v1089_v28 = vsel %vm70_vm8, %v2750_v26, 0.0  ;;  %v1095_v14 = vmul.f32 %v2750_v26, %v2750_v26 }
 0xaa8   :  { %1097 = vadd.xlane.f32.xlu2 %v1096_v27  ;;  %1090 = vadd.xlane.f32.xlu0 %v1089_v28 }
 0xaa9   :  { %v1099_v30 = vsel %vm70_vm8, %v1095_v14, 0.0  ;;  %1168 = vmatpush.msrb.mxu0 %v1143_v36  ;;  %1221 = vmatpush.msrb.mxu3 %v1199_v15 }
 0xaab   :  { %1169 = vmatpush.msrb.mxu0 %v1142_v34  ;;  %1222 = vmatpush.msrb.mxu3 %v1198_v16 }
 0xaad   :  { %1223 = vmatpush.msrb.mxu3 %v1197_v18 }
 0xab0   :  { %1100 = vadd.xlane.f32.xlu2 %v1099_v30 }
 0xb13   :  { %v1088_v31 = vpop.xlane.xlu2 %1087 }
 0xb14   :  { %v1092_v35 = vmul.f32 %v1088_v31, %v2482_v37 }
 0xb16   :  { %v1104_v39 = vmul.f32 %v1092_v35, %v1092_v35  ;;  %v1110_v58 = vsub.f32 %v1084_v19, %v1092_v35  ;;  %v1196_v19 = vld [vmem:[%s3063_s3 + $0x138] sm:$0xff] }
 0xb17   :  { %1224 = vmatpush.msrb.mxu3 %v1196_v19 }
 0xb19   :  { %1225 = vmatpush.msrb.mxu3 %v1195_v20 }
 0xb1b   :  { %v1098_v38 = vpop.xlane.xlu2 %1097  ;;  %v1091_v29 = vpop.xlane.xlu0 %1090 }
 0xb1c   :  { %v1102_v40 = vmul.f32 %v1098_v38, %v2482_v37  ;;  %v1093_v43 = vmul.f32 %v1091_v29, %v2482_v37 }
 0xb1e   :  { %v1106_v41 = vsub.f32 %v1102_v40, %v1104_v39  ;;  %v1105_v46 = vmul.f32 %v1093_v43, %v1093_v43  ;;  %v1111_v5 = vsub.f32 %v2750_v26, %v1093_v43 }
 0xb20   :  { %v1108_v42 = vmax.f32 %v1106_v41, 0.0 }
 0xb22   :  { %v1112_v44 = vadd.f32 1e-12, %v1108_v42 }
 0xb23   :  { %v1101_v45 = vpop.xlane.xlu2 %1100 }
 0xb24   :  { %2323 = vrsqrt.f32 %v1112_v44  ;;  %v1103_v47 = vmul.f32 %v1101_v45, %v2482_v37  ;;  %vm1120_vm1 = vweird.f32 %v1112_v44 }
 0xb26   :  { %v1107_v48 = vsub.f32 %v1103_v47, %v1105_v46 }
 0xb28   :  { %v1109_v49 = vmax.f32 %v1107_v48, 0.0 }
 0xb2a   :  { %v2324_v50 = vpop.eup %2323  ;;  %v1113_v51 = vadd.f32 1e-12, %v1109_v49 }
 0xb2b   :  { %v1115_v52 = vmul.f32 %v2324_v50, %v1112_v44  ;;  %vm1121_vm0 = vweird.f32 %v2324_v50  ;;  %v1203_v44 = vperm.slane %v2744_v11, 3 }
 0xb2c   :  { %2325 = vrsqrt.f32 %v1113_v51  ;;  %vm1122_vm2 = vmor %vm1120_vm1, %vm1121_vm0  ;;  %vm1130_vm4 = vweird.f32 %v1113_v51 }
 0xb2d   :  { %v1116_v53 = vmul.f32 %v2324_v50, %v1115_v52 }
 0xb2f   :  { %v1117_v17 = vmul.f32 0.5, %v1116_v53 }
 0xb31   :  { %v1118_v54 = vsub.f32 1.5, %v1117_v17 }
 0xb32   :  { %v2326_v55 = vpop.eup %2325 }
 0xb33   :  { %v1119_v56 = vmul.f32 %v2324_v50, %v1118_v54  ;;  %v1125_v57 = vmul.f32 %v2326_v55, %v1113_v51  ;;  %vm1131_vm3 = vweird.f32 %v2326_v55 }
 0xb34   :  { %vm1132_vm5 = vmor %vm1130_vm4, %vm1131_vm3 }
 0xb35   :  { %v1123_v33 = vsel %vm1122_vm2, %v2324_v50, %v1119_v56  ;;  %v1126_v60 = vmul.f32 %v2326_v55, %v1125_v57  ;;  %v1410_v56 = vld [vmem:[%s3063_s3 + $0x1b2] sm:$0x1]  ;;  %v1294_v57 = vld [vmem:[%s3063_s3 + $0x188] sm:$0xff] }
 0xb36   :  { %v1134_v62 = vmul.f32 %v1123_v33, %v1110_v58  ;;  %1346 = vmatpush.msra.mxu2 %v1294_v57  ;;  %v1293_v58 = vld [vmem:[%s3063_s3 + $0x180] sm:$0xff]  ;;  %v1298_v33 = vld [vmem:[%s3063_s3 + $0x1a8] sm:$0xff] }
 0xb37   :  { %v1127_v0 = vmul.f32 0.5, %v1126_v60  ;;  %v1291_v60 = vld [vmem:[%s3063_s3 + $0x170] sm:$0xff]  ;;  %1317 = vmatpush.msra.mxu1 %v1298_v33 }
 0xb38   :  { %v1137_v1 = vmul.f32 %v1136_v59, %v1134_v62  ;;  %1347 = vmatpush.msra.mxu2 %v1293_v58  ;;  %v2844_v62 = vld [vmem:[%s3060_s0] sm:$0xff] }
 0xb39   :  { %v1128_v2 = vsub.f32 1.5, %v1127_v0 }
 0xb3a   :  { %v1140_v3 = vadd.f32 %v1139_v63, %v1137_v1  ;;  %v1296_v1 = vld [vmem:[%s3063_s3 + $0x198] sm:$0xff] }
 0xb3b   :  { %v1129_v4 = vmul.f32 %v2326_v55, %v1128_v2 }
 0xb3c   :  { %2164 = vmatmul.msk.f32.vlgmr.msrb.gmra.mxu0 %vm70_vm8, %v1140_v3 }
 0xb3d   :  { %v1133_v6 = vsel %vm1132_vm5, %v2326_v55, %v1129_v4  ;;  %v1295_v4 = vld [vmem:[%s3063_s3 + $0x190] sm:$0xff] }
 0xb3e   :  { %v1135_v7 = vmul.f32 %v1133_v6, %v1111_v5 }
 0xb40   :  { %v1138_v8 = vmul.f32 %v1136_v59, %v1135_v7  ;;  %v1292_v59 = vld [vmem:[%s3063_s3 + $0x178] sm:$0xff] }
 0xb41   :  { %1348 = vmatpush.msra.mxu2 %v1292_v59 }
 0xb42   :  { %v1141_v9 = vadd.f32 %v1139_v63, %v1138_v8  ;;  %v1297_v63 = vld [vmem:[%s3063_s3 + $0x1a0] sm:$0xff]  ;;  %v2862_v8 = vld [vmem:[%s3060_s0 + $0x8] sm:$0xff] }
 0xb43   :  { %1349 = vmatpush.msra.mxu2 %v1291_v60  ;;  %1318 = vmatpush.msra.mxu1 %v1297_v63 }
 0xb44   :  { %2165 = vmatmul.msk.f32.gmra.mxu0 %vm70_vm8, %v1141_v9  ;;  %2170 = vmatmul.msk.f32.vlgmr.msra.gmra.mxu2 %vm70_vm8, %v2844_v62 }
 0xb45   :  { %1319 = vmatpush.msra.mxu1 %v1296_v1 }
 0xb47   :  { %1320 = vmatpush.msra.mxu1 %v1295_v4 }
 0xb4c   :  { %2171 = vmatmul.msk.f32.gmra.mxu2 %vm70_vm8, %v2862_v8 }
 0xbb9   :  { %v1171_v22 = vpop.f32.mrf.mxu0 }
 0xbba   :  { %v1172_v23 = vadd.f32 %v2271_v21, %v1171_v22 }
 0xbbc   :  { %v1179_v24 = vmul.f32 0.044715, %v1172_v23  ;;  %v1177_v34 = vmul.f32 0.5, %v1172_v23 }
 0xbbe   :  { %v1181_v25 = vmul.f32 %v1179_v24, %v1172_v23 }
 0xbc0   :  { %v1183_v26 = vmul.f32 %v1181_v25, %v1172_v23 }
 0xbc1   :  { %v1174_v27 = vpop.f32.mrf.mxu0 }
 0xbc2   :  { %v1185_v28 = vadd.f32 %v1183_v26, %v1172_v23  ;;  %v1175_v14 = vadd.f32 %v2271_v21, %v1174_v27 }
 0xbc4   :  { %v1187_v30 = vmul.f32 0.7978846, %v1185_v28  ;;  %v1180_v31 = vmul.f32 0.044715, %v1175_v14  ;;  %v1178_v41 = vmul.f32 0.5, %v1175_v14 }
 0xbc6   :  { %2327 = vtanh.f32 %v1187_v30  ;;  %v1182_v32 = vmul.f32 %v1180_v31, %v1175_v14 }
 0xbc8   :  { %v1184_v61 = vmul.f32 %v1182_v32, %v1175_v14  ;;  %v1288_v32 = vperm.slane %v2744_v11, 5 }
 0xbca   :  { %v1186_v35 = vadd.f32 %v1184_v61, %v1175_v14  ;;  %v1285_v14 = vperm.slane %v2744_v11, 4  ;;  %v1351_v11 = vpop.f32.mrf.mxu2 }
 0xbcc   :  { %v2328_v36 = vpop.eup %2327  ;;  %v1188_v38 = vmul.f32 0.7978846, %v1186_v35 }
 0xbcd   :  { %v1191_v39 = vadd.f32 1.0, %v2328_v36 }
 0xbce   :  { %2329 = vtanh.f32 %v1188_v38 }
 0xbcf   :  { %v1193_v40 = vmul.f32 %v1191_v39, %v1177_v34 }
 0xbd1   :  { %2166 = vmatmul.msk.f32.vlgmr.msrb.gmra.mxu3 %vm629_vm9, %v1193_v40 }
 0xbd4   :  { %v2330_v29 = vpop.eup %2329 }
 0xbd5   :  { %v1192_v42 = vadd.f32 1.0, %v2330_v29 }
 0xbd7   :  { %v1194_v43 = vmul.f32 %v1192_v42, %v1178_v41 }
 0xbd9   :  { %2167 = vmatmul.msk.f32.gmra.mxu3 %vm629_vm9, %v1194_v43 }
 0xc54   :  { %v1227_v45 = vpop.f32.mrf.mxu3 }
 0xc55   :  { %v1228_v46 = vadd.f32 %v1227_v45, %v1203_v44  ;;  %v2272_v45 = vld [vmem:[%s3063_s3 + $0x1ba] ss:$0 sm:$0xff] }
 0xc57   :  { %v2809_v47 = vadd.f32 %v1228_v46, %v1140_v3 }
 0xc59   :  { %v1235_v48 = vsel %vm70_vm8, %v2809_v47, 0.0  ;;  %v1243_v49 = vmul.f32 %v2809_v47, %v2809_v47 }
 0xc5a   :  { %1236 = vadd.xlane.f32.xlu1 %v1235_v48 }
 0xc5b   :  { %v1245_v50 = vsel %vm70_vm8, %v1243_v49, 0.0 }
 0xc5c   :  { %1246 = vadd.xlane.f32.xlu2 %v1245_v50  ;;  %v1230_v51 = vpop.f32.mrf.mxu3 }
 0xc5d   :  { %v1231_v52 = vadd.f32 %v1230_v51, %v1203_v44 }
 0xc5f   :  { %v2816_v53 = vadd.f32 %v1231_v52, %v1141_v9  ;;  %v1354_v52 = vpop.f32.mrf.mxu2 }
 0xc61   :  { %v1238_v17 = vsel %vm70_vm8, %v2816_v53, 0.0  ;;  %v1244_v54 = vmul.f32 %v2816_v53, %v2816_v53 }
 0xc63   :  { %v1248_v55 = vsel %vm70_vm8, %v1244_v54, 0.0 }
 0xc64   :  { %1239 = vadd.xlane.f32.xlu2 %v1238_v17 }
 0xc6c   :  { %1249 = vadd.xlane.f32.xlu2 %v1248_v55 }
 0xc73   :  { %1478 = vperm.xlu1 %2244, %v1410_v56  }
 0xccd   :  { %v1237_v0 = vpop.xlane.xlu1 %1236 }
 0xcce   :  { %v1241_v2 = vmul.f32 %v1237_v0, %v2482_v37 }
 0xccf   :  { %v1247_v3 = vpop.xlane.xlu2 %1246 }
 0xcd0   :  { %v1253_v5 = vmul.f32 %v1241_v2, %v1241_v2  ;;  %v1251_v6 = vmul.f32 %v1247_v3, %v2482_v37  ;;  %v1259_v28 = vsub.f32 %v2809_v47, %v1241_v2 }
 0xcd2   :  { %v1255_v7 = vsub.f32 %v1251_v6, %v1253_v5 }
 0xcd4   :  { %v1257_v9 = vmax.f32 %v1255_v7, 0.0 }
 0xcd6   :  { %v1261_v10 = vadd.f32 1e-12, %v1257_v9 }
 0xcd7   :  { %v1240_v12 = vpop.xlane.xlu2 %1239 }
 0xcd8   :  { %2331 = vrsqrt.f32 %v1261_v10  ;;  %v1242_v13 = vmul.f32 %v1240_v12, %v2482_v37  ;;  %vm1269_vm7 = vweird.f32 %v1261_v10 }
 0xcda   :  { %v1254_v19 = vmul.f32 %v1242_v13, %v1242_v13  ;;  %v1260_v29 = vsub.f32 %v2816_v53, %v1242_v13  ;;  %v1409_v13 = vld [vmem:[%s3063_s3 + $0x1b0] sm:$0x3] }
 0xcde   :  { %v2332_v15 = vpop.eup %2331 }
 0xcdf   :  { %v1264_v16 = vmul.f32 %v2332_v15, %v1261_v10  ;;  %v1250_v18 = vpop.xlane.xlu2 %1249  ;;  %vm1270_vm6 = vweird.f32 %v2332_v15 }
 0xce0   :  { %v1252_v20 = vmul.f32 %v1250_v18, %v2482_v37  ;;  %vm1271_vm9 = vmor %vm1269_vm7, %vm1270_vm6  ;;  %vm1487_vm6 = vcmask 57344  }
 0xce1   :  { %v1265_v21 = vmul.f32 %v2332_v15, %v1264_v16 }
 0xce2   :  { %v1256_v22 = vsub.f32 %v1252_v20, %v1254_v19 }
 0xce3   :  { %v1266_v23 = vmul.f32 0.5, %v1265_v21 }
 0xce4   :  { %v1258_v24 = vmax.f32 %v1256_v22, 0.0 }
 0xce5   :  { %v1267_v25 = vsub.f32 1.5, %v1266_v23 }
 0xce6   :  { %v1262_v26 = vadd.f32 1e-12, %v1258_v24 }
 0xce7   :  { %v1268_v27 = vmul.f32 %v2332_v15, %v1267_v25 }
 0xce8   :  { %2333 = vrsqrt.f32 %v1262_v26  ;;  %vm1279_vm11 = vweird.f32 %v1262_v26 }
 0xce9   :  { %v1272_v30 = vsel %vm1271_vm9, %v2332_v15, %v1268_v27 }
 0xcea   :  { %v1283_v31 = vmul.f32 %v1272_v30, %v1259_v28 }
 0xcec   :  { %v1286_v37 = vmul.f32 %v1285_v14, %v1283_v31 }
 0xcee   :  { %v2334_v61 = vpop.eup %2333  ;;  %v1289_v35 = vadd.f32 %v1288_v32, %v1286_v37 }
 0xcef   :  { %v1274_v36 = vmul.f32 %v2334_v61, %v1262_v26  ;;  %vm1280_vm10 = vweird.f32 %v2334_v61 }
 0xcf0   :  { %2168 = vmatmul.msk.f32.vlgmr.msra.gmra.mxu1 %vm70_vm8, %v1289_v35  ;;  %vm1281_vm12 = vmor %vm1279_vm11, %vm1280_vm10 }
 0xcf1   :  { %v1275_v38 = vmul.f32 %v2334_v61, %v1274_v36 }
 0xcf3   :  { %v1276_v34 = vmul.f32 0.5, %v1275_v38  ;;  %v24_v38 = vld [vmem:[%s3061_s1 + $0x1] sm:$0x1] }
 0xcf5   :  { %v1277_v39 = vsub.f32 1.5, %v1276_v34 }
 0xcf7   :  { %v1278_v40 = vmul.f32 %v2334_v61, %v1277_v39 }
 0xcf9   :  { %v1282_v41 = vsel %vm1281_vm12, %v2334_v61, %v1278_v40 }
 0xcfa   :  { %v1284_v42 = vmul.f32 %v1282_v41, %v1260_v29 }
 0xcfc   :  { %v1287_v43 = vmul.f32 %v1285_v14, %v1284_v42  ;;  %v23_v14 = vld [vmem:[%s3061_s1] sm:$0x1]  ;;  %s2408_s1 = smov [#allocation2]  }
 0xcfd   :  { %vm25_vm5 = vcmp.gt.f32.partialorder %v23_v14, -5000.0  ;;  %s2092_s16 = sshll.u32 %s2408_s1, 4  ;;  %s2093_s16 = int_to_ptr.vmem [resolvable:$true] %s2092_s16 }
 0xcfe   :  { %v1290_v44 = vadd.f32 %v1288_v32, %v1287_v43 }
 0xd00   :  { %2169 = vmatmul.msk.f32.gmra.mxu1 %vm70_vm8, %v1290_v44 }
 0xd6d   :  { %v1322_v46 = vpop.f32.mrf.mxu1 }
 0xd6e   :  { %v1352_v47 = vadd.f32 %v1351_v11, %v1322_v46 }
 0xd70   :  { %v1359_v48 = vadd.f32 %v2272_v45, %v1352_v47 }
 0xd72   :  { %v2172_v49 = vmul.f32 -1.442695, %v1359_v48 }
 0xd74   :  { %2335 = vpow2.f32 %v2172_v49 }
 0xd7a   :  { %v2336_v50 = vpop.eup %2335 }
 0xd7b   :  { %v1367_v51 = vadd.f32 1.0, %v2336_v50 }
 0xd7d   :  { %2337 = vrcp.f32 %v1367_v51  ;;  %v1325_v53 = vpop.f32.mrf.mxu1  ;;  %v1380_v59 = vand.u32 2147483648, %v1367_v51  ;;  %v1378_v60 = vand.u32 2147483647, %v1367_v51  ;;  %vm1374_vm14 = vweird.f32 %v1367_v51 }
 0xd7e   :  { %v1355_v17 = vadd.f32 %v1354_v52, %v1325_v53 }
 0xd7f   :  { %v1381_v1 = vor.u32 1.1754944e-38, %v1380_v59  ;;  %vm1379_vm0 = vcmp.eq.f32.partialorder %v1378_v60, 8.507059e+37 }
 0xd80   :  { %v1360_v54 = vadd.f32 %v2272_v45, %v1355_v17 }
 0xd82   :  { %v2173_v55 = vmul.f32 -1.442695, %v1360_v54 }
 0xd83   :  { %v2338_v56 = vpop.eup %2337 }
 0xd84   :  { %v1370_v57 = vmul.f32 %v2338_v56, %v1367_v51  ;;  %2339 = vpow2.f32 %v2173_v55  ;;  %vm1375_vm13 = vweird.f32 %v2338_v56 }
 0xd85   :  { %vm1376_vm15 = vmor %vm1374_vm14, %vm1375_vm13 }
 0xd86   :  { %v1371_v58 = vsub.f32 1.0, %v1370_v57 }
 0xd88   :  { %v1372_v33 = vmul.f32 %v2338_v56, %v1371_v58 }
 0xd8a   :  { %v2340_v63 = vpop.eup %2339  ;;  %v1373_v0 = vadd.f32 %v2338_v56, %v1372_v33 }
 0xd8b   :  { %v1368_v2 = vadd.f32 1.0, %v2340_v63 }
 0xd8c   :  { %v1377_v3 = vsel %vm1376_vm15, %v2338_v56, %v1373_v0 }
 0xd8d   :  { %2341 = vrcp.f32 %v1368_v2  ;;  %v1382_v4 = vsel %vm1379_vm0, %v1381_v1, %v1377_v3  ;;  %v1395_v16 = vand.u32 2147483648, %v1368_v2  ;;  %v1393_v19 = vand.u32 2147483647, %v1368_v2 }
 0xd8e   :  { %v1401_v5 = vsub.f32 1.0, %v1382_v4  ;;  %v1399_v6 = vmul.f32 %v2844_v62, %v1382_v4  ;;  %vm1389_vm2 = vweird.f32 %v1368_v2 }
 0xd8f   :  { %v1396_v20 = vor.u32 1.1754944e-38, %v1395_v16  ;;  %vm1394_vm4 = vcmp.eq.f32.partialorder %v1393_v19, 8.507059e+37 }
 0xd90   :  { %v1403_v7 = vmul.f32 %v1401_v5, %v1289_v35 }
 0xd92   :  { %v1405_v9 = vadd.f32 %v1403_v7, %v1399_v6 }
 0xd93   :  { %v2342_v10 = vpop.eup %2341 }
 0xd94   :  { %v1385_v12 = vmul.f32 %v2342_v10, %v1368_v2  ;;  %2174 = vmatpush.xpose.msk.msra.mxu0 %vm70_vm8, %v1405_v9  ;;  %1407 = vst.msk [vmem:[#allocation2] sm:$0xff] %vm70_vm8, %v1405_v9  ;;  %vm1390_vm1 = vweird.f32 %v2342_v10 }
 0xd95   :  { %vm1391_vm3 = vmor %vm1389_vm2, %vm1390_vm1 }
 0xd96   :  { %v1386_v15 = vsub.f32 1.0, %v1385_v12 }
 0xd97   :  { %2175 = vmatmul.msk.f32.vlgmr.msra.gmra.mxu0 %vm70_vm8, %v1409_v13 }
 0xd98   :  { %v1387_v18 = vmul.f32 %v2342_v10, %v1386_v15 }
 0xd9a   :  { %v1388_v62 = vadd.f32 %v2342_v10, %v1387_v18 }
 0xd9c   :  { %v1392_v21 = vsel %vm1391_vm3, %v2342_v10, %v1388_v62 }
 0xd9d   :  { %v1397_v22 = vsel %vm1394_vm4, %v1396_v20, %v1392_v21 }
 0xd9e   :  { %v1402_v23 = vsub.f32 1.0, %v1397_v22  ;;  %v1400_v24 = vmul.f32 %v2862_v8, %v1397_v22  ;;  %v1479_v8 = vpop.permute.xlu1 %1478 }
 0xda0   :  { %v1404_v25 = vmul.f32 %v1402_v23, %v1290_v44 }
 0xda2   :  { %v1406_v26 = vadd.f32 %v1404_v25, %v1400_v24 }
 0xda4   :  { %2176 = vmatpush.xpose.msk.msrb.mxu0 %vm70_vm8, %v1406_v26  ;;  %1408 = vst.msk [vmem:[#allocation2 + $0x8] sm:$0xff] %vm70_vm8, %v1406_v26 }
 0xda5   :  { %2100 = dma.vmem_to_hbm [thread:$0]  %s2093_s16, 256, %s2095_s19, [#allocation3], %s2409_s20, %s2409_s20, %s2410_s21  }
 0xda7   :  { %2177 = vmatmul.msk.f32.vlgmr.msrb.gmra.mxu0 %vm70_vm8, %v1409_v13  ;;  %vm26_vm8 = vcmp.gt.f32.partialorder %v24_v38, -5000.0 }
 0xe14   :  { %v1434_v27 = vpop.f32.mrf.mxu0 }
 0xe15   :  { %1462 = vperm.xlu2 %2260, %v1434_v27   ;;  %v1470_v30 = vrot.slane %v1434_v27, 1 }
 0xe24   :  { %v1457_v28 = vpop.f32.mrf.mxu0 }
 0xe25   :  { %1467 = vperm.xlu0 %2243, %v1457_v28   ;;  %v1471_v34 = vrot.slane %v1457_v28, 1 }
 0xe6f   :  { %v1463_v31 = vpop.permute.xlu2 %1462 }
 0xe70   :  { %v1474_v32 = vadd.f32 %v1470_v30, %v1463_v31 }
 0xe72   :  { %v1481_v37 = vadd.f32 %v1479_v8, %v1474_v32 }
 0xe74   :  { %v1483_v61 = vsel %vm25_vm5, %v1481_v37, -9e+15 }
 0xe75   :  { %v2891_v35 = vmul.f32 0.5, %v1483_v61 }
 0xe77   :  { %v1488_v36 = vsel %vm1487_vm6, %v2891_v35, -inf }
 0xe78   :  { %1489 = vmax.xlane.f32.xlu2 %v1488_v36 }
 0xe97   :  { %v1468_v39 = vpop.permute.xlu0 %1467 }
 0xe98   :  { %v1475_v40 = vadd.f32 %v1471_v34, %v1468_v39 }
 0xe9a   :  { %v1482_v29 = vadd.f32 %v1479_v8, %v1475_v40 }
 0xe9c   :  { %v1484_v41 = vsel %vm26_vm8, %v1482_v29, -9e+15 }
 0xe9d   :  { %v2898_v42 = vmul.f32 0.5, %v1484_v41 }
 0xe9f   :  { %v1491_v43 = vsel %vm1487_vm6, %v2898_v42, -inf }
 0xea0   :  { %1492 = vmax.xlane.f32.xlu0 %v1491_v43 }
 0xeeb   :  { %v1490_v44 = vpop.xlane.xlu2 %1489 }
 0xeec   :  { %v2178_v11 = vadd.f32 -1.0, %v1490_v44  ;;  %v2180_v45 = vadd.f32 -0.35355338, %v1490_v44 }
 0xeee   :  { %v1512_v46 = vsub.f32 %v2180_v45, %v2178_v11  ;;  %v1498_v47 = vsub.f32 %v2891_v35, %v2178_v11 }
 0xef0   :  { %v1514_v48 = vmul.f32 0.5, %v1512_v46  ;;  %v1500_v49 = vmax.f32 %v1498_v47, 0.0 }
 0xef2   :  { %v1502_v50 = vmul.f32 %v1500_v49, %v1500_v49  ;;  %v1516_v51 = vadd.f32 %v2178_v11, %v1514_v48  ;;  %v1538_v15 = vmul.f32 0.5, %v1514_v48 }
 0xef4   :  { %v1504_v52 = vsel %vm1487_vm6, %v1502_v50, 0.0  ;;  %v1518_v53 = vsub.f32 %v2891_v35, %v1516_v51  ;;  %v1562_v38 = vmul.f32 0.5, %v1538_v15 }
 0xef5   :  { %1505 = vadd.xlane.f32.xlu1 %v1504_v52 }
 0xef6   :  { %v1520_v17 = vmax.f32 %v1518_v53, 0.0 }
 0xef8   :  { %v1522_v54 = vmul.f32 %v1520_v17, %v1520_v17 }
 0xefa   :  { %v1524_v55 = vsel %vm1487_vm6, %v1522_v54, 0.0 }
 0xefb   :  { %1525 = vadd.xlane.f32.xlu0 %v1524_v55  ;;  %v1586_v55 = vmul.f32 0.5, %v1562_v38 }
 0xf13   :  { %v1493_v56 = vpop.xlane.xlu0 %1492 }
 0xf14   :  { %v2179_v57 = vadd.f32 -1.0, %v1493_v56  ;;  %v2181_v58 = vadd.f32 -0.35355338, %v1493_v56 }
 0xf16   :  { %v1513_v59 = vsub.f32 %v2181_v58, %v2179_v57  ;;  %v1499_v33 = vsub.f32 %v2898_v42, %v2179_v57 }
 0xf18   :  { %v1515_v60 = vmul.f32 0.5, %v1513_v59  ;;  %v1501_v63 = vmax.f32 %v1499_v33, 0.0 }
 0xf1a   :  { %v1503_v0 = vmul.f32 %v1501_v63, %v1501_v63  ;;  %v1517_v1 = vadd.f32 %v2179_v57, %v1515_v60  ;;  %v1539_v27 = vmul.f32 0.5, %v1515_v60 }
 0xf1c   :  { %v1507_v2 = vsel %vm1487_vm6, %v1503_v0, 0.0  ;;  %v1519_v3 = vsub.f32 %v2898_v42, %v1517_v1  ;;  %v1563_v46 = vmul.f32 0.5, %v1539_v27 }
 0xf1d   :  { %1508 = vadd.xlane.f32.xlu2 %v1507_v2 }
 0xf1e   :  { %v1521_v4 = vmax.f32 %v1519_v3, 0.0  ;;  %v1587_v2 = vmul.f32 0.5, %v1563_v46 }
 0xf20   :  { %v1523_v5 = vmul.f32 %v1521_v4, %v1521_v4 }
 0xf22   :  { %v1527_v6 = vsel %vm1487_vm6, %v1523_v5, 0.0 }
 0xf25   :  { %1528 = vadd.xlane.f32.xlu2 %v1527_v6 }
 0xf68   :  { %v1506_v7 = vpop.xlane.xlu1 %1505 }
 0xf69   :  { %v2910_v10 = vadd.f32 -1.0, %v1506_v7 }
 0xf6e   :  { %v1526_v9 = vpop.xlane.xlu0 %1525 }
 0xf6f   :  { %v2184_v12 = vadd.f32 -1.0, %v1526_v9 }
 0xf71   :  { %v1532_v13 = vmul.f32 %v2184_v12, %v2910_v10 }
 0xf73   :  { %vm1534_vm7 = vcmp.ge.f32.partialorder %v1532_v13, 0.0 }
 0xf74   :  { %v1536_v16 = vsel %vm1534_vm7, %v1516_v51, %v2178_v11 }
 0xf75   :  { %v1540_v18 = vadd.f32 %v1538_v15, %v1536_v16 }
 0xf77   :  { %v1542_v19 = vsub.f32 %v2891_v35, %v1540_v18 }
 0xf79   :  { %v1544_v62 = vmax.f32 %v1542_v19, 0.0 }
 0xf7b   :  { %v1546_v20 = vmul.f32 %v1544_v62, %v1544_v62 }
 0xf7d   :  { %v1548_v21 = vsel %vm1487_vm6, %v1546_v20, 0.0 }
 0xf7e   :  { %1549 = vadd.xlane.f32.xlu0 %v1548_v21 }
 0xf90   :  { %v1509_v22 = vpop.xlane.xlu2 %1508 }
 0xf91   :  { %v2915_v24 = vadd.f32 -1.0, %v1509_v22 }
 0xf98   :  { %v1529_v23 = vpop.xlane.xlu2 %1528 }
 0xf99   :  { %v2185_v25 = vadd.f32 -1.0, %v1529_v23 }
 0xf9b   :  { %v1533_v26 = vmul.f32 %v2185_v25, %v2915_v24 }
 0xf9d   :  { %vm1535_vm9 = vcmp.ge.f32.partialorder %v1533_v26, 0.0 }
 0xf9e   :  { %v1537_v28 = vsel %vm1535_vm9, %v1517_v1, %v2179_v57 }
 0xf9f   :  { %v1541_v14 = vadd.f32 %v1539_v27, %v1537_v28  ;;  %v1611_v27 = vmul.f32 0.5, %v1587_v2 }
 0xfa1   :  { %v1543_v30 = vsub.f32 %v2898_v42, %v1541_v14 }
 0xfa3   :  { %v1545_v31 = vmax.f32 %v1543_v30, 0.0 }
 0xfa5   :  { %v1547_v32 = vmul.f32 %v1545_v31, %v1545_v31 }
 0xfa7   :  { %v1551_v8 = vsel %vm1487_vm6, %v1547_v32, 0.0 }
 0xfa8   :  { %1552 = vadd.xlane.f32.xlu1 %v1551_v8 }
 0xff1   :  { %v1550_v37 = vpop.xlane.xlu0 %1549 }
 0xff2   :  { %v2186_v61 = vadd.f32 -1.0, %v1550_v37 }
 0xff4   :  { %v1556_v36 = vmul.f32 %v2186_v61, %v2910_v10 }
 0xff6   :  { %vm1558_vm10 = vcmp.ge.f32.partialorder %v1556_v36, 0.0 }
 0xff7   :  { %v1560_v34 = vsel %vm1558_vm10, %v1540_v18, %v1536_v16  ;;  %v1610_v16 = vmul.f32 0.5, %v1586_v55 }
 0xff8   :  { %v1564_v39 = vadd.f32 %v1562_v38, %v1560_v34 }
 0xff9   :  { %v1634_v38 = vmul.f32 0.5, %v1610_v16 }
 0xffa   :  { %v1566_v40 = vsub.f32 %v2891_v35, %v1564_v39 }
 0xffc   :  { %v1568_v29 = vmax.f32 %v1566_v40, 0.0 }
 0xffe   :  { %v1570_v41 = vmul.f32 %v1568_v29, %v1568_v29 }
0x1000   :  { %v1572_v43 = vsel %vm1487_vm6, %v1570_v41, 0.0 }
0x1001   :  { %1573 = vadd.xlane.f32.xlu2 %v1572_v43 }
0x101b   :  { %v1553_v44 = vpop.xlane.xlu1 %1552 }
0x101c   :  { %v2187_v11 = vadd.f32 -1.0, %v1553_v44 }
0x101e   :  { %v1557_v45 = vmul.f32 %v2187_v11, %v2915_v24 }
0x1020   :  { %vm1559_vm11 = vcmp.ge.f32.partialorder %v1557_v45, 0.0 }
0x1021   :  { %v1561_v47 = vsel %vm1559_vm11, %v1541_v14, %v1537_v28 }
0x1022   :  { %v1565_v48 = vadd.f32 %v1563_v46, %v1561_v47  ;;  %v1635_v46 = vmul.f32 0.5, %v1611_v27 }
0x1024   :  { %v1567_v49 = vsub.f32 %v2898_v42, %v1565_v48 }
0x1026   :  { %v1569_v50 = vmax.f32 %v1567_v49, 0.0 }
0x1028   :  { %v1571_v51 = vmul.f32 %v1569_v50, %v1569_v50 }
0x102a   :  { %v1575_v52 = vsel %vm1487_vm6, %v1571_v51, 0.0 }
0x102b   :  { %1576 = vadd.xlane.f32.xlu0 %v1575_v52 }
0x1074   :  { %v1574_v53 = vpop.xlane.xlu2 %1573 }
0x1075   :  { %v2188_v17 = vadd.f32 -1.0, %v1574_v53 }
0x1077   :  { %v1580_v54 = vmul.f32 %v2188_v17, %v2910_v10 }
0x1079   :  { %vm1582_vm12 = vcmp.ge.f32.partialorder %v1580_v54, 0.0 }
0x107a   :  { %v1584_v56 = vsel %vm1582_vm12, %v1564_v39, %v1560_v34 }
0x107b   :  { %v1588_v57 = vadd.f32 %v1586_v55, %v1584_v56  ;;  %v1658_v55 = vmul.f32 0.5, %v1634_v38 }
0x107d   :  { %v1590_v58 = vsub.f32 %v2891_v35, %v1588_v57 }
0x107f   :  { %v1592_v59 = vmax.f32 %v1590_v58, 0.0 }
0x1081   :  { %v1594_v33 = vmul.f32 %v1592_v59, %v1592_v59 }
0x1083   :  { %v1596_v60 = vsel %vm1487_vm6, %v1594_v33, 0.0 }
0x1084   :  { %1597 = vadd.xlane.f32.xlu1 %v1596_v60 }
0x109e   :  { %v1577_v63 = vpop.xlane.xlu0 %1576 }
0x109f   :  { %v2189_v0 = vadd.f32 -1.0, %v1577_v63 }
0x10a1   :  { %v1581_v1 = vmul.f32 %v2189_v0, %v2915_v24 }
0x10a3   :  { %vm1583_vm13 = vcmp.ge.f32.partialorder %v1581_v1, 0.0 }
0x10a4   :  { %v1585_v3 = vsel %vm1583_vm13, %v1565_v48, %v1561_v47 }
0x10a5   :  { %v1589_v4 = vadd.f32 %v1587_v2, %v1585_v3  ;;  %v1659_v2 = vmul.f32 0.5, %v1635_v46 }
0x10a7   :  { %v1591_v5 = vsub.f32 %v2898_v42, %v1589_v4 }
0x10a9   :  { %v1593_v6 = vmax.f32 %v1591_v5, 0.0 }
0x10ab   :  { %v1595_v7 = vmul.f32 %v1593_v6, %v1593_v6 }
0x10ad   :  { %v1599_v9 = vsel %vm1487_vm6, %v1595_v7, 0.0 }
0x10ae   :  { %1600 = vadd.xlane.f32.xlu2 %v1599_v9 }
0x10f7   :  { %v1598_v12 = vpop.xlane.xlu1 %1597 }
0x10f8   :  { %v2190_v13 = vadd.f32 -1.0, %v1598_v12 }
0x10fa   :  { %v1604_v15 = vmul.f32 %v2190_v13, %v2910_v10 }
0x10fc   :  { %vm1606_vm14 = vcmp.ge.f32.partialorder %v1604_v15, 0.0 }
0x10fd   :  { %v1608_v18 = vsel %vm1606_vm14, %v1588_v57, %v1584_v56 }
0x10fe   :  { %v1612_v19 = vadd.f32 %v1610_v16, %v1608_v18  ;;  %v1682_v16 = vmul.f32 0.5, %v1658_v55 }
0x1100   :  { %v1614_v62 = vsub.f32 %v2891_v35, %v1612_v19 }
0x1102   :  { %v1616_v20 = vmax.f32 %v1614_v62, 0.0 }
0x1104   :  { %v1618_v21 = vmul.f32 %v1616_v20, %v1616_v20 }
0x1106   :  { %v1620_v22 = vsel %vm1487_vm6, %v1618_v21, 0.0 }
0x1107   :  { %1621 = vadd.xlane.f32.xlu0 %v1620_v22 }
0x1121   :  { %v1601_v23 = vpop.xlane.xlu2 %1600 }
0x1122   :  { %v2191_v25 = vadd.f32 -1.0, %v1601_v23 }
0x1124   :  { %v1605_v26 = vmul.f32 %v2191_v25, %v2915_v24 }
0x1126   :  { %vm1607_vm15 = vcmp.ge.f32.partialorder %v1605_v26, 0.0 }
0x1127   :  { %v1609_v28 = vsel %vm1607_vm15, %v1589_v4, %v1585_v3 }
0x1128   :  { %v1613_v14 = vadd.f32 %v1611_v27, %v1609_v28  ;;  %v1683_v27 = vmul.f32 0.5, %v1659_v2 }
0x112a   :  { %v1615_v30 = vsub.f32 %v2898_v42, %v1613_v14 }
0x112c   :  { %v1617_v31 = vmax.f32 %v1615_v30, 0.0 }
0x112e   :  { %v1619_v32 = vmul.f32 %v1617_v31, %v1617_v31 }
0x1130   :  { %v1623_v8 = vsel %vm1487_vm6, %v1619_v32, 0.0 }
0x1131   :  { %1624 = vadd.xlane.f32.xlu1 %v1623_v8 }
0x117a   :  { %v1622_v37 = vpop.xlane.xlu0 %1621 }
0x117b   :  { %v2192_v61 = vadd.f32 -1.0, %v1622_v37 }
0x117d   :  { %v1628_v36 = vmul.f32 %v2192_v61, %v2910_v10 }
0x117f   :  { %vm1630_vm0 = vcmp.ge.f32.partialorder %v1628_v36, 0.0 }
0x1180   :  { %v1632_v34 = vsel %vm1630_vm0, %v1612_v19, %v1608_v18 }
0x1181   :  { %v1636_v39 = vadd.f32 %v1634_v38, %v1632_v34  ;;  %v1706_v38 = vmul.f32 0.5, %v1682_v16 }
0x1183   :  { %v1638_v40 = vsub.f32 %v2891_v35, %v1636_v39 }
0x1185   :  { %v1640_v29 = vmax.f32 %v1638_v40, 0.0 }
0x1187   :  { %v1642_v41 = vmul.f32 %v1640_v29, %v1640_v29 }
0x1189   :  { %v1644_v43 = vsel %vm1487_vm6, %v1642_v41, 0.0 }
0x118a   :  { %1645 = vadd.xlane.f32.xlu2 %v1644_v43 }
0x11a4   :  { %v1625_v44 = vpop.xlane.xlu1 %1624 }
0x11a5   :  { %v2193_v11 = vadd.f32 -1.0, %v1625_v44 }
0x11a7   :  { %v1629_v45 = vmul.f32 %v2193_v11, %v2915_v24 }
0x11a9   :  { %vm1631_vm1 = vcmp.ge.f32.partialorder %v1629_v45, 0.0 }
0x11aa   :  { %v1633_v47 = vsel %vm1631_vm1, %v1613_v14, %v1609_v28 }
0x11ab   :  { %v1637_v48 = vadd.f32 %v1635_v46, %v1633_v47  ;;  %v1707_v46 = vmul.f32 0.5, %v1683_v27 }
0x11ad   :  { %v1639_v49 = vsub.f32 %v2898_v42, %v1637_v48 }
0x11af   :  { %v1641_v50 = vmax.f32 %v1639_v49, 0.0 }
0x11b1   :  { %v1643_v51 = vmul.f32 %v1641_v50, %v1641_v50 }
0x11b3   :  { %v1647_v52 = vsel %vm1487_vm6, %v1643_v51, 0.0 }
0x11b4   :  { %1648 = vadd.xlane.f32.xlu0 %v1647_v52 }
0x11fd   :  { %v1646_v53 = vpop.xlane.xlu2 %1645 }
0x11fe   :  { %v2194_v17 = vadd.f32 -1.0, %v1646_v53 }
0x1200   :  { %v1652_v54 = vmul.f32 %v2194_v17, %v2910_v10 }
0x1202   :  { %vm1654_vm2 = vcmp.ge.f32.partialorder %v1652_v54, 0.0 }
0x1203   :  { %v1656_v56 = vsel %vm1654_vm2, %v1636_v39, %v1632_v34 }
0x1204   :  { %v1660_v57 = vadd.f32 %v1658_v55, %v1656_v56  ;;  %v1730_v55 = vmul.f32 0.5, %v1706_v38 }
0x1206   :  { %v1662_v58 = vsub.f32 %v2891_v35, %v1660_v57 }
0x1208   :  { %v1664_v59 = vmax.f32 %v1662_v58, 0.0 }
0x120a   :  { %v1666_v33 = vmul.f32 %v1664_v59, %v1664_v59 }
0x120c   :  { %v1668_v60 = vsel %vm1487_vm6, %v1666_v33, 0.0 }
0x120d   :  { %1669 = vadd.xlane.f32.xlu1 %v1668_v60 }
0x1227   :  { %v1649_v63 = vpop.xlane.xlu0 %1648 }
0x1228   :  { %v2195_v0 = vadd.f32 -1.0, %v1649_v63 }
0x122a   :  { %v1653_v1 = vmul.f32 %v2195_v0, %v2915_v24 }
0x122c   :  { %vm1655_vm3 = vcmp.ge.f32.partialorder %v1653_v1, 0.0 }
0x122d   :  { %v1657_v3 = vsel %vm1655_vm3, %v1637_v48, %v1633_v47 }
0x122e   :  { %v1661_v4 = vadd.f32 %v1659_v2, %v1657_v3  ;;  %v1731_v2 = vmul.f32 0.5, %v1707_v46 }
0x1230   :  { %v1663_v5 = vsub.f32 %v2898_v42, %v1661_v4 }
0x1232   :  { %v1665_v6 = vmax.f32 %v1663_v5, 0.0 }
0x1234   :  { %v1667_v7 = vmul.f32 %v1665_v6, %v1665_v6 }
0x1236   :  { %v1671_v9 = vsel %vm1487_vm6, %v1667_v7, 0.0 }
0x1237   :  { %1672 = vadd.xlane.f32.xlu2 %v1671_v9 }
0x1280   :  { %v1670_v12 = vpop.xlane.xlu1 %1669 }
0x1281   :  { %v2196_v13 = vadd.f32 -1.0, %v1670_v12 }
0x1283   :  { %v1676_v15 = vmul.f32 %v2196_v13, %v2910_v10 }
0x1285   :  { %vm1678_vm4 = vcmp.ge.f32.partialorder %v1676_v15, 0.0 }
0x1286   :  { %v1680_v18 = vsel %vm1678_vm4, %v1660_v57, %v1656_v56 }
0x1287   :  { %v1684_v19 = vadd.f32 %v1682_v16, %v1680_v18  ;;  %v1754_v16 = vmul.f32 0.5, %v1730_v55 }
0x1289   :  { %v1686_v62 = vsub.f32 %v2891_v35, %v1684_v19 }
0x128b   :  { %v1688_v20 = vmax.f32 %v1686_v62, 0.0 }
0x128d   :  { %v1690_v21 = vmul.f32 %v1688_v20, %v1688_v20 }
0x128f   :  { %v1692_v22 = vsel %vm1487_vm6, %v1690_v21, 0.0 }
0x1290   :  { %1693 = vadd.xlane.f32.xlu0 %v1692_v22 }
0x12aa   :  { %v1673_v23 = vpop.xlane.xlu2 %1672 }
0x12ab   :  { %v2197_v25 = vadd.f32 -1.0, %v1673_v23 }
0x12ad   :  { %v1677_v26 = vmul.f32 %v2197_v25, %v2915_v24 }
0x12af   :  { %vm1679_vm5 = vcmp.ge.f32.partialorder %v1677_v26, 0.0 }
0x12b0   :  { %v1681_v28 = vsel %vm1679_vm5, %v1661_v4, %v1657_v3 }
0x12b1   :  { %v1685_v14 = vadd.f32 %v1683_v27, %v1681_v28  ;;  %v1755_v27 = vmul.f32 0.5, %v1731_v2 }
0x12b3   :  { %v1687_v30 = vsub.f32 %v2898_v42, %v1685_v14 }
0x12b5   :  { %v1689_v31 = vmax.f32 %v1687_v30, 0.0 }
0x12b7   :  { %v1691_v32 = vmul.f32 %v1689_v31, %v1689_v31 }
0x12b9   :  { %v1695_v8 = vsel %vm1487_vm6, %v1691_v32, 0.0 }
0x12ba   :  { %1696 = vadd.xlane.f32.xlu1 %v1695_v8 }
0x1303   :  { %v1694_v37 = vpop.xlane.xlu0 %1693 }
0x1304   :  { %v2198_v61 = vadd.f32 -1.0, %v1694_v37 }
0x1306   :  { %v1700_v36 = vmul.f32 %v2198_v61, %v2910_v10 }
0x1308   :  { %vm1702_vm8 = vcmp.ge.f32.partialorder %v1700_v36, 0.0 }
0x1309   :  { %v1704_v34 = vsel %vm1702_vm8, %v1684_v19, %v1680_v18 }
0x130a   :  { %v1708_v39 = vadd.f32 %v1706_v38, %v1704_v34  ;;  %v1778_v38 = vmul.f32 0.5, %v1754_v16 }
0x130c   :  { %v1710_v40 = vsub.f32 %v2891_v35, %v1708_v39 }
0x130e   :  { %v1712_v29 = vmax.f32 %v1710_v40, 0.0 }
0x1310   :  { %v1714_v41 = vmul.f32 %v1712_v29, %v1712_v29 }
0x1312   :  { %v1716_v43 = vsel %vm1487_vm6, %v1714_v41, 0.0 }
0x1313   :  { %1717 = vadd.xlane.f32.xlu2 %v1716_v43 }
0x132d   :  { %v1697_v44 = vpop.xlane.xlu1 %1696 }
0x132e   :  { %v2199_v11 = vadd.f32 -1.0, %v1697_v44 }
0x1330   :  { %v1701_v45 = vmul.f32 %v2199_v11, %v2915_v24 }
0x1332   :  { %vm1703_vm7 = vcmp.ge.f32.partialorder %v1701_v45, 0.0 }
0x1333   :  { %v1705_v47 = vsel %vm1703_vm7, %v1685_v14, %v1681_v28 }
0x1334   :  { %v1709_v48 = vadd.f32 %v1707_v46, %v1705_v47  ;;  %v1779_v46 = vmul.f32 0.5, %v1755_v27 }
0x1336   :  { %v1711_v49 = vsub.f32 %v2898_v42, %v1709_v48 }
0x1338   :  { %v1713_v50 = vmax.f32 %v1711_v49, 0.0 }
0x133a   :  { %v1715_v51 = vmul.f32 %v1713_v50, %v1713_v50 }
0x133c   :  { %v1719_v52 = vsel %vm1487_vm6, %v1715_v51, 0.0 }
0x133d   :  { %1720 = vadd.xlane.f32.xlu0 %v1719_v52 }
0x1386   :  { %v1718_v53 = vpop.xlane.xlu2 %1717 }
0x1387   :  { %v2200_v17 = vadd.f32 -1.0, %v1718_v53 }
0x1389   :  { %v1724_v54 = vmul.f32 %v2200_v17, %v2910_v10 }
0x138b   :  { %vm1726_vm9 = vcmp.ge.f32.partialorder %v1724_v54, 0.0 }
0x138c   :  { %v1728_v56 = vsel %vm1726_vm9, %v1708_v39, %v1704_v34 }
0x138d   :  { %v1732_v57 = vadd.f32 %v1730_v55, %v1728_v56  ;;  %v1802_v55 = vmul.f32 0.5, %v1778_v38 }
0x138f   :  { %v1734_v58 = vsub.f32 %v2891_v35, %v1732_v57 }
0x1391   :  { %v1736_v59 = vmax.f32 %v1734_v58, 0.0 }
0x1393   :  { %v1738_v33 = vmul.f32 %v1736_v59, %v1736_v59 }
0x1395   :  { %v1740_v60 = vsel %vm1487_vm6, %v1738_v33, 0.0 }
0x1396   :  { %1741 = vadd.xlane.f32.xlu1 %v1740_v60 }
0x13b0   :  { %v1721_v63 = vpop.xlane.xlu0 %1720 }
0x13b1   :  { %v2201_v0 = vadd.f32 -1.0, %v1721_v63 }
0x13b3   :  { %v1725_v1 = vmul.f32 %v2201_v0, %v2915_v24 }
0x13b5   :  { %vm1727_vm10 = vcmp.ge.f32.partialorder %v1725_v1, 0.0 }
0x13b6   :  { %v1729_v3 = vsel %vm1727_vm10, %v1709_v48, %v1705_v47 }
0x13b7   :  { %v1733_v4 = vadd.f32 %v1731_v2, %v1729_v3  ;;  %v1803_v2 = vmul.f32 0.5, %v1779_v46 }
0x13b9   :  { %v1735_v5 = vsub.f32 %v2898_v42, %v1733_v4 }
0x13bb   :  { %v1737_v6 = vmax.f32 %v1735_v5, 0.0 }
0x13bd   :  { %v1739_v7 = vmul.f32 %v1737_v6, %v1737_v6 }
0x13bf   :  { %v1743_v9 = vsel %vm1487_vm6, %v1739_v7, 0.0 }
0x13c0   :  { %1744 = vadd.xlane.f32.xlu2 %v1743_v9 }
0x1409   :  { %v1742_v12 = vpop.xlane.xlu1 %1741 }
0x140a   :  { %v2202_v13 = vadd.f32 -1.0, %v1742_v12 }
0x140c   :  { %v1748_v15 = vmul.f32 %v2202_v13, %v2910_v10 }
0x140e   :  { %vm1750_vm11 = vcmp.ge.f32.partialorder %v1748_v15, 0.0 }
0x140f   :  { %v1752_v18 = vsel %vm1750_vm11, %v1732_v57, %v1728_v56 }
0x1410   :  { %v1756_v19 = vadd.f32 %v1754_v16, %v1752_v18  ;;  %v1826_v16 = vmul.f32 0.5, %v1802_v55 }
0x1412   :  { %v1758_v62 = vsub.f32 %v2891_v35, %v1756_v19 }
0x1414   :  { %v1760_v20 = vmax.f32 %v1758_v62, 0.0 }
0x1416   :  { %v1762_v21 = vmul.f32 %v1760_v20, %v1760_v20 }
0x1418   :  { %v1764_v22 = vsel %vm1487_vm6, %v1762_v21, 0.0 }
0x1419   :  { %1765 = vadd.xlane.f32.xlu0 %v1764_v22 }
0x1433   :  { %v1745_v23 = vpop.xlane.xlu2 %1744 }
0x1434   :  { %v2203_v25 = vadd.f32 -1.0, %v1745_v23 }
0x1436   :  { %v1749_v26 = vmul.f32 %v2203_v25, %v2915_v24 }
0x1438   :  { %vm1751_vm12 = vcmp.ge.f32.partialorder %v1749_v26, 0.0 }
0x1439   :  { %v1753_v28 = vsel %vm1751_vm12, %v1733_v4, %v1729_v3 }
0x143a   :  { %v1757_v14 = vadd.f32 %v1755_v27, %v1753_v28  ;;  %v1827_v27 = vmul.f32 0.5, %v1803_v2 }
0x143c   :  { %v1759_v30 = vsub.f32 %v2898_v42, %v1757_v14 }
0x143e   :  { %v1761_v31 = vmax.f32 %v1759_v30, 0.0 }
0x1440   :  { %v1763_v32 = vmul.f32 %v1761_v31, %v1761_v31 }
0x1442   :  { %v1767_v8 = vsel %vm1487_vm6, %v1763_v32, 0.0 }
0x1443   :  { %1768 = vadd.xlane.f32.xlu1 %v1767_v8 }
0x148c   :  { %v1766_v37 = vpop.xlane.xlu0 %1765 }
0x148d   :  { %v2204_v61 = vadd.f32 -1.0, %v1766_v37 }
0x148f   :  { %v1772_v36 = vmul.f32 %v2204_v61, %v2910_v10 }
0x1491   :  { %vm1774_vm13 = vcmp.ge.f32.partialorder %v1772_v36, 0.0 }
0x1492   :  { %v1776_v34 = vsel %vm1774_vm13, %v1756_v19, %v1752_v18 }
0x1493   :  { %v1780_v39 = vadd.f32 %v1778_v38, %v1776_v34  ;;  %v1850_v38 = vmul.f32 0.5, %v1826_v16 }
0x1495   :  { %v1782_v40 = vsub.f32 %v2891_v35, %v1780_v39 }
0x1497   :  { %v1784_v29 = vmax.f32 %v1782_v40, 0.0 }
0x1499   :  { %v1786_v41 = vmul.f32 %v1784_v29, %v1784_v29 }
0x149b   :  { %v1788_v43 = vsel %vm1487_vm6, %v1786_v41, 0.0 }
0x149c   :  { %1789 = vadd.xlane.f32.xlu2 %v1788_v43 }
0x14b6   :  { %v1769_v44 = vpop.xlane.xlu1 %1768 }
0x14b7   :  { %v2205_v11 = vadd.f32 -1.0, %v1769_v44 }
0x14b9   :  { %v1773_v45 = vmul.f32 %v2205_v11, %v2915_v24 }
0x14bb   :  { %vm1775_vm14 = vcmp.ge.f32.partialorder %v1773_v45, 0.0 }
0x14bc   :  { %v1777_v47 = vsel %vm1775_vm14, %v1757_v14, %v1753_v28 }
0x14bd   :  { %v1781_v48 = vadd.f32 %v1779_v46, %v1777_v47  ;;  %v1851_v46 = vmul.f32 0.5, %v1827_v27 }
0x14bf   :  { %v1783_v49 = vsub.f32 %v2898_v42, %v1781_v48 }
0x14c1   :  { %v1785_v50 = vmax.f32 %v1783_v49, 0.0 }
0x14c3   :  { %v1787_v51 = vmul.f32 %v1785_v50, %v1785_v50 }
0x14c5   :  { %v1791_v52 = vsel %vm1487_vm6, %v1787_v51, 0.0 }
0x14c6   :  { %1792 = vadd.xlane.f32.xlu0 %v1791_v52 }
0x150f   :  { %v1790_v53 = vpop.xlane.xlu2 %1789 }
0x1510   :  { %v2206_v17 = vadd.f32 -1.0, %v1790_v53 }
0x1512   :  { %v1796_v54 = vmul.f32 %v2206_v17, %v2910_v10 }
0x1514   :  { %vm1798_vm15 = vcmp.ge.f32.partialorder %v1796_v54, 0.0 }
0x1515   :  { %v1800_v56 = vsel %vm1798_vm15, %v1780_v39, %v1776_v34 }
0x1516   :  { %v1804_v57 = vadd.f32 %v1802_v55, %v1800_v56  ;;  %v1874_v55 = vmul.f32 0.5, %v1850_v38 }
0x1518   :  { %v1806_v58 = vsub.f32 %v2891_v35, %v1804_v57 }
0x151a   :  { %v1808_v59 = vmax.f32 %v1806_v58, 0.0 }
0x151c   :  { %v1810_v33 = vmul.f32 %v1808_v59, %v1808_v59 }
0x151e   :  { %v1812_v60 = vsel %vm1487_vm6, %v1810_v33, 0.0 }
0x151f   :  { %1813 = vadd.xlane.f32.xlu1 %v1812_v60 }
0x1539   :  { %v1793_v63 = vpop.xlane.xlu0 %1792 }
0x153a   :  { %v2207_v0 = vadd.f32 -1.0, %v1793_v63 }
0x153c   :  { %v1797_v1 = vmul.f32 %v2207_v0, %v2915_v24 }
0x153e   :  { %vm1799_vm0 = vcmp.ge.f32.partialorder %v1797_v1, 0.0 }
0x153f   :  { %v1801_v3 = vsel %vm1799_vm0, %v1781_v48, %v1777_v47 }
0x1540   :  { %v1805_v4 = vadd.f32 %v1803_v2, %v1801_v3  ;;  %v1875_v2 = vmul.f32 0.5, %v1851_v46 }
0x1542   :  { %v1807_v5 = vsub.f32 %v2898_v42, %v1805_v4 }
0x1544   :  { %v1809_v6 = vmax.f32 %v1807_v5, 0.0 }
0x1546   :  { %v1811_v7 = vmul.f32 %v1809_v6, %v1809_v6 }
0x1548   :  { %v1815_v9 = vsel %vm1487_vm6, %v1811_v7, 0.0 }
0x1549   :  { %1816 = vadd.xlane.f32.xlu2 %v1815_v9 }
0x1592   :  { %v1814_v12 = vpop.xlane.xlu1 %1813 }
0x1593   :  { %v2208_v13 = vadd.f32 -1.0, %v1814_v12 }
0x1595   :  { %v1820_v15 = vmul.f32 %v2208_v13, %v2910_v10 }
0x1597   :  { %vm1822_vm1 = vcmp.ge.f32.partialorder %v1820_v15, 0.0 }
0x1598   :  { %v1824_v18 = vsel %vm1822_vm1, %v1804_v57, %v1800_v56 }
0x1599   :  { %v1828_v19 = vadd.f32 %v1826_v16, %v1824_v18  ;;  %v1898_v16 = vmul.f32 0.5, %v1874_v55 }
0x159b   :  { %v1830_v62 = vsub.f32 %v2891_v35, %v1828_v19 }
0x159d   :  { %v1832_v20 = vmax.f32 %v1830_v62, 0.0 }
0x159f   :  { %v1834_v21 = vmul.f32 %v1832_v20, %v1832_v20 }
0x15a1   :  { %v1836_v22 = vsel %vm1487_vm6, %v1834_v21, 0.0 }
0x15a2   :  { %1837 = vadd.xlane.f32.xlu0 %v1836_v22 }
0x15bc   :  { %v1817_v23 = vpop.xlane.xlu2 %1816 }
0x15bd   :  { %v2209_v25 = vadd.f32 -1.0, %v1817_v23 }
0x15bf   :  { %v1821_v26 = vmul.f32 %v2209_v25, %v2915_v24 }
0x15c1   :  { %vm1823_vm2 = vcmp.ge.f32.partialorder %v1821_v26, 0.0 }
0x15c2   :  { %v1825_v28 = vsel %vm1823_vm2, %v1805_v4, %v1801_v3 }
0x15c3   :  { %v1829_v14 = vadd.f32 %v1827_v27, %v1825_v28  ;;  %v1899_v27 = vmul.f32 0.5, %v1875_v2 }
0x15c5   :  { %v1831_v30 = vsub.f32 %v2898_v42, %v1829_v14 }
0x15c7   :  { %v1833_v31 = vmax.f32 %v1831_v30, 0.0 }
0x15c9   :  { %v1835_v32 = vmul.f32 %v1833_v31, %v1833_v31 }
0x15cb   :  { %v1839_v8 = vsel %vm1487_vm6, %v1835_v32, 0.0 }
0x15cc   :  { %1840 = vadd.xlane.f32.xlu1 %v1839_v8 }
0x1615   :  { %v1838_v37 = vpop.xlane.xlu0 %1837 }
0x1616   :  { %v2210_v61 = vadd.f32 -1.0, %v1838_v37 }
0x1618   :  { %v1844_v36 = vmul.f32 %v2210_v61, %v2910_v10 }
0x161a   :  { %vm1846_vm3 = vcmp.ge.f32.partialorder %v1844_v36, 0.0 }
0x161b   :  { %v1848_v34 = vsel %vm1846_vm3, %v1828_v19, %v1824_v18 }
0x161c   :  { %v1852_v39 = vadd.f32 %v1850_v38, %v1848_v34  ;;  %v1922_v38 = vmul.f32 0.5, %v1898_v16 }
0x161e   :  { %v1854_v40 = vsub.f32 %v2891_v35, %v1852_v39 }
0x1620   :  { %v1856_v29 = vmax.f32 %v1854_v40, 0.0 }
0x1622   :  { %v1858_v41 = vmul.f32 %v1856_v29, %v1856_v29 }
0x1624   :  { %v1860_v43 = vsel %vm1487_vm6, %v1858_v41, 0.0 }
0x1625   :  { %1861 = vadd.xlane.f32.xlu2 %v1860_v43 }
0x163f   :  { %v1841_v44 = vpop.xlane.xlu1 %1840 }
0x1640   :  { %v2211_v11 = vadd.f32 -1.0, %v1841_v44 }
0x1642   :  { %v1845_v45 = vmul.f32 %v2211_v11, %v2915_v24 }
0x1644   :  { %vm1847_vm4 = vcmp.ge.f32.partialorder %v1845_v45, 0.0 }
0x1645   :  { %v1849_v47 = vsel %vm1847_vm4, %v1829_v14, %v1825_v28 }
0x1646   :  { %v1853_v48 = vadd.f32 %v1851_v46, %v1849_v47  ;;  %v1923_v46 = vmul.f32 0.5, %v1899_v27 }
0x1648   :  { %v1855_v49 = vsub.f32 %v2898_v42, %v1853_v48 }
0x164a   :  { %v1857_v50 = vmax.f32 %v1855_v49, 0.0 }
0x164c   :  { %v1859_v51 = vmul.f32 %v1857_v50, %v1857_v50 }
0x164e   :  { %v1863_v52 = vsel %vm1487_vm6, %v1859_v51, 0.0 }
0x164f   :  { %1864 = vadd.xlane.f32.xlu0 %v1863_v52 }
0x1698   :  { %v1862_v53 = vpop.xlane.xlu2 %1861 }
0x1699   :  { %v2212_v17 = vadd.f32 -1.0, %v1862_v53 }
0x169b   :  { %v1868_v54 = vmul.f32 %v2212_v17, %v2910_v10 }
0x169d   :  { %vm1870_vm5 = vcmp.ge.f32.partialorder %v1868_v54, 0.0 }
0x169e   :  { %v1872_v56 = vsel %vm1870_vm5, %v1852_v39, %v1848_v34 }
0x169f   :  { %v1876_v57 = vadd.f32 %v1874_v55, %v1872_v56  ;;  %v1946_v55 = vmul.f32 0.5, %v1922_v38 }
0x16a1   :  { %v1878_v58 = vsub.f32 %v2891_v35, %v1876_v57 }
0x16a3   :  { %v1880_v59 = vmax.f32 %v1878_v58, 0.0 }
0x16a5   :  { %v1882_v33 = vmul.f32 %v1880_v59, %v1880_v59 }
0x16a7   :  { %v1884_v60 = vsel %vm1487_vm6, %v1882_v33, 0.0 }
0x16a8   :  { %1885 = vadd.xlane.f32.xlu1 %v1884_v60 }
0x16c2   :  { %v1865_v63 = vpop.xlane.xlu0 %1864 }
0x16c3   :  { %v2213_v0 = vadd.f32 -1.0, %v1865_v63 }
0x16c5   :  { %v1869_v1 = vmul.f32 %v2213_v0, %v2915_v24 }
0x16c7   :  { %vm1871_vm8 = vcmp.ge.f32.partialorder %v1869_v1, 0.0 }
0x16c8   :  { %v1873_v3 = vsel %vm1871_vm8, %v1853_v48, %v1849_v47 }
0x16c9   :  { %v1877_v4 = vadd.f32 %v1875_v2, %v1873_v3  ;;  %v1947_v2 = vmul.f32 0.5, %v1923_v46 }
0x16cb   :  { %v1879_v5 = vsub.f32 %v2898_v42, %v1877_v4 }
0x16cd   :  { %v1881_v6 = vmax.f32 %v1879_v5, 0.0 }
0x16cf   :  { %v1883_v7 = vmul.f32 %v1881_v6, %v1881_v6 }
0x16d1   :  { %v1887_v9 = vsel %vm1487_vm6, %v1883_v7, 0.0 }
0x16d2   :  { %1888 = vadd.xlane.f32.xlu2 %v1887_v9 }
0x171b   :  { %v1886_v12 = vpop.xlane.xlu1 %1885 }
0x171c   :  { %v2214_v13 = vadd.f32 -1.0, %v1886_v12 }
0x171e   :  { %v1892_v15 = vmul.f32 %v2214_v13, %v2910_v10 }
0x1720   :  { %vm1894_vm7 = vcmp.ge.f32.partialorder %v1892_v15, 0.0 }
0x1721   :  { %v1896_v18 = vsel %vm1894_vm7, %v1876_v57, %v1872_v56 }
0x1722   :  { %v1900_v19 = vadd.f32 %v1898_v16, %v1896_v18  ;;  %v1970_v16 = vmul.f32 0.5, %v1946_v55 }
0x1724   :  { %v1902_v62 = vsub.f32 %v2891_v35, %v1900_v19 }
0x1726   :  { %v1904_v20 = vmax.f32 %v1902_v62, 0.0 }
0x1728   :  { %v1906_v21 = vmul.f32 %v1904_v20, %v1904_v20 }
0x172a   :  { %v1908_v22 = vsel %vm1487_vm6, %v1906_v21, 0.0 }
0x172b   :  { %1909 = vadd.xlane.f32.xlu0 %v1908_v22 }
0x1745   :  { %v1889_v23 = vpop.xlane.xlu2 %1888 }
0x1746   :  { %v2215_v25 = vadd.f32 -1.0, %v1889_v23 }
0x1748   :  { %v1893_v26 = vmul.f32 %v2215_v25, %v2915_v24 }
0x174a   :  { %vm1895_vm9 = vcmp.ge.f32.partialorder %v1893_v26, 0.0 }
0x174b   :  { %v1897_v28 = vsel %vm1895_vm9, %v1877_v4, %v1873_v3 }
0x174c   :  { %v1901_v14 = vadd.f32 %v1899_v27, %v1897_v28  ;;  %v1971_v27 = vmul.f32 0.5, %v1947_v2 }
0x174e   :  { %v1903_v30 = vsub.f32 %v2898_v42, %v1901_v14 }
0x1750   :  { %v1905_v31 = vmax.f32 %v1903_v30, 0.0 }
0x1752   :  { %v1907_v32 = vmul.f32 %v1905_v31, %v1905_v31 }
0x1754   :  { %v1911_v8 = vsel %vm1487_vm6, %v1907_v32, 0.0 }
0x1755   :  { %1912 = vadd.xlane.f32.xlu1 %v1911_v8 }
0x179e   :  { %v1910_v37 = vpop.xlane.xlu0 %1909 }
0x179f   :  { %v2216_v61 = vadd.f32 -1.0, %v1910_v37 }
0x17a1   :  { %v1916_v36 = vmul.f32 %v2216_v61, %v2910_v10 }
0x17a3   :  { %vm1918_vm10 = vcmp.ge.f32.partialorder %v1916_v36, 0.0 }
0x17a4   :  { %v1920_v34 = vsel %vm1918_vm10, %v1900_v19, %v1896_v18 }
0x17a5   :  { %v1924_v39 = vadd.f32 %v1922_v38, %v1920_v34  ;;  %v1994_v38 = vmul.f32 0.5, %v1970_v16 }
0x17a7   :  { %v1926_v40 = vsub.f32 %v2891_v35, %v1924_v39 }
0x17a9   :  { %v1928_v29 = vmax.f32 %v1926_v40, 0.0 }
0x17ab   :  { %v1930_v41 = vmul.f32 %v1928_v29, %v1928_v29 }
0x17ad   :  { %v1932_v43 = vsel %vm1487_vm6, %v1930_v41, 0.0 }
0x17ae   :  { %1933 = vadd.xlane.f32.xlu2 %v1932_v43 }
0x17c8   :  { %v1913_v44 = vpop.xlane.xlu1 %1912 }
0x17c9   :  { %v2217_v11 = vadd.f32 -1.0, %v1913_v44 }
0x17cb   :  { %v1917_v45 = vmul.f32 %v2217_v11, %v2915_v24 }
0x17cd   :  { %vm1919_vm11 = vcmp.ge.f32.partialorder %v1917_v45, 0.0 }
0x17ce   :  { %v1921_v47 = vsel %vm1919_vm11, %v1901_v14, %v1897_v28 }
0x17cf   :  { %v1925_v48 = vadd.f32 %v1923_v46, %v1921_v47  ;;  %v1995_v46 = vmul.f32 0.5, %v1971_v27 }
0x17d1   :  { %v1927_v49 = vsub.f32 %v2898_v42, %v1925_v48 }
0x17d3   :  { %v1929_v50 = vmax.f32 %v1927_v49, 0.0 }
0x17d5   :  { %v1931_v51 = vmul.f32 %v1929_v50, %v1929_v50 }
0x17d7   :  { %v1935_v52 = vsel %vm1487_vm6, %v1931_v51, 0.0 }
0x17d8   :  { %1936 = vadd.xlane.f32.xlu0 %v1935_v52 }
0x1821   :  { %v1934_v53 = vpop.xlane.xlu2 %1933 }
0x1822   :  { %v2218_v17 = vadd.f32 -1.0, %v1934_v53 }
0x1824   :  { %v1940_v54 = vmul.f32 %v2218_v17, %v2910_v10 }
0x1826   :  { %vm1942_vm12 = vcmp.ge.f32.partialorder %v1940_v54, 0.0 }
0x1827   :  { %v1944_v56 = vsel %vm1942_vm12, %v1924_v39, %v1920_v34 }
0x1828   :  { %v1948_v57 = vadd.f32 %v1946_v55, %v1944_v56  ;;  %v2018_v55 = vmul.f32 0.5, %v1994_v38 }
0x182a   :  { %v1950_v58 = vsub.f32 %v2891_v35, %v1948_v57 }
0x182c   :  { %v1952_v59 = vmax.f32 %v1950_v58, 0.0 }
0x182e   :  { %v1954_v33 = vmul.f32 %v1952_v59, %v1952_v59 }
0x1830   :  { %v1956_v60 = vsel %vm1487_vm6, %v1954_v33, 0.0 }
0x1831   :  { %1957 = vadd.xlane.f32.xlu1 %v1956_v60 }
0x184b   :  { %v1937_v63 = vpop.xlane.xlu0 %1936 }
0x184c   :  { %v2219_v0 = vadd.f32 -1.0, %v1937_v63 }
0x184e   :  { %v1941_v1 = vmul.f32 %v2219_v0, %v2915_v24 }
0x1850   :  { %vm1943_vm13 = vcmp.ge.f32.partialorder %v1941_v1, 0.0 }
0x1851   :  { %v1945_v3 = vsel %vm1943_vm13, %v1925_v48, %v1921_v47 }
0x1852   :  { %v1949_v4 = vadd.f32 %v1947_v2, %v1945_v3  ;;  %v2019_v2 = vmul.f32 0.5, %v1995_v46 }
0x1854   :  { %v1951_v5 = vsub.f32 %v2898_v42, %v1949_v4 }
0x1856   :  { %v1953_v6 = vmax.f32 %v1951_v5, 0.0 }
0x1858   :  { %v1955_v7 = vmul.f32 %v1953_v6, %v1953_v6 }
0x185a   :  { %v1959_v9 = vsel %vm1487_vm6, %v1955_v7, 0.0 }
0x185b   :  { %1960 = vadd.xlane.f32.xlu2 %v1959_v9 }
0x18a4   :  { %v1958_v12 = vpop.xlane.xlu1 %1957 }
0x18a5   :  { %v2220_v13 = vadd.f32 -1.0, %v1958_v12 }
0x18a7   :  { %v1964_v15 = vmul.f32 %v2220_v13, %v2910_v10 }
0x18a9   :  { %vm1966_vm14 = vcmp.ge.f32.partialorder %v1964_v15, 0.0 }
0x18aa   :  { %v1968_v18 = vsel %vm1966_vm14, %v1948_v57, %v1944_v56 }
0x18ab   :  { %v1972_v19 = vadd.f32 %v1970_v16, %v1968_v18  ;;  %v2042_v16 = vmul.f32 0.5, %v2018_v55 }
0x18ad   :  { %v1974_v62 = vsub.f32 %v2891_v35, %v1972_v19 }
0x18af   :  { %v1976_v20 = vmax.f32 %v1974_v62, 0.0 }
0x18b1   :  { %v1978_v21 = vmul.f32 %v1976_v20, %v1976_v20 }
0x18b3   :  { %v1980_v22 = vsel %vm1487_vm6, %v1978_v21, 0.0 }
0x18b4   :  { %1981 = vadd.xlane.f32.xlu0 %v1980_v22 }
0x18ce   :  { %v1961_v23 = vpop.xlane.xlu2 %1960 }
0x18cf   :  { %v2221_v25 = vadd.f32 -1.0, %v1961_v23 }
0x18d1   :  { %v1965_v26 = vmul.f32 %v2221_v25, %v2915_v24 }
0x18d3   :  { %vm1967_vm15 = vcmp.ge.f32.partialorder %v1965_v26, 0.0 }
0x18d4   :  { %v1969_v28 = vsel %vm1967_vm15, %v1949_v4, %v1945_v3 }
0x18d5   :  { %v1973_v14 = vadd.f32 %v1971_v27, %v1969_v28  ;;  %v2043_v27 = vmul.f32 0.5, %v2019_v2 }
0x18d7   :  { %v1975_v30 = vsub.f32 %v2898_v42, %v1973_v14 }
0x18d9   :  { %v1977_v31 = vmax.f32 %v1975_v30, 0.0 }
0x18db   :  { %v1979_v32 = vmul.f32 %v1977_v31, %v1977_v31 }
0x18dd   :  { %v1983_v8 = vsel %vm1487_vm6, %v1979_v32, 0.0 }
0x18de   :  { %1984 = vadd.xlane.f32.xlu1 %v1983_v8 }
0x1927   :  { %v1982_v37 = vpop.xlane.xlu0 %1981 }
0x1928   :  { %v2222_v61 = vadd.f32 -1.0, %v1982_v37 }
0x192a   :  { %v1988_v36 = vmul.f32 %v2222_v61, %v2910_v10 }
0x192c   :  { %vm1990_vm0 = vcmp.ge.f32.partialorder %v1988_v36, 0.0 }
0x192d   :  { %v1992_v34 = vsel %vm1990_vm0, %v1972_v19, %v1968_v18 }
0x192e   :  { %v1996_v39 = vadd.f32 %v1994_v38, %v1992_v34  ;;  %v2066_v38 = vmul.f32 0.5, %v2042_v16 }
0x1930   :  { %v1998_v40 = vsub.f32 %v2891_v35, %v1996_v39 }
0x1932   :  { %v2000_v29 = vmax.f32 %v1998_v40, 0.0 }
0x1934   :  { %v2002_v41 = vmul.f32 %v2000_v29, %v2000_v29 }
0x1936   :  { %v2004_v43 = vsel %vm1487_vm6, %v2002_v41, 0.0 }
0x1937   :  { %2005 = vadd.xlane.f32.xlu2 %v2004_v43 }
0x1951   :  { %v1985_v44 = vpop.xlane.xlu1 %1984 }
0x1952   :  { %v2223_v11 = vadd.f32 -1.0, %v1985_v44 }
0x1954   :  { %v1989_v45 = vmul.f32 %v2223_v11, %v2915_v24 }
0x1956   :  { %vm1991_vm1 = vcmp.ge.f32.partialorder %v1989_v45, 0.0 }
0x1957   :  { %v1993_v47 = vsel %vm1991_vm1, %v1973_v14, %v1969_v28 }
0x1958   :  { %v1997_v48 = vadd.f32 %v1995_v46, %v1993_v47  ;;  %v2067_v46 = vmul.f32 0.5, %v2043_v27 }
0x195a   :  { %v1999_v49 = vsub.f32 %v2898_v42, %v1997_v48 }
0x195c   :  { %v2001_v50 = vmax.f32 %v1999_v49, 0.0 }
0x195e   :  { %v2003_v51 = vmul.f32 %v2001_v50, %v2001_v50 }
0x1960   :  { %v2007_v52 = vsel %vm1487_vm6, %v2003_v51, 0.0 }
0x1961   :  { %2008 = vadd.xlane.f32.xlu0 %v2007_v52 }
0x19aa   :  { %v2006_v53 = vpop.xlane.xlu2 %2005 }
0x19ab   :  { %v2224_v17 = vadd.f32 -1.0, %v2006_v53 }
0x19ad   :  { %v2012_v54 = vmul.f32 %v2224_v17, %v2910_v10 }
0x19af   :  { %vm2014_vm2 = vcmp.ge.f32.partialorder %v2012_v54, 0.0 }
0x19b0   :  { %v2016_v56 = vsel %vm2014_vm2, %v1996_v39, %v1992_v34 }
0x19b1   :  { %v2020_v57 = vadd.f32 %v2018_v55, %v2016_v56 }
0x19b3   :  { %v2022_v58 = vsub.f32 %v2891_v35, %v2020_v57 }
0x19b5   :  { %v2024_v59 = vmax.f32 %v2022_v58, 0.0 }
0x19b7   :  { %v2026_v33 = vmul.f32 %v2024_v59, %v2024_v59 }
0x19b9   :  { %v2028_v60 = vsel %vm1487_vm6, %v2026_v33, 0.0 }
0x19ba   :  { %2029 = vadd.xlane.f32.xlu1 %v2028_v60 }
0x19d4   :  { %v2009_v63 = vpop.xlane.xlu0 %2008 }
0x19d5   :  { %v2225_v0 = vadd.f32 -1.0, %v2009_v63 }
0x19d7   :  { %v2013_v1 = vmul.f32 %v2225_v0, %v2915_v24 }
0x19d9   :  { %vm2015_vm3 = vcmp.ge.f32.partialorder %v2013_v1, 0.0 }
0x19da   :  { %v2017_v3 = vsel %vm2015_vm3, %v1997_v48, %v1993_v47 }
0x19db   :  { %v2021_v4 = vadd.f32 %v2019_v2, %v2017_v3 }
0x19dd   :  { %v2023_v5 = vsub.f32 %v2898_v42, %v2021_v4 }
0x19df   :  { %v2025_v6 = vmax.f32 %v2023_v5, 0.0 }
0x19e1   :  { %v2027_v7 = vmul.f32 %v2025_v6, %v2025_v6 }
0x19e3   :  { %v2031_v9 = vsel %vm1487_vm6, %v2027_v7, 0.0 }
0x19e4   :  { %2032 = vadd.xlane.f32.xlu2 %v2031_v9 }
0x1a2d   :  { %v2030_v12 = vpop.xlane.xlu1 %2029 }
0x1a2e   :  { %v2226_v13 = vadd.f32 -1.0, %v2030_v12 }
0x1a30   :  { %v2036_v15 = vmul.f32 %v2226_v13, %v2910_v10 }
0x1a32   :  { %vm2038_vm4 = vcmp.ge.f32.partialorder %v2036_v15, 0.0 }
0x1a33   :  { %v2040_v18 = vsel %vm2038_vm4, %v2020_v57, %v2016_v56 }
0x1a34   :  { %v2044_v19 = vadd.f32 %v2042_v16, %v2040_v18 }
0x1a36   :  { %v2046_v62 = vsub.f32 %v2891_v35, %v2044_v19 }
0x1a38   :  { %v2048_v20 = vmax.f32 %v2046_v62, 0.0 }
0x1a3a   :  { %v2050_v21 = vmul.f32 %v2048_v20, %v2048_v20 }
0x1a3c   :  { %v2052_v22 = vsel %vm1487_vm6, %v2050_v21, 0.0 }
0x1a3d   :  { %2053 = vadd.xlane.f32.xlu0 %v2052_v22 }
0x1a57   :  { %v2033_v23 = vpop.xlane.xlu2 %2032 }
0x1a58   :  { %v2227_v25 = vadd.f32 -1.0, %v2033_v23 }
0x1a5a   :  { %v2037_v26 = vmul.f32 %v2227_v25, %v2915_v24 }
0x1a5c   :  { %vm2039_vm5 = vcmp.ge.f32.partialorder %v2037_v26, 0.0 }
0x1a5d   :  { %v2041_v28 = vsel %vm2039_vm5, %v2021_v4, %v2017_v3 }
0x1a5e   :  { %v2045_v14 = vadd.f32 %v2043_v27, %v2041_v28 }
0x1a60   :  { %v2047_v30 = vsub.f32 %v2898_v42, %v2045_v14 }
0x1a62   :  { %v2049_v31 = vmax.f32 %v2047_v30, 0.0 }
0x1a64   :  { %v2051_v32 = vmul.f32 %v2049_v31, %v2049_v31 }
0x1a66   :  { %v2055_v8 = vsel %vm1487_vm6, %v2051_v32, 0.0 }
0x1a67   :  { %2056 = vadd.xlane.f32.xlu1 %v2055_v8 }
0x1ab0   :  { %v2054_v37 = vpop.xlane.xlu0 %2053 }
0x1ab1   :  { %v2228_v61 = vadd.f32 -1.0, %v2054_v37 }
0x1ab3   :  { %v2060_v36 = vmul.f32 %v2228_v61, %v2910_v10 }
0x1ab5   :  { %vm2062_vm8 = vcmp.ge.f32.partialorder %v2060_v36, 0.0 }
0x1ab6   :  { %v2064_v34 = vsel %vm2062_vm8, %v2044_v19, %v2040_v18 }
0x1ab7   :  { %v2068_v39 = vadd.f32 %v2066_v38, %v2064_v34 }
0x1ab9   :  { %v2070_v40 = vsub.f32 %v2891_v35, %v2068_v39 }
0x1abb   :  { %v2072_v29 = vmax.f32 %v2070_v40, 0.0 }
0x1abd   :  { %v2074_v41 = vmul.f32 %v2072_v29, %v2072_v29 }
0x1abf   :  { %v2076_v43 = vsel %vm1487_vm6, %v2074_v41, 0.0 }
0x1ac0   :  { %2077 = vadd.xlane.f32.xlu2 %v2076_v43 }
0x1ada   :  { %v2057_v44 = vpop.xlane.xlu1 %2056 }
0x1adb   :  { %v2229_v11 = vadd.f32 -1.0, %v2057_v44 }
0x1add   :  { %v2061_v45 = vmul.f32 %v2229_v11, %v2915_v24 }
0x1adf   :  { %vm2063_vm7 = vcmp.ge.f32.partialorder %v2061_v45, 0.0 }
0x1ae0   :  { %v2065_v47 = vsel %vm2063_vm7, %v2045_v14, %v2041_v28 }
0x1ae1   :  { %v2069_v48 = vadd.f32 %v2067_v46, %v2065_v47 }
0x1ae3   :  { %v2071_v10 = vsub.f32 %v2898_v42, %v2069_v48 }
0x1ae5   :  { %v2073_v49 = vmax.f32 %v2071_v10, 0.0 }
0x1ae7   :  { %v2075_v50 = vmul.f32 %v2073_v49, %v2073_v49 }
0x1ae9   :  { %v2079_v35 = vsel %vm1487_vm6, %v2075_v50, 0.0 }
0x1aea   :  { %2080 = vadd.xlane.f32.xlu0 %v2079_v35 }
0x1b33   :  { %v2078_v24 = vpop.xlane.xlu2 %2077 }
0x1b34   :  { %2343 = vrcp.f32 %v2078_v24 }
0x1b3a   :  { %v2344_v51 = vpop.eup %2343 }
0x1b3b   :  { %v2084_v42 = vmul.f32 %v2344_v51, %v2074_v41 }
0x1b3d   :  { %2086 = vst.msk [vmem:[#allocation4] sm:$0x1] %vm1487_vm6, %v2084_v42 }
0x1b5d   :  { %v2081_v52 = vpop.xlane.xlu0 %2080 }
0x1b5e   :  { %2345 = vrcp.f32 %v2081_v52 }
0x1b64   :  { %v2346_v53 = vpop.eup %2345 }
0x1b65   :  { %v2085_v17 = vmul.f32 %v2346_v53, %v2075_v50 }
0x1b67   :  { %2087 = vst.msk [vmem:[#allocation4 + $0x1] sm:$0x1] %vm1487_vm6, %v2085_v17 }
0x1b68   :  { %2113 = dma.vmem_to_hbm [thread:$0]  %s2106_s25, 32, %s2108_s27, [#allocation5], %s2412_s30, %s2412_s30, %s2413_s6  }
0x1b69   :  { %2397 = dma.done.wait [#allocation3], 256  }
0x1b6a   :  { %2398 = vsyncadd [#allocation3], 4294967040 }
0x1b6b   :  { %2399 = dma.done.wait [#allocation5], 32  }
0x1b6c   :  { %2400 = vsyncadd [#allocation5], 4294967264 }
0x1b6d   :  { %2122 = vsyncpa [#allocation3], 1 }
0x1b6e   :  { %2123 = vsyncpa [#allocation5], 1 }

</bundles_post_ra>
